<compile_context>
chip_gen: v7x
topology: tpu7x:2x2x1
jax: 0.10.0
libtpu: 0.0.40
codegen_flags: <defaults>
</compile_context>

<pallas_src>
import functools
import math

import jax
import jax.numpy as jnp
from jax.experimental import pallas as pl
from jax.experimental.pallas import tpu as pltpu

_BN_EPS = 1e-5
_LOCAL_NUM = 8
_VMEM_LIMIT = 48 * 1024 * 1024      # stays under the 64 MiB physical VMEM on v7x


def _compiler_params():
    return pltpu.CompilerParams(
        dimension_semantics=("parallel",),   # batch tiles are independent
        vmem_limit_bytes=_VMEM_LIMIT,
    )


# --------------------------------------------------------------------------
# in-kernel helpers
# --------------------------------------------------------------------------
def _make_col_masks(H, W, radius):
    """Per-column-offset validity masks, built once and reused across taps."""
    col = jax.lax.broadcasted_iota(jnp.int32, (1, H * W), 1) % W
    masks = {}
    for ow in range(-radius, radius + 1):
        if ow > 0:
            masks[ow] = col < (W - ow)
        elif ow < 0:
            masks[ow] = col >= (-ow)
        else:
            masks[ow] = None
    return masks


def _spatial_shift(a, oh, ow, H, W, mask):
    """Zero-padded spatial shift of a channels-first flattened feature map.

    a: (C, H*W) viewed as (C, H, W).  Returns s with
      s[c, i*W + j] = a[c, (i+oh)*W + (j+ow)]  if (i+oh, j+ow) is inside the
                                               image, else 0.
    Row overflow is handled by the flat zero padding (the shift includes a
    whole-row offset); column wrap-around is killed by `mask` (depends only
    on ow).
    """
    HW = H * W
    C = a.shape[0]
    k = oh * W + ow
    if k > 0:
        shifted = jnp.concatenate([a[:, k:], jnp.zeros((C, k), a.dtype)], axis=1)
    elif k < 0:
        shifted = jnp.concatenate([jnp.zeros((C, -k), a.dtype), a[:, :HW + k]],
                                  axis=1)
    else:
        shifted = a
    if mask is None:
        return shifted
    return jnp.where(mask, shifted, jnp.zeros_like(shifted))


def _sum_and_sumsq(y):
    """One-pass per-channel (sum, sum of squares) partials -> (C, 2)."""
    return jnp.concatenate(
        [jnp.sum(y, axis=1, keepdims=True),
         jnp.sum(y * y, axis=1, keepdims=True)], axis=1)


# --------------------------------------------------------------------------
# kernels (one batch image per grid step; activations are (C, H*W))
# --------------------------------------------------------------------------
def _conv1_kernel(x_ref, w1_ref, y1_ref, st_ref):
    # conv1: (P, Cin)bf16 @ (Cin, HW)bf16 -> f32; N = HW is lane-dense.
    y = jnp.dot(w1_ref[...], x_ref[0].astype(jnp.bfloat16),
                preferred_element_type=jnp.float32)
    y1_ref[0] = y
    st_ref[0] = _sum_and_sumsq(y)


def _conv2_kernel(y1_ref, bn1_ref, w2_ref, y2_ref, st_ref, *, H, W):
    # bn1 (fused scale/shift) + relu, then the 3x3 conv as ONE im2col matmul.
    h = jnp.maximum(y1_ref[0] * bn1_ref[0] + bn1_ref[1], 0.0)          # (P, HW)
    masks = _make_col_masks(H, W, 1)
    taps = [_spatial_shift(h, kh - 1, kw - 1, H, W, masks[kw - 1])
            for kh in range(3) for kw in range(3)]
    stacked = jnp.concatenate(taps, axis=0).astype(jnp.bfloat16)       # (9P, HW)
    y = jnp.dot(w2_ref[...], stacked, preferred_element_type=jnp.float32)
    y2_ref[0] = y
    st_ref[0] = _sum_and_sumsq(y)


def _conv3_kernel(y2_ref, bn2_ref, w3_ref, y3_ref, st_ref):
    # bn2 + relu + conv3 (1x1).
    h = jnp.maximum(y2_ref[0] * bn2_ref[0] + bn2_ref[1], 0.0)
    y = jnp.dot(w3_ref[...], h.astype(jnp.bfloat16),
                preferred_element_type=jnp.float32)                    # (C4, HW)
    y3_ref[0] = y
    st_ref[0] = _sum_and_sumsq(y)


def _dis_kernel(y3_ref, x_ref, bn3_ref, dw_ref, db_ref, p_ref, out_ref, *, H, W):
    # bn3 + DisLayer (value_embed = depthwise5 -> relu -> depthwise5, weighted
    # by the hoisted Gaussian pdf map) + identity residual + final relu.
    masks = _make_col_masks(H, W, 2)
    y3 = y3_ref[0] * bn3_ref[0] + bn3_ref[1]                           # (C4, HW)

    def depthwise5(a, dw, db):
        acc = db                                                       # (C4, 1)
        for kh in range(5):
            for kw in range(5):
                t = kh * 5 + kw
                acc = acc + (_spatial_shift(a, kh - 2, kw - 2, H, W, masks[kw - 2])
                             * dw[:, t:t + 1])
        return acc

    v1 = jnp.maximum(depthwise5(y3, dw_ref[0], db_ref[0]), 0.0)
    ve = depthwise5(v1, dw_ref[1], db_ref[1])
    # identity input x is only touched here, at the very end of the pipeline
    out_ref[0] = jnp.maximum(y3 + ve * p_ref[...] + x_ref[0], 0.0)


# --------------------------------------------------------------------------
# wrapper-side glue (tiny, data-independent or O(C) work)
# --------------------------------------------------------------------------
def _finalize_bn(stats, gamma, beta, count):
    """Combine per-image (sum, sumsq) partials into packed (2, C, 1) scale/shift."""
    tot = jnp.sum(stats, axis=0)                                       # (C, 2)
    mean = tot[:, 0] / count
    var = jnp.maximum(tot[:, 1] / count - mean * mean, 0.0)
    scale = gamma * jax.lax.rsqrt(var + _BN_EPS)
    shift = beta - mean * scale
    return jnp.stack([scale, shift], axis=0).reshape(2, -1, 1)


def _pdf_map(H, W, loc, scal, pos):
    """mean_l N((i, j) * position_scal ; loc_l, diag(scal_l)) over the grid."""
    ii = jnp.arange(H, dtype=jnp.float32).reshape(1, H, 1)
    jj = jnp.arange(W, dtype=jnp.float32).reshape(1, 1, W)
    ps = pos.reshape(())
    m0 = loc[:, 0].reshape(-1, 1, 1)
    m1 = loc[:, 1].reshape(-1, 1, 1)
    s0 = scal[:, 0].reshape(-1, 1, 1)
    s1 = scal[:, 1].reshape(-1, 1, 1)
    z = ((ii * ps - m0) / s0) ** 2 + ((jj * ps - m1) / s1) ** 2
    pdf = jnp.exp(-0.5 * z) / (2.0 * math.pi * s0 * s1)
    return jnp.mean(pdf, axis=0).reshape(1, H * W)


def init_params(key, inplanes, planes, local_num=_LOCAL_NUM):
    c4 = planes * 4
    ks = jax.random.split(key, 16)

    def u(k, shape, lo, hi):
        return jax.random.uniform(k, shape, jnp.float32, lo, hi)

    return dict(
        w1=u(ks[0], (planes, inplanes), -0.2, 0.2),      # conv1 weight (Cout, Cin)
        g1=u(ks[1], (planes,), 0.5, 1.5),
        b1=u(ks[2], (planes,), -0.2, 0.2),
        w2=u(ks[3], (planes, planes, 3, 3), -0.2, 0.2),  # conv2 (Cout, Cin, kh, kw)
        g2=u(ks[4], (planes,), 0.5, 1.5),
        b2=u(ks[5], (planes,), -0.2, 0.2),
        w3=u(ks[6], (c4, planes), -0.2, 0.2),            # conv3 weight (Cout, Cin)
        g3=u(ks[7], (c4,), 0.5, 1.5),
        b3=u(ks[8], (c4,), -0.2, 0.2),
        dw1=u(ks[9], (c4, 5, 5), -0.2, 0.2),             # depthwise 5x5 (C, kh, kw)
        db1=u(ks[10], (c4,), -0.1, 0.1),
        dw2=u(ks[11], (c4, 5, 5), -0.2, 0.2),
        db2=u(ks[12], (c4,), -0.1, 0.1),
        loc=u(ks[13], (local_num, 2), 0.0, 1.0),         # ~ torch.rand(local_num, 2)
        scal=u(ks[14], (local_num, 2), 0.2, 1.0),        # positive diag scale_tril
        pos=jnp.ones((1,), jnp.float32),                 # position_scal
    )


def bottleneck_forward(x_nchw, p):
    B, Cin, H, W = x_nchw.shape
    HW = H * W
    P = p["w1"].shape[0]
    C4 = p["w3"].shape[0]
    assert Cin == C4, "downsample=None requires inplanes == planes * 4"
    count = float(B * HW)

    # NCHW -> (B, C, H*W): a free, contiguous reshape (no transpose needed).
    x = x_nchw.reshape(B, Cin, HW).astype(jnp.float32)

    # MXU operands in bf16 (f32 accumulation); everything else stays f32.
    w1 = p["w1"].astype(jnp.bfloat16)
    w2 = jnp.transpose(p["w2"], (0, 2, 3, 1)).reshape(P, 9 * P).astype(jnp.bfloat16)
    w3 = p["w3"].astype(jnp.bfloat16)
    dw = jnp.stack([p["dw1"].reshape(C4, 25), p["dw2"].reshape(C4, 25)], axis=0)
    db = jnp.stack([p["db1"].reshape(C4, 1), p["db2"].reshape(C4, 1)], axis=0)
    p_map = _pdf_map(H, W, p["loc"], p["scal"], p["pos"])              # (1, HW)

    per_b = lambda c: pl.BlockSpec((1, c, HW), lambda b: (b, 0, 0))
    stat = lambda c: pl.BlockSpec((1, c, 2), lambda b: (b, 0, 0))

    def full(*shape):
        n = len(shape)
        return pl.BlockSpec(shape, lambda b: (0,) * n)

    # ---- conv1 (1x1) + bn1 partial stats -----------------------------------
    y1, st1 = pl.pallas_call(
        _conv1_kernel,
        grid=(B,),
        in_specs=[per_b(Cin), full(P, Cin)],
        out_specs=[per_b(P), stat(P)],
        out_shape=[jax.ShapeDtypeStruct((B, P, HW), jnp.float32),
                   jax.ShapeDtypeStruct((B, P, 2), jnp.float32)],
        compiler_params=_compiler_params(),
        cost_estimate=pl.CostEstimate(
            flops=2 * B * HW * Cin * P, transcendentals=0,
            bytes_accessed=4 * B * HW * (Cin + P)),
    )(x, w1)
    bn1 = _finalize_bn(st1, p["g1"], p["b1"], count)

    # ---- bn1 + relu + conv2 (3x3, im2col) + bn2 partial stats ---------------
    y2, st2 = pl.pallas_call(
        functools.partial(_conv2_kernel, H=H, W=W),
        grid=(B,),
        in_specs=[per_b(P), full(2, P, 1), full(P, 9 * P)],
        out_specs=[per_b(P), stat(P)],
        out_shape=[jax.ShapeDtypeStruct((B, P, HW), jnp.float32),
                   jax.ShapeDtypeStruct((B, P, 2), jnp.float32)],
        compiler_params=_compiler_params(),
        cost_estimate=pl.CostEstimate(
            flops=2 * B * HW * 9 * P * P, transcendentals=0,
            bytes_accessed=4 * B * HW * 2 * P),
    )(y1, bn1, w2)
    bn2 = _finalize_bn(st2, p["g2"], p["b2"], count)

    # ---- bn2 + relu + conv3 (1x1) + bn3 partial stats -----------------------
    y3, st3 = pl.pallas_call(
        _conv3_kernel,
        grid=(B,),
        in_specs=[per_b(P), full(2, P, 1), full(C4, P)],
        out_specs=[per_b(C4), stat(C4)],
        out_shape=[jax.ShapeDtypeStruct((B, C4, HW), jnp.float32),
                   jax.ShapeDtypeStruct((B, C4, 2), jnp.float32)],
        compiler_params=_compiler_params(),
        cost_estimate=pl.CostEstimate(
            flops=2 * B * HW * P * C4, transcendentals=0,
            bytes_accessed=4 * B * HW * (P + C4)),
    )(y2, bn2, w3)
    bn3 = _finalize_bn(st3, p["g3"], p["b3"], count)

    # ---- bn3 + DisLayer + identity residual + relu --------------------------
    out = pl.pallas_call(
        functools.partial(_dis_kernel, H=H, W=W),
        grid=(B,),
        in_specs=[per_b(C4), per_b(C4), full(2, C4, 1),
                  full(2, C4, 25), full(2, C4, 1), full(1, HW)],
        out_specs=per_b(C4),
        out_shape=jax.ShapeDtypeStruct((B, C4, HW), jnp.float32),
        compiler_params=_compiler_params(),
        cost_estimate=pl.CostEstimate(
            flops=2 * 2 * 25 * B * HW * C4, transcendentals=0,
            bytes_accessed=4 * B * HW * C4 * 3),
    )(y3, x, bn3, dw, db, p_map)

    # (B, C, H*W) -> NCHW, another free reshape.
    return out.reshape(B, C4, H, W)


if __name__ == "__main__":
    key = jax.random.PRNGKey(0)
    k_x, k_p = jax.random.split(key)

    B = 2
    planes = 4
    inplanes = planes * 4      # identity residual requires inplanes == 4*planes
    H = W = 16                 # H*W = 256 -> lane-dense (multiple of 128)

    x_nchw = jax.random.normal(k_x, (B, inplanes, H, W), jnp.float32)
    params = init_params(k_p, inplanes, planes)

    fwd = jax.jit(bottleneck_forward)
    out = jax.block_until_ready(fwd(x_nchw, params))

    assert out.shape == (B, inplanes, H, W)
    assert bool(jnp.isfinite(out).all())
    print("KERNEL_OK")
</pallas_src>

<mosaic_0001>
module attributes {stable_mosaic.version = 11 : i64} {
  func.func @_conv1_kernel(%arg0: i32, %arg1: memref<1x16x256xf32, #tpu.memory_space<vmem>>, %arg2: memref<4x16xbf16, #tpu.memory_space<vmem>>, %arg3: memref<1x4x256xf32, #tpu.memory_space<vmem>>, %arg4: memref<1x4x2xf32, #tpu.memory_space<vmem>>) attributes {dimension_semantics = [#tpu.dimension_semantics<parallel>], iteration_bounds = array<i64: 2>, scalar_prefetch = 0 : i64, scratch_operands = 0 : i64, tpu.core_type = #tpu.core_type<tc>, window_params = [{transform_indices = @transform_0, window_bounds = array<i64: 1, 16, 256>}, {pipeline_mode = #tpu.pipeline_mode<synchronous>, transform_indices = @transform_1, window_bounds = array<i64: 4, 16>}, {transform_indices = @transform_2, window_bounds = array<i64: 1, 4, 256>}, {transform_indices = @transform_3, window_bounds = array<i64: 1, 4, 2>}]} {
    %c0 = arith.constant 0 : index
    %c0_0 = arith.constant 0 : index
    %0 = vector.load %arg2[%c0, %c0_0] : memref<4x16xbf16, #tpu.memory_space<vmem>>, vector<4x16xbf16>
    %c0_1 = arith.constant 0 : index
    %c0_2 = arith.constant 0 : index
    %c0_3 = arith.constant 0 : index
    %1 = vector.load %arg1[%c0_1, %c0_2, %c0_3] : memref<1x16x256xf32, #tpu.memory_space<vmem>>, vector<1x16x256xf32>
    %2 = vector.shape_cast %1 : vector<1x16x256xf32> to vector<16x256xf32>
    %3 = arith.truncf %2 : vector<16x256xf32> to vector<16x256xbf16>
    %cst = arith.constant dense<0.000000e+00> : vector<4x256xf32>
    %4 = tpu.matmul %0, %3, %cst {dimension_numbers = #tpu.dot_dimension_numbers<[1], [0], [0], [1], [0, 0, 1, 1], [], []>} : vector<4x16xbf16>, vector<16x256xbf16>, vector<4x256xf32> -> vector<4x256xf32>
    %c0_4 = arith.constant 0 : index
    %c0_5 = arith.constant 0 : index
    %c0_6 = arith.constant 0 : index
    %5 = vector.load %arg3[%c0_4, %c0_5, %c0_6] : memref<1x4x256xf32, #tpu.memory_space<vmem>>, vector<1x4x256xf32>
    %6 = vector.shape_cast %5 : vector<1x4x256xf32> to vector<4x256xf32>
    %7 = vector.shape_cast %4 : vector<4x256xf32> to vector<1x4x256xf32>
    tpu.vector_store %arg3[%c0_4, %c0_5, %c0_6], %7 {strides = array<i32>} : memref<1x4x256xf32, #tpu.memory_space<vmem>>, vector<1x4x256xf32>,
    %cst_7 = arith.constant dense<0.000000e+00> : vector<4xf32>
    %8 = vector.multi_reduction <add>, %4, %cst_7 [1] : vector<4x256xf32> to vector<4xf32>
    %9 = vector.shape_cast %8 : vector<4xf32> to vector<4x1xf32>
    %10 = arith.mulf %4, %4 : vector<4x256xf32>
    %cst_8 = arith.constant dense<0.000000e+00> : vector<4xf32>
    %11 = vector.multi_reduction <add>, %10, %cst_8 [1] : vector<4x256xf32> to vector<4xf32>
    %12 = vector.shape_cast %11 : vector<4xf32> to vector<4x1xf32>
    %13 = tpu.concatenate %9, %12 in 1 : vector<4x1xf32>, vector<4x1xf32> -> vector<4x2xf32>
    %c0_9 = arith.constant 0 : index
    %c0_10 = arith.constant 0 : index
    %c0_11 = arith.constant 0 : index
    %14 = vector.load %arg4[%c0_9, %c0_10, %c0_11] : memref<1x4x2xf32, #tpu.memory_space<vmem>>, vector<1x4x2xf32>
    %15 = vector.shape_cast %14 : vector<1x4x2xf32> to vector<4x2xf32>
    %16 = vector.shape_cast %13 : vector<4x2xf32> to vector<1x4x2xf32>
    tpu.vector_store %arg4[%c0_9, %c0_10, %c0_11], %16 {strides = array<i32>} : memref<1x4x2xf32, #tpu.memory_space<vmem>>, vector<1x4x2xf32>,
    return
  }
  func.func @transform_0(%arg0: i32) -> (i32, i32, i32) {
    %c0_i32 = arith.constant 0 : i32
    %c0_i32_0 = arith.constant 0 : i32
    %c0_i32_1 = arith.constant 0 : i32
    return %arg0, %c0_i32, %c0_i32_0 : i32, i32, i32
  }
  func.func @transform_1(%arg0: i32) -> (i32, i32) {
    %c0_i32 = arith.constant 0 : i32
    %c0_i32_0 = arith.constant 0 : i32
    %c0_i32_1 = arith.constant 0 : i32
    return %c0_i32, %c0_i32_0 : i32, i32
  }
  func.func @transform_2(%arg0: i32) -> (i32, i32, i32) {
    %c0_i32 = arith.constant 0 : i32
    %c0_i32_0 = arith.constant 0 : i32
    %c0_i32_1 = arith.constant 0 : i32
    return %arg0, %c0_i32, %c0_i32_0 : i32, i32, i32
  }
  func.func @transform_3(%arg0: i32) -> (i32, i32, i32) {
    %c0_i32 = arith.constant 0 : i32
    %c0_i32_0 = arith.constant 0 : i32
    %c0_i32_1 = arith.constant 0 : i32
    return %arg0, %c0_i32, %c0_i32_0 : i32, i32, i32
  }
}

module attributes {stable_mosaic.version = 11 : i64} {
  func.func @_conv3_kernel(%arg0: i32, %arg1: memref<1x4x256xf32, #tpu.memory_space<vmem>>, %arg2: memref<2x4x1xf32, #tpu.memory_space<vmem>>, %arg3: memref<16x4xbf16, #tpu.memory_space<vmem>>, %arg4: memref<1x16x256xf32, #tpu.memory_space<vmem>>, %arg5: memref<1x16x2xf32, #tpu.memory_space<vmem>>) attributes {dimension_semantics = [#tpu.dimension_semantics<parallel>], iteration_bounds = array<i64: 2>, scalar_prefetch = 0 : i64, scratch_operands = 0 : i64, tpu.core_type = #tpu.core_type<tc>, window_params = [{transform_indices = @transform_0, window_bounds = array<i64: 1, 4, 256>}, {pipeline_mode = #tpu.pipeline_mode<synchronous>, transform_indices = @transform_1, window_bounds = array<i64: 2, 4, 1>}, {pipeline_mode = #tpu.pipeline_mode<synchronous>, transform_indices = @transform_2, window_bounds = array<i64: 16, 4>}, {transform_indices = @transform_3, window_bounds = array<i64: 1, 16, 256>}, {transform_indices = @transform_4, window_bounds = array<i64: 1, 16, 2>}]} {
    %c0 = arith.constant 0 : index
    %c0_0 = arith.constant 0 : index
    %c0_1 = arith.constant 0 : index
    %0 = vector.load %arg1[%c0, %c0_0, %c0_1] : memref<1x4x256xf32, #tpu.memory_space<vmem>>, vector<1x4x256xf32>
    %1 = vector.shape_cast %0 : vector<1x4x256xf32> to vector<4x256xf32>
    %c0_2 = arith.constant 0 : index
    %c0_3 = arith.constant 0 : index
    %c0_4 = arith.constant 0 : index
    %2 = vector.load %arg2[%c0_2, %c0_3, %c0_4] : memref<2x4x1xf32, #tpu.memory_space<vmem>>, vector<1x4x1xf32>
    %3 = vector.shape_cast %2 : vector<1x4x1xf32> to vector<4x1xf32>
    %4 = vector.broadcast %3 : vector<4x1xf32> to vector<4x256xf32>
    %5 = arith.mulf %1, %4 : vector<4x256xf32>
    %c1 = arith.constant 1 : index
    %c0_5 = arith.constant 0 : index
    %c0_6 = arith.constant 0 : index
    %6 = vector.load %arg2[%c1, %c0_5, %c0_6] : memref<2x4x1xf32, #tpu.memory_space<vmem>>, vector<1x4x1xf32>
    %7 = vector.shape_cast %6 : vector<1x4x1xf32> to vector<4x1xf32>
    %8 = vector.broadcast %7 : vector<4x1xf32> to vector<4x256xf32>
    %9 = arith.addf %5, %8 : vector<4x256xf32>
    %cst = arith.constant 0.000000e+00 : f32
    %10 = vector.broadcast %cst : f32 to vector<4x256xf32>
    %11 = arith.maximumf %9, %10 : vector<4x256xf32>
    %c0_7 = arith.constant 0 : index
    %c0_8 = arith.constant 0 : index
    %12 = vector.load %arg3[%c0_7, %c0_8] : memref<16x4xbf16, #tpu.memory_space<vmem>>, vector<16x4xbf16>
    %13 = arith.truncf %11 : vector<4x256xf32> to vector<4x256xbf16>
    %cst_9 = arith.constant dense<0.000000e+00> : vector<16x256xf32>
    %14 = tpu.matmul %12, %13, %cst_9 {dimension_numbers = #tpu.dot_dimension_numbers<[1], [0], [0], [1], [0, 0, 1, 1], [], []>} : vector<16x4xbf16>, vector<4x256xbf16>, vector<16x256xf32> -> vector<16x256xf32>
    %c0_10 = arith.constant 0 : index
    %c0_11 = arith.constant 0 : index
    %c0_12 = arith.constant 0 : index
    %15 = vector.load %arg4[%c0_10, %c0_11, %c0_12] : memref<1x16x256xf32, #tpu.memory_space<vmem>>, vector<1x16x256xf32>
    %16 = vector.shape_cast %15 : vector<1x16x256xf32> to vector<16x256xf32>
    %17 = vector.shape_cast %14 : vector<16x256xf32> to vector<1x16x256xf32>
    tpu.vector_store %arg4[%c0_10, %c0_11, %c0_12], %17 {strides = array<i32>} : memref<1x16x256xf32, #tpu.memory_space<vmem>>, vector<1x16x256xf32>,
    %cst_13 = arith.constant dense<0.000000e+00> : vector<16xf32>
    %18 = vector.multi_reduction <add>, %14, %cst_13 [1] : vector<16x256xf32> to vector<16xf32>
    %19 = vector.shape_cast %18 : vector<16xf32> to vector<16x1xf32>
    %20 = arith.mulf %14, %14 : vector<16x256xf32>
    %cst_14 = arith.constant dense<0.000000e+00> : vector<16xf32>
    %21 = vector.multi_reduction <add>, %20, %cst_14 [1] : vector<16x256xf32> to vector<16xf32>
    %22 = vector.shape_cast %21 : vector<16xf32> to vector<16x1xf32>
    %23 = tpu.concatenate %19, %22 in 1 : vector<16x1xf32>, vector<16x1xf32> -> vector<16x2xf32>
    %c0_15 = arith.constant 0 : index
    %c0_16 = arith.constant 0 : index
    %c0_17 = arith.constant 0 : index
    %24 = vector.load %arg5[%c0_15, %c0_16, %c0_17] : memref<1x16x2xf32, #tpu.memory_space<vmem>>, vector<1x16x2xf32>
    %25 = vector.shape_cast %24 : vector<1x16x2xf32> to vector<16x2xf32>
    %26 = vector.shape_cast %23 : vector<16x2xf32> to vector<1x16x2xf32>
    tpu.vector_store %arg5[%c0_15, %c0_16, %c0_17], %26 {strides = array<i32>} : memref<1x16x2xf32, #tpu.memory_space<vmem>>, vector<1x16x2xf32>,
    return
  }
  func.func @transform_0(%arg0: i32) -> (i32, i32, i32) {
    %c0_i32 = arith.constant 0 : i32
    %c0_i32_0 = arith.constant 0 : i32
    %c0_i32_1 = arith.constant 0 : i32
    return %arg0, %c0_i32, %c0_i32_0 : i32, i32, i32
  }
  func.func @transform_1(%arg0: i32) -> (i32, i32, i32) {
    %c0_i32 = arith.constant 0 : i32
    %c0_i32_0 = arith.constant 0 : i32
    %c0_i32_1 = arith.constant 0 : i32
    %c0_i32_2 = arith.constant 0 : i32
    return %c0_i32, %c0_i32_0, %c0_i32_1 : i32, i32, i32
  }
  func.func @transform_2(%arg0: i32) -> (i32, i32) {
    %c0_i32 = arith.constant 0 : i32
    %c0_i32_0 = arith.constant 0 : i32
    %c0_i32_1 = arith.constant 0 : i32
    return %c0_i32, %c0_i32_0 : i32, i32
  }
  func.func @transform_3(%arg0: i32) -> (i32, i32, i32) {
    %c0_i32 = arith.constant 0 : i32
    %c0_i32_0 = arith.constant 0 : i32
    %c0_i32_1 = arith.constant 0 : i32
    return %arg0, %c0_i32, %c0_i32_0 : i32, i32, i32
  }
  func.func @transform_4(%arg0: i32) -> (i32, i32, i32) {
    %c0_i32 = arith.constant 0 : i32
    %c0_i32_0 = arith.constant 0 : i32
    %c0_i32_1 = arith.constant 0 : i32
    return %arg0, %c0_i32, %c0_i32_0 : i32, i32, i32
  }
}

module attributes {stable_mosaic.version = 11 : i64} {
  func.func @_conv2_kernel(%arg0: i32, %arg1: memref<1x4x256xf32, #tpu.memory_space<vmem>>, %arg2: memref<2x4x1xf32, #tpu.memory_space<vmem>>, %arg3: memref<4x36xbf16, #tpu.memory_space<vmem>>, %arg4: memref<1x4x256xf32, #tpu.memory_space<vmem>>, %arg5: memref<1x4x2xf32, #tpu.memory_space<vmem>>) attributes {dimension_semantics = [#tpu.dimension_semantics<parallel>], iteration_bounds = array<i64: 2>, scalar_prefetch = 0 : i64, scratch_operands = 0 : i64, tpu.core_type = #tpu.core_type<tc>, window_params = [{transform_indices = @transform_0, window_bounds = array<i64: 1, 4, 256>}, {pipeline_mode = #tpu.pipeline_mode<synchronous>, transform_indices = @transform_1, window_bounds = array<i64: 2, 4, 1>}, {pipeline_mode = #tpu.pipeline_mode<synchronous>, transform_indices = @transform_2, window_bounds = array<i64: 4, 36>}, {transform_indices = @transform_3, window_bounds = array<i64: 1, 4, 256>}, {transform_indices = @transform_4, window_bounds = array<i64: 1, 4, 2>}]} {
    %c0 = arith.constant 0 : index
    %c0_0 = arith.constant 0 : index
    %c0_1 = arith.constant 0 : index
    %0 = vector.load %arg1[%c0, %c0_0, %c0_1] : memref<1x4x256xf32, #tpu.memory_space<vmem>>, vector<1x4x256xf32>
    %1 = vector.shape_cast %0 : vector<1x4x256xf32> to vector<4x256xf32>
    %c0_2 = arith.constant 0 : index
    %c0_3 = arith.constant 0 : index
    %c0_4 = arith.constant 0 : index
    %2 = vector.load %arg2[%c0_2, %c0_3, %c0_4] : memref<2x4x1xf32, #tpu.memory_space<vmem>>, vector<1x4x1xf32>
    %3 = vector.shape_cast %2 : vector<1x4x1xf32> to vector<4x1xf32>
    %4 = vector.broadcast %3 : vector<4x1xf32> to vector<4x256xf32>
    %5 = arith.mulf %1, %4 : vector<4x256xf32>
    %c1 = arith.constant 1 : index
    %c0_5 = arith.constant 0 : index
    %c0_6 = arith.constant 0 : index
    %6 = vector.load %arg2[%c1, %c0_5, %c0_6] : memref<2x4x1xf32, #tpu.memory_space<vmem>>, vector<1x4x1xf32>
    %7 = vector.shape_cast %6 : vector<1x4x1xf32> to vector<4x1xf32>
    %8 = vector.broadcast %7 : vector<4x1xf32> to vector<4x256xf32>
    %9 = arith.addf %5, %8 : vector<4x256xf32>
    %cst = arith.constant 0.000000e+00 : f32
    %10 = vector.broadcast %cst : f32 to vector<4x256xf32>
    %11 = arith.maximumf %9, %10 : vector<4x256xf32>
    %12 = tpu.iota {dimensions = array<i32: 1>} : vector<1x256xi32>
    %c16_i32 = arith.constant 16 : i32
    %c0_i32 = arith.constant 0 : i32
    %13 = arith.cmpi eq, %c16_i32, %c0_i32 : i32
    %c1_i32 = arith.constant 1 : i32
    %14 = arith.select %13, %c1_i32, %c16_i32 : i32
    %15 = vector.broadcast %14 : i32 to vector<1x256xi32>
    %16 = arith.remsi %12, %15 : vector<1x256xi32>
    %c0_i32_7 = arith.constant 0 : i32
    %17 = vector.broadcast %c0_i32_7 : i32 to vector<1x256xi32>
    %18 = arith.cmpi ne, %16, %17 : vector<1x256xi32>
    %c0_i32_8 = arith.constant 0 : i32
    %19 = vector.broadcast %c0_i32_8 : i32 to vector<1x256xi32>
    %20 = arith.cmpi slt, %16, %19 : vector<1x256xi32>
    %c0_i32_9 = arith.constant 0 : i32
    %21 = arith.cmpi slt, %14, %c0_i32_9 : i32
    %22 = vector.broadcast %21 : i1 to vector<1x256xi1>
    %23 = vector.broadcast %22 : vector<1x256xi1> to vector<1x256xi1>
    %24 = arith.xori %20, %23 : vector<1x256xi1>
    %25 = arith.andi %24, %18 : vector<1x256xi1>
    %26 = vector.broadcast %14 : i32 to vector<1x256xi32>
    %27 = arith.addi %16, %26 : vector<1x256xi32>
    %28 = arith.select %25, %27, %16 : vector<1x256xi1>, vector<1x256xi32>
    %c1_i32_10 = arith.constant 1 : i32
    %29 = vector.broadcast %c1_i32_10 : i32 to vector<1x256xi32>
    %30 = arith.cmpi sge, %28, %29 : vector<1x256xi32>
    %c15_i32 = arith.constant 15 : i32
    %31 = vector.broadcast %c15_i32 : i32 to vector<1x256xi32>
    %32 = arith.cmpi slt, %28, %31 : vector<1x256xi32>
    %cst_11 = arith.constant 0.000000e+00 : f32
    %33 = vector.broadcast %cst_11 : f32 to vector<4x17xf32>
    %34 = vector.extract_strided_slice %11 {offsets = [0, 0], sizes = [4, 239], strides = [1, 1]} : vector<4x256xf32> to vector<4x239xf32>
    %35 = tpu.concatenate %33, %34 in 1 : vector<4x17xf32>, vector<4x239xf32> -> vector<4x256xf32>
    %cst_12 = arith.constant 0.000000e+00 : f32
    %36 = vector.broadcast %cst_12 : f32 to vector<4x256xf32>
    %37 = vector.shape_cast %30 : vector<1x256xi1> to vector<1x256xi1>
    %38 = vector.broadcast %37 : vector<1x256xi1> to vector<4x256xi1>
    %39 = arith.select %38, %35, %36 : vector<4x256xi1>, vector<4x256xf32>
    %cst_13 = arith.constant 0.000000e+00 : f32
    %40 = vector.broadcast %cst_13 : f32 to vector<4x16xf32>
    %41 = vector.extract_strided_slice %11 {offsets = [0, 0], sizes = [4, 240], strides = [1, 1]} : vector<4x256xf32> to vector<4x240xf32>
    %42 = tpu.concatenate %40, %41 in 1 : vector<4x16xf32>, vector<4x240xf32> -> vector<4x256xf32>
    %cst_14 = arith.constant 0.000000e+00 : f32
    %43 = vector.broadcast %cst_14 : f32 to vector<4x15xf32>
    %44 = vector.extract_strided_slice %11 {offsets = [0, 0], sizes = [4, 241], strides = [1, 1]} : vector<4x256xf32> to vector<4x241xf32>
    %45 = tpu.concatenate %43, %44 in 1 : vector<4x15xf32>, vector<4x241xf32> -> vector<4x256xf32>
    %cst_15 = arith.constant 0.000000e+00 : f32
    %46 = vector.broadcast %cst_15 : f32 to vector<4x256xf32>
    %47 = vector.shape_cast %32 : vector<1x256xi1> to vector<1x256xi1>
    %48 = vector.broadcast %47 : vector<1x256xi1> to vector<4x256xi1>
    %49 = arith.select %48, %45, %46 : vector<4x256xi1>, vector<4x256xf32>
    %cst_16 = arith.constant 0.000000e+00 : f32
    %50 = vector.broadcast %cst_16 : f32 to vector<4x1xf32>
    %51 = vector.extract_strided_slice %11 {offsets = [0, 0], sizes = [4, 255], strides = [1, 1]} : vector<4x256xf32> to vector<4x255xf32>
    %52 = tpu.concatenate %50, %51 in 1 : vector<4x1xf32>, vector<4x255xf32> -> vector<4x256xf32>
    %cst_17 = arith.constant 0.000000e+00 : f32
    %53 = vector.broadcast %cst_17 : f32 to vector<4x256xf32>
    %54 = vector.shape_cast %30 : vector<1x256xi1> to vector<1x256xi1>
    %55 = vector.broadcast %54 : vector<1x256xi1> to vector<4x256xi1>
    %56 = arith.select %55, %52, %53 : vector<4x256xi1>, vector<4x256xf32>
    %57 = vector.extract_strided_slice %11 {offsets = [0, 1], sizes = [4, 255], strides = [1, 1]} : vector<4x256xf32> to vector<4x255xf32>
    %cst_18 = arith.constant 0.000000e+00 : f32
    %58 = vector.broadcast %cst_18 : f32 to vector<4x1xf32>
    %59 = tpu.concatenate %57, %58 in 1 : vector<4x255xf32>, vector<4x1xf32> -> vector<4x256xf32>
    %cst_19 = arith.constant 0.000000e+00 : f32
    %60 = vector.broadcast %cst_19 : f32 to vector<4x256xf32>
    %61 = vector.shape_cast %32 : vector<1x256xi1> to vector<1x256xi1>
    %62 = vector.broadcast %61 : vector<1x256xi1> to vector<4x256xi1>
    %63 = arith.select %62, %59, %60 : vector<4x256xi1>, vector<4x256xf32>
    %64 = vector.extract_strided_slice %11 {offsets = [0, 15], sizes = [4, 241], strides = [1, 1]} : vector<4x256xf32> to vector<4x241xf32>
    %cst_20 = arith.constant 0.000000e+00 : f32
    %65 = vector.broadcast %cst_20 : f32 to vector<4x15xf32>
    %66 = tpu.concatenate %64, %65 in 1 : vector<4x241xf32>, vector<4x15xf32> -> vector<4x256xf32>
    %cst_21 = arith.constant 0.000000e+00 : f32
    %67 = vector.broadcast %cst_21 : f32 to vector<4x256xf32>
    %68 = vector.shape_cast %30 : vector<1x256xi1> to vector<1x256xi1>
    %69 = vector.broadcast %68 : vector<1x256xi1> to vector<4x256xi1>
    %70 = arith.select %69, %66, %67 : vector<4x256xi1>, vector<4x256xf32>
    %71 = vector.extract_strided_slice %11 {offsets = [0, 16], sizes = [4, 240], strides = [1, 1]} : vector<4x256xf32> to vector<4x240xf32>
    %cst_22 = arith.constant 0.000000e+00 : f32
    %72 = vector.broadcast %cst_22 : f32 to vector<4x16xf32>
    %73 = tpu.concatenate %71, %72 in 1 : vector<4x240xf32>, vector<4x16xf32> -> vector<4x256xf32>
    %74 = vector.extract_strided_slice %11 {offsets = [0, 17], sizes = [4, 239], strides = [1, 1]} : vector<4x256xf32> to vector<4x239xf32>
    %cst_23 = arith.constant 0.000000e+00 : f32
    %75 = vector.broadcast %cst_23 : f32 to vector<4x17xf32>
    %76 = tpu.concatenate %74, %75 in 1 : vector<4x239xf32>, vector<4x17xf32> -> vector<4x256xf32>
    %cst_24 = arith.constant 0.000000e+00 : f32
    %77 = vector.broadcast %cst_24 : f32 to vector<4x256xf32>
    %78 = vector.shape_cast %32 : vector<1x256xi1> to vector<1x256xi1>
    %79 = vector.broadcast %78 : vector<1x256xi1> to vector<4x256xi1>
    %80 = arith.select %79, %76, %77 : vector<4x256xi1>, vector<4x256xf32>
    %81 = tpu.concatenate %39, %42, %49, %56, %11, %63, %70, %73, %80 in 0 : vector<4x256xf32>, vector<4x256xf32>, vector<4x256xf32>, vector<4x256xf32>, vector<4x256xf32>, vector<4x256xf32>, vector<4x256xf32>, vector<4x256xf32>, vector<4x256xf32> -> vector<36x256xf32>
    %82 = arith.truncf %81 : vector<36x256xf32> to vector<36x256xbf16>
    %c0_25 = arith.constant 0 : index
    %c0_26 = arith.constant 0 : index
    %83 = vector.load %arg3[%c0_25, %c0_26] : memref<4x36xbf16, #tpu.memory_space<vmem>>, vector<4x36xbf16>
    %cst_27 = arith.constant dense<0.000000e+00> : vector<4x256xf32>
    %84 = tpu.matmul %83, %82, %cst_27 {dimension_numbers = #tpu.dot_dimension_numbers<[1], [0], [0], [1], [0, 0, 1, 1], [], []>} : vector<4x36xbf16>, vector<36x256xbf16>, vector<4x256xf32> -> vector<4x256xf32>
    %c0_28 = arith.constant 0 : index
    %c0_29 = arith.constant 0 : index
    %c0_30 = arith.constant 0 : index
    %85 = vector.load %arg4[%c0_28, %c0_29, %c0_30] : memref<1x4x256xf32, #tpu.memory_space<vmem>>, vector<1x4x256xf32>
    %86 = vector.shape_cast %85 : vector<1x4x256xf32> to vector<4x256xf32>
    %87 = vector.shape_cast %84 : vector<4x256xf32> to vector<1x4x256xf32>
    tpu.vector_store %arg4[%c0_28, %c0_29, %c0_30], %87 {strides = array<i32>} : memref<1x4x256xf32, #tpu.memory_space<vmem>>, vector<1x4x256xf32>,
    %cst_31 = arith.constant dense<0.000000e+00> : vector<4xf32>
    %88 = vector.multi_reduction <add>, %84, %cst_31 [1] : vector<4x256xf32> to vector<4xf32>
    %89 = vector.shape_cast %88 : vector<4xf32> to vector<4x1xf32>
    %90 = arith.mulf %84, %84 : vector<4x256xf32>
    %cst_32 = arith.constant dense<0.000000e+00> : vector<4xf32>
    %91 = vector.multi_reduction <add>, %90, %cst_32 [1] : vector<4x256xf32> to vector<4xf32>
    %92 = vector.shape_cast %91 : vector<4xf32> to vector<4x1xf32>
    %93 = tpu.concatenate %89, %92 in 1 : vector<4x1xf32>, vector<4x1xf32> -> vector<4x2xf32>
    %c0_33 = arith.constant 0 : index
    %c0_34 = arith.constant 0 : index
    %c0_35 = arith.constant 0 : index
    %94 = vector.load %arg5[%c0_33, %c0_34, %c0_35] : memref<1x4x2xf32, #tpu.memory_space<vmem>>, vector<1x4x2xf32>
    %95 = vector.shape_cast %94 : vector<1x4x2xf32> to vector<4x2xf32>
    %96 = vector.shape_cast %93 : vector<4x2xf32> to vector<1x4x2xf32>
    tpu.vector_store %arg5[%c0_33, %c0_34, %c0_35], %96 {strides = array<i32>} : memref<1x4x2xf32, #tpu.memory_space<vmem>>, vector<1x4x2xf32>,
    return
  }
  func.func @transform_0(%arg0: i32) -> (i32, i32, i32) {
    %c0_i32 = arith.constant 0 : i32
    %c0_i32_0 = arith.constant 0 : i32
    %c0_i32_1 = arith.constant 0 : i32
    return %arg0, %c0_i32, %c0_i32_0 : i32, i32, i32
  }
  func.func @transform_1(%arg0: i32) -> (i32, i32, i32) {
    %c0_i32 = arith.constant 0 : i32
    %c0_i32_0 = arith.constant 0 : i32
    %c0_i32_1 = arith.constant 0 : i32
    %c0_i32_2 = arith.constant 0 : i32
    return %c0_i32, %c0_i32_0, %c0_i32_1 : i32, i32, i32
  }
  func.func @transform_2(%arg0: i32) -> (i32, i32) {
    %c0_i32 = arith.constant 0 : i32
    %c0_i32_0 = arith.constant 0 : i32
    %c0_i32_1 = arith.constant 0 : i32
    return %c0_i32, %c0_i32_0 : i32, i32
  }
  func.func @transform_3(%arg0: i32) -> (i32, i32, i32) {
    %c0_i32 = arith.constant 0 : i32
    %c0_i32_0 = arith.constant 0 : i32
    %c0_i32_1 = arith.constant 0 : i32
    return %arg0, %c0_i32, %c0_i32_0 : i32, i32, i32
  }
  func.func @transform_4(%arg0: i32) -> (i32, i32, i32) {
    %c0_i32 = arith.constant 0 : i32
    %c0_i32_0 = arith.constant 0 : i32
    %c0_i32_1 = arith.constant 0 : i32
    return %arg0, %c0_i32, %c0_i32_0 : i32, i32, i32
  }
}

module attributes {stable_mosaic.version = 11 : i64} {
  func.func @_dis_kernel(%arg0: i32, %arg1: memref<1x16x256xf32, #tpu.memory_space<vmem>>, %arg2: memref<1x16x256xf32, #tpu.memory_space<vmem>>, %arg3: memref<2x16x1xf32, #tpu.memory_space<vmem>>, %arg4: memref<2x16x25xf32, #tpu.memory_space<vmem>>, %arg5: memref<2x16x1xf32, #tpu.memory_space<vmem>>, %arg6: memref<1x256xf32, #tpu.memory_space<vmem>>, %arg7: memref<1x16x256xf32, #tpu.memory_space<vmem>>) attributes {dimension_semantics = [#tpu.dimension_semantics<parallel>], iteration_bounds = array<i64: 2>, scalar_prefetch = 0 : i64, scratch_operands = 0 : i64, tpu.core_type = #tpu.core_type<tc>, window_params = [{transform_indices = @transform_0, window_bounds = array<i64: 1, 16, 256>}, {transform_indices = @transform_1, window_bounds = array<i64: 1, 16, 256>}, {pipeline_mode = #tpu.pipeline_mode<synchronous>, transform_indices = @transform_2, window_bounds = array<i64: 2, 16, 1>}, {pipeline_mode = #tpu.pipeline_mode<synchronous>, transform_indices = @transform_3, window_bounds = array<i64: 2, 16, 25>}, {pipeline_mode = #tpu.pipeline_mode<synchronous>, transform_indices = @transform_4, window_bounds = array<i64: 2, 16, 1>}, {pipeline_mode = #tpu.pipeline_mode<synchronous>, transform_indices = @transform_5, window_bounds = array<i64: 1, 256>}, {transform_indices = @transform_6, window_bounds = array<i64: 1, 16, 256>}]} {
    %0 = tpu.iota {dimensions = array<i32: 1>} : vector<1x256xi32>
    %c16_i32 = arith.constant 16 : i32
    %c0_i32 = arith.constant 0 : i32
    %1 = arith.cmpi eq, %c16_i32, %c0_i32 : i32
    %c1_i32 = arith.constant 1 : i32
    %2 = arith.select %1, %c1_i32, %c16_i32 : i32
    %3 = vector.broadcast %2 : i32 to vector<1x256xi32>
    %4 = arith.remsi %0, %3 : vector<1x256xi32>
    %c0_i32_0 = arith.constant 0 : i32
    %5 = vector.broadcast %c0_i32_0 : i32 to vector<1x256xi32>
    %6 = arith.cmpi ne, %4, %5 : vector<1x256xi32>
    %c0_i32_1 = arith.constant 0 : i32
    %7 = vector.broadcast %c0_i32_1 : i32 to vector<1x256xi32>
    %8 = arith.cmpi slt, %4, %7 : vector<1x256xi32>
    %c0_i32_2 = arith.constant 0 : i32
    %9 = arith.cmpi slt, %2, %c0_i32_2 : i32
    %10 = vector.broadcast %9 : i1 to vector<1x256xi1>
    %11 = vector.broadcast %10 : vector<1x256xi1> to vector<1x256xi1>
    %12 = arith.xori %8, %11 : vector<1x256xi1>
    %13 = arith.andi %12, %6 : vector<1x256xi1>
    %14 = vector.broadcast %2 : i32 to vector<1x256xi32>
    %15 = arith.addi %4, %14 : vector<1x256xi32>
    %16 = arith.select %13, %15, %4 : vector<1x256xi1>, vector<1x256xi32>
    %c2_i32 = arith.constant 2 : i32
    %17 = vector.broadcast %c2_i32 : i32 to vector<1x256xi32>
    %18 = arith.cmpi sge, %16, %17 : vector<1x256xi32>
    %c1_i32_3 = arith.constant 1 : i32
    %19 = vector.broadcast %c1_i32_3 : i32 to vector<1x256xi32>
    %20 = arith.cmpi sge, %16, %19 : vector<1x256xi32>
    %c15_i32 = arith.constant 15 : i32
    %21 = vector.broadcast %c15_i32 : i32 to vector<1x256xi32>
    %22 = arith.cmpi slt, %16, %21 : vector<1x256xi32>
    %c14_i32 = arith.constant 14 : i32
    %23 = vector.broadcast %c14_i32 : i32 to vector<1x256xi32>
    %24 = arith.cmpi slt, %16, %23 : vector<1x256xi32>
    %c0 = arith.constant 0 : index
    %c0_4 = arith.constant 0 : index
    %c0_5 = arith.constant 0 : index
    %25 = vector.load %arg1[%c0, %c0_4, %c0_5] : memref<1x16x256xf32, #tpu.memory_space<vmem>>, vector<1x16x256xf32>
    %26 = vector.shape_cast %25 : vector<1x16x256xf32> to vector<16x256xf32>
    %c0_6 = arith.constant 0 : index
    %c0_7 = arith.constant 0 : index
    %c0_8 = arith.constant 0 : index
    %27 = vector.load %arg3[%c0_6, %c0_7, %c0_8] : memref<2x16x1xf32, #tpu.memory_space<vmem>>, vector<1x16x1xf32>
    %28 = vector.shape_cast %27 : vector<1x16x1xf32> to vector<16x1xf32>
    %29 = vector.broadcast %28 : vector<16x1xf32> to vector<16x256xf32>
    %30 = arith.mulf %26, %29 : vector<16x256xf32>
    %c1 = arith.constant 1 : index
    %c0_9 = arith.constant 0 : index
    %c0_10 = arith.constant 0 : index
    %31 = vector.load %arg3[%c1, %c0_9, %c0_10] : memref<2x16x1xf32, #tpu.memory_space<vmem>>, vector<1x16x1xf32>
    %32 = vector.shape_cast %31 : vector<1x16x1xf32> to vector<16x1xf32>
    %33 = vector.broadcast %32 : vector<16x1xf32> to vector<16x256xf32>
    %34 = arith.addf %30, %33 : vector<16x256xf32>
    %c0_11 = arith.constant 0 : index
    %c0_12 = arith.constant 0 : index
    %c0_13 = arith.constant 0 : index
    %35 = vector.load %arg4[%c0_11, %c0_12, %c0_13] : memref<2x16x25xf32, #tpu.memory_space<vmem>>, vector<1x16x25xf32>
    %36 = vector.shape_cast %35 : vector<1x16x25xf32> to vector<16x25xf32>
    %c0_14 = arith.constant 0 : index
    %c0_15 = arith.constant 0 : index
    %c0_16 = arith.constant 0 : index
    %37 = vector.load %arg5[%c0_14, %c0_15, %c0_16] : memref<2x16x1xf32, #tpu.memory_space<vmem>>, vector<1x16x1xf32>
    %38 = vector.shape_cast %37 : vector<1x16x1xf32> to vector<16x1xf32>
    %cst = arith.constant 0.000000e+00 : f32
    %39 = vector.broadcast %cst : f32 to vector<16x34xf32>
    %40 = vector.extract_strided_slice %34 {offsets = [0, 0], sizes = [16, 222], strides = [1, 1]} : vector<16x256xf32> to vector<16x222xf32>
    %41 = tpu.concatenate %39, %40 in 1 : vector<16x34xf32>, vector<16x222xf32> -> vector<16x256xf32>
    %cst_17 = arith.constant 0.000000e+00 : f32
    %42 = vector.broadcast %cst_17 : f32 to vector<16x256xf32>
    %43 = vector.shape_cast %18 : vector<1x256xi1> to vector<1x256xi1>
    %44 = vector.broadcast %43 : vector<1x256xi1> to vector<16x256xi1>
    %45 = arith.select %44, %41, %42 : vector<16x256xi1>, vector<16x256xf32>
    %46 = vector.extract_strided_slice %36 {offsets = [0, 0], sizes = [16, 1], strides = [1, 1]} : vector<16x25xf32> to vector<16x1xf32>
    %47 = vector.broadcast %46 : vector<16x1xf32> to vector<16x256xf32>
    %48 = arith.mulf %45, %47 : vector<16x256xf32>
    %49 = vector.broadcast %38 : vector<16x1xf32> to vector<16x256xf32>
    %50 = arith.addf %49, %48 : vector<16x256xf32>
    %cst_18 = arith.constant 0.000000e+00 : f32
    %51 = vector.broadcast %cst_18 : f32 to vector<16x33xf32>
    %52 = vector.extract_strided_slice %34 {offsets = [0, 0], sizes = [16, 223], strides = [1, 1]} : vector<16x256xf32> to vector<16x223xf32>
    %53 = tpu.concatenate %51, %52 in 1 : vector<16x33xf32>, vector<16x223xf32> -> vector<16x256xf32>
    %cst_19 = arith.constant 0.000000e+00 : f32
    %54 = vector.broadcast %cst_19 : f32 to vector<16x256xf32>
    %55 = vector.shape_cast %20 : vector<1x256xi1> to vector<1x256xi1>
    %56 = vector.broadcast %55 : vector<1x256xi1> to vector<16x256xi1>
    %57 = arith.select %56, %53, %54 : vector<16x256xi1>, vector<16x256xf32>
    %58 = vector.extract_strided_slice %36 {offsets = [0, 1], sizes = [16, 1], strides = [1, 1]} : vector<16x25xf32> to vector<16x1xf32>
    %59 = vector.broadcast %58 : vector<16x1xf32> to vector<16x256xf32>
    %60 = arith.mulf %57, %59 : vector<16x256xf32>
    %61 = arith.addf %50, %60 : vector<16x256xf32>
    %cst_20 = arith.constant 0.000000e+00 : f32
    %62 = vector.broadcast %cst_20 : f32 to vector<16x32xf32>
    %63 = vector.extract_strided_slice %34 {offsets = [0, 0], sizes = [16, 224], strides = [1, 1]} : vector<16x256xf32> to vector<16x224xf32>
    %64 = tpu.concatenate %62, %63 in 1 : vector<16x32xf32>, vector<16x224xf32> -> vector<16x256xf32>
    %65 = vector.extract_strided_slice %36 {offsets = [0, 2], sizes = [16, 1], strides = [1, 1]} : vector<16x25xf32> to vector<16x1xf32>
    %66 = vector.broadcast %65 : vector<16x1xf32> to vector<16x256xf32>
    %67 = arith.mulf %64, %66 : vector<16x256xf32>
    %68 = arith.addf %61, %67 : vector<16x256xf32>
    %cst_21 = arith.constant 0.000000e+00 : f32
    %69 = vector.broadcast %cst_21 : f32 to vector<16x31xf32>
    %70 = vector.extract_strided_slice %34 {offsets = [0, 0], sizes = [16, 225], strides = [1, 1]} : vector<16x256xf32> to vector<16x225xf32>
    %71 = tpu.concatenate %69, %70 in 1 : vector<16x31xf32>, vector<16x225xf32> -> vector<16x256xf32>
    %cst_22 = arith.constant 0.000000e+00 : f32
    %72 = vector.broadcast %cst_22 : f32 to vector<16x256xf32>
    %73 = vector.shape_cast %22 : vector<1x256xi1> to vector<1x256xi1>
    %74 = vector.broadcast %73 : vector<1x256xi1> to vector<16x256xi1>
    %75 = arith.select %74, %71, %72 : vector<16x256xi1>, vector<16x256xf32>
    %76 = vector.extract_strided_slice %36 {offsets = [0, 3], sizes = [16, 1], strides = [1, 1]} : vector<16x25xf32> to vector<16x1xf32>
    %77 = vector.broadcast %76 : vector<16x1xf32> to vector<16x256xf32>
    %78 = arith.mulf %75, %77 : vector<16x256xf32>
    %79 = arith.addf %68, %78 : vector<16x256xf32>
    %cst_23 = arith.constant 0.000000e+00 : f32
    %80 = vector.broadcast %cst_23 : f32 to vector<16x30xf32>
    %81 = vector.extract_strided_slice %34 {offsets = [0, 0], sizes = [16, 226], strides = [1, 1]} : vector<16x256xf32> to vector<16x226xf32>
    %82 = tpu.concatenate %80, %81 in 1 : vector<16x30xf32>, vector<16x226xf32> -> vector<16x256xf32>
    %cst_24 = arith.constant 0.000000e+00 : f32
    %83 = vector.broadcast %cst_24 : f32 to vector<16x256xf32>
    %84 = vector.shape_cast %24 : vector<1x256xi1> to vector<1x256xi1>
    %85 = vector.broadcast %84 : vector<1x256xi1> to vector<16x256xi1>
    %86 = arith.select %85, %82, %83 : vector<16x256xi1>, vector<16x256xf32>
    %87 = vector.extract_strided_slice %36 {offsets = [0, 4], sizes = [16, 1], strides = [1, 1]} : vector<16x25xf32> to vector<16x1xf32>
    %88 = vector.broadcast %87 : vector<16x1xf32> to vector<16x256xf32>
    %89 = arith.mulf %86, %88 : vector<16x256xf32>
    %90 = arith.addf %79, %89 : vector<16x256xf32>
    %cst_25 = arith.constant 0.000000e+00 : f32
    %91 = vector.broadcast %cst_25 : f32 to vector<16x18xf32>
    %92 = vector.extract_strided_slice %34 {offsets = [0, 0], sizes = [16, 238], strides = [1, 1]} : vector<16x256xf32> to vector<16x238xf32>
    %93 = tpu.concatenate %91, %92 in 1 : vector<16x18xf32>, vector<16x238xf32> -> vector<16x256xf32>
    %cst_26 = arith.constant 0.000000e+00 : f32
    %94 = vector.broadcast %cst_26 : f32 to vector<16x256xf32>
    %95 = vector.shape_cast %18 : vector<1x256xi1> to vector<1x256xi1>
    %96 = vector.broadcast %95 : vector<1x256xi1> to vector<16x256xi1>
    %97 = arith.select %96, %93, %94 : vector<16x256xi1>, vector<16x256xf32>
    %98 = vector.extract_strided_slice %36 {offsets = [0, 5], sizes = [16, 1], strides = [1, 1]} : vector<16x25xf32> to vector<16x1xf32>
    %99 = vector.broadcast %98 : vector<16x1xf32> to vector<16x256xf32>
    %100 = arith.mulf %97, %99 : vector<16x256xf32>
    %101 = arith.addf %90, %100 : vector<16x256xf32>
    %cst_27 = arith.constant 0.000000e+00 : f32
    %102 = vector.broadcast %cst_27 : f32 to vector<16x17xf32>
    %103 = vector.extract_strided_slice %34 {offsets = [0, 0], sizes = [16, 239], strides = [1, 1]} : vector<16x256xf32> to vector<16x239xf32>
    %104 = tpu.concatenate %102, %103 in 1 : vector<16x17xf32>, vector<16x239xf32> -> vector<16x256xf32>
    %cst_28 = arith.constant 0.000000e+00 : f32
    %105 = vector.broadcast %cst_28 : f32 to vector<16x256xf32>
    %106 = vector.shape_cast %20 : vector<1x256xi1> to vector<1x256xi1>
    %107 = vector.broadcast %106 : vector<1x256xi1> to vector<16x256xi1>
    %108 = arith.select %107, %104, %105 : vector<16x256xi1>, vector<16x256xf32>
    %109 = vector.extract_strided_slice %36 {offsets = [0, 6], sizes = [16, 1], strides = [1, 1]} : vector<16x25xf32> to vector<16x1xf32>
    %110 = vector.broadcast %109 : vector<16x1xf32> to vector<16x256xf32>
    %111 = arith.mulf %108, %110 : vector<16x256xf32>
    %112 = arith.addf %101, %111 : vector<16x256xf32>
    %cst_29 = arith.constant 0.000000e+00 : f32
    %113 = vector.broadcast %cst_29 : f32 to vector<16x16xf32>
    %114 = vector.extract_strided_slice %34 {offsets = [0, 0], sizes = [16, 240], strides = [1, 1]} : vector<16x256xf32> to vector<16x240xf32>
    %115 = tpu.concatenate %113, %114 in 1 : vector<16x16xf32>, vector<16x240xf32> -> vector<16x256xf32>
    %116 = vector.extract_strided_slice %36 {offsets = [0, 7], sizes = [16, 1], strides = [1, 1]} : vector<16x25xf32> to vector<16x1xf32>
    %117 = vector.broadcast %116 : vector<16x1xf32> to vector<16x256xf32>
    %118 = arith.mulf %115, %117 : vector<16x256xf32>
    %119 = arith.addf %112, %118 : vector<16x256xf32>
    %cst_30 = arith.constant 0.000000e+00 : f32
    %120 = vector.broadcast %cst_30 : f32 to vector<16x15xf32>
    %121 = vector.extract_strided_slice %34 {offsets = [0, 0], sizes = [16, 241], strides = [1, 1]} : vector<16x256xf32> to vector<16x241xf32>
    %122 = tpu.concatenate %120, %121 in 1 : vector<16x15xf32>, vector<16x241xf32> -> vector<16x256xf32>
    %cst_31 = arith.constant 0.000000e+00 : f32
    %123 = vector.broadcast %cst_31 : f32 to vector<16x256xf32>
    %124 = vector.shape_cast %22 : vector<1x256xi1> to vector<1x256xi1>
    %125 = vector.broadcast %124 : vector<1x256xi1> to vector<16x256xi1>
    %126 = arith.select %125, %122, %123 : vector<16x256xi1>, vector<16x256xf32>
    %127 = vector.extract_strided_slice %36 {offsets = [0, 8], sizes = [16, 1], strides = [1, 1]} : vector<16x25xf32> to vector<16x1xf32>
    %128 = vector.broadcast %127 : vector<16x1xf32> to vector<16x256xf32>
    %129 = arith.mulf %126, %128 : vector<16x256xf32>
    %130 = arith.addf %119, %129 : vector<16x256xf32>
    %cst_32 = arith.constant 0.000000e+00 : f32
    %131 = vector.broadcast %cst_32 : f32 to vector<16x14xf32>
    %132 = vector.extract_strided_slice %34 {offsets = [0, 0], sizes = [16, 242], strides = [1, 1]} : vector<16x256xf32> to vector<16x242xf32>
    %133 = tpu.concatenate %131, %132 in 1 : vector<16x14xf32>, vector<16x242xf32> -> vector<16x256xf32>
    %cst_33 = arith.constant 0.000000e+00 : f32
    %134 = vector.broadcast %cst_33 : f32 to vector<16x256xf32>
    %135 = vector.shape_cast %24 : vector<1x256xi1> to vector<1x256xi1>
    %136 = vector.broadcast %135 : vector<1x256xi1> to vector<16x256xi1>
    %137 = arith.select %136, %133, %134 : vector<16x256xi1>, vector<16x256xf32>
    %138 = vector.extract_strided_slice %36 {offsets = [0, 9], sizes = [16, 1], strides = [1, 1]} : vector<16x25xf32> to vector<16x1xf32>
    %139 = vector.broadcast %138 : vector<16x1xf32> to vector<16x256xf32>
    %140 = arith.mulf %137, %139 : vector<16x256xf32>
    %141 = arith.addf %130, %140 : vector<16x256xf32>
    %cst_34 = arith.constant 0.000000e+00 : f32
    %142 = vector.broadcast %cst_34 : f32 to vector<16x2xf32>
    %143 = vector.extract_strided_slice %34 {offsets = [0, 0], sizes = [16, 254], strides = [1, 1]} : vector<16x256xf32> to vector<16x254xf32>
    %144 = tpu.concatenate %142, %143 in 1 : vector<16x2xf32>, vector<16x254xf32> -> vector<16x256xf32>
    %cst_35 = arith.constant 0.000000e+00 : f32
    %145 = vector.broadcast %cst_35 : f32 to vector<16x256xf32>
    %146 = vector.shape_cast %18 : vector<1x256xi1> to vector<1x256xi1>
    %147 = vector.broadcast %146 : vector<1x256xi1> to vector<16x256xi1>
    %148 = arith.select %147, %144, %145 : vector<16x256xi1>, vector<16x256xf32>
    %149 = vector.extract_strided_slice %36 {offsets = [0, 10], sizes = [16, 1], strides = [1, 1]} : vector<16x25xf32> to vector<16x1xf32>
    %150 = vector.broadcast %149 : vector<16x1xf32> to vector<16x256xf32>
    %151 = arith.mulf %148, %150 : vector<16x256xf32>
    %152 = arith.addf %141, %151 : vector<16x256xf32>
    %cst_36 = arith.constant 0.000000e+00 : f32
    %153 = vector.broadcast %cst_36 : f32 to vector<16x1xf32>
    %154 = vector.extract_strided_slice %34 {offsets = [0, 0], sizes = [16, 255], strides = [1, 1]} : vector<16x256xf32> to vector<16x255xf32>
    %155 = tpu.concatenate %153, %154 in 1 : vector<16x1xf32>, vector<16x255xf32> -> vector<16x256xf32>
    %cst_37 = arith.constant 0.000000e+00 : f32
    %156 = vector.broadcast %cst_37 : f32 to vector<16x256xf32>
    %157 = vector.shape_cast %20 : vector<1x256xi1> to vector<1x256xi1>
    %158 = vector.broadcast %157 : vector<1x256xi1> to vector<16x256xi1>
    %159 = arith.select %158, %155, %156 : vector<16x256xi1>, vector<16x256xf32>
    %160 = vector.extract_strided_slice %36 {offsets = [0, 11], sizes = [16, 1], strides = [1, 1]} : vector<16x25xf32> to vector<16x1xf32>
    %161 = vector.broadcast %160 : vector<16x1xf32> to vector<16x256xf32>
    %162 = arith.mulf %159, %161 : vector<16x256xf32>
    %163 = arith.addf %152, %162 : vector<16x256xf32>
    %164 = vector.extract_strided_slice %36 {offsets = [0, 12], sizes = [16, 1], strides = [1, 1]} : vector<16x25xf32> to vector<16x1xf32>
    %165 = vector.broadcast %164 : vector<16x1xf32> to vector<16x256xf32>
    %166 = arith.mulf %34, %165 : vector<16x256xf32>
    %167 = arith.addf %163, %166 : vector<16x256xf32>
    %168 = vector.extract_strided_slice %34 {offsets = [0, 1], sizes = [16, 255], strides = [1, 1]} : vector<16x256xf32> to vector<16x255xf32>
    %cst_38 = arith.constant 0.000000e+00 : f32
    %169 = vector.broadcast %cst_38 : f32 to vector<16x1xf32>
    %170 = tpu.concatenate %168, %169 in 1 : vector<16x255xf32>, vector<16x1xf32> -> vector<16x256xf32>
    %cst_39 = arith.constant 0.000000e+00 : f32
    %171 = vector.broadcast %cst_39 : f32 to vector<16x256xf32>
    %172 = vector.shape_cast %22 : vector<1x256xi1> to vector<1x256xi1>
    %173 = vector.broadcast %172 : vector<1x256xi1> to vector<16x256xi1>
    %174 = arith.select %173, %170, %171 : vector<16x256xi1>, vector<16x256xf32>
    %175 = vector.extract_strided_slice %36 {offsets = [0, 13], sizes = [16, 1], strides = [1, 1]} : vector<16x25xf32> to vector<16x1xf32>
    %176 = vector.broadcast %175 : vector<16x1xf32> to vector<16x256xf32>
    %177 = arith.mulf %174, %176 : vector<16x256xf32>
    %178 = arith.addf %167, %177 : vector<16x256xf32>
    %179 = vector.extract_strided_slice %34 {offsets = [0, 2], sizes = [16, 254], strides = [1, 1]} : vector<16x256xf32> to vector<16x254xf32>
    %cst_40 = arith.constant 0.000000e+00 : f32
    %180 = vector.broadcast %cst_40 : f32 to vector<16x2xf32>
    %181 = tpu.concatenate %179, %180 in 1 : vector<16x254xf32>, vector<16x2xf32> -> vector<16x256xf32>
    %cst_41 = arith.constant 0.000000e+00 : f32
    %182 = vector.broadcast %cst_41 : f32 to vector<16x256xf32>
    %183 = vector.shape_cast %24 : vector<1x256xi1> to vector<1x256xi1>
    %184 = vector.broadcast %183 : vector<1x256xi1> to vector<16x256xi1>
    %185 = arith.select %184, %181, %182 : vector<16x256xi1>, vector<16x256xf32>
    %186 = vector.extract_strided_slice %36 {offsets = [0, 14], sizes = [16, 1], strides = [1, 1]} : vector<16x25xf32> to vector<16x1xf32>
    %187 = vector.broadcast %186 : vector<16x1xf32> to vector<16x256xf32>
    %188 = arith.mulf %185, %187 : vector<16x256xf32>
    %189 = arith.addf %178, %188 : vector<16x256xf32>
    %190 = vector.extract_strided_slice %34 {offsets = [0, 14], sizes = [16, 242], strides = [1, 1]} : vector<16x256xf32> to vector<16x242xf32>
    %cst_42 = arith.constant 0.000000e+00 : f32
    %191 = vector.broadcast %cst_42 : f32 to vector<16x14xf32>
    %192 = tpu.concatenate %190, %191 in 1 : vector<16x242xf32>, vector<16x14xf32> -> vector<16x256xf32>
    %cst_43 = arith.constant 0.000000e+00 : f32
    %193 = vector.broadcast %cst_43 : f32 to vector<16x256xf32>
    %194 = vector.shape_cast %18 : vector<1x256xi1> to vector<1x256xi1>
    %195 = vector.broadcast %194 : vector<1x256xi1> to vector<16x256xi1>
    %196 = arith.select %195, %192, %193 : vector<16x256xi1>, vector<16x256xf32>
    %197 = vector.extract_strided_slice %36 {offsets = [0, 15], sizes = [16, 1], strides = [1, 1]} : vector<16x25xf32> to vector<16x1xf32>
    %198 = vector.broadcast %197 : vector<16x1xf32> to vector<16x256xf32>
    %199 = arith.mulf %196, %198 : vector<16x256xf32>
    %200 = arith.addf %189, %199 : vector<16x256xf32>
    %201 = vector.extract_strided_slice %34 {offsets = [0, 15], sizes = [16, 241], strides = [1, 1]} : vector<16x256xf32> to vector<16x241xf32>
    %cst_44 = arith.constant 0.000000e+00 : f32
    %202 = vector.broadcast %cst_44 : f32 to vector<16x15xf32>
    %203 = tpu.concatenate %201, %202 in 1 : vector<16x241xf32>, vector<16x15xf32> -> vector<16x256xf32>
    %cst_45 = arith.constant 0.000000e+00 : f32
    %204 = vector.broadcast %cst_45 : f32 to vector<16x256xf32>
    %205 = vector.shape_cast %20 : vector<1x256xi1> to vector<1x256xi1>
    %206 = vector.broadcast %205 : vector<1x256xi1> to vector<16x256xi1>
    %207 = arith.select %206, %203, %204 : vector<16x256xi1>, vector<16x256xf32>
    %208 = vector.extract_strided_slice %36 {offsets = [0, 16], sizes = [16, 1], strides = [1, 1]} : vector<16x25xf32> to vector<16x1xf32>
    %209 = vector.broadcast %208 : vector<16x1xf32> to vector<16x256xf32>
    %210 = arith.mulf %207, %209 : vector<16x256xf32>
    %211 = arith.addf %200, %210 : vector<16x256xf32>
    %212 = vector.extract_strided_slice %34 {offsets = [0, 16], sizes = [16, 240], strides = [1, 1]} : vector<16x256xf32> to vector<16x240xf32>
    %cst_46 = arith.constant 0.000000e+00 : f32
    %213 = vector.broadcast %cst_46 : f32 to vector<16x16xf32>
    %214 = tpu.concatenate %212, %213 in 1 : vector<16x240xf32>, vector<16x16xf32> -> vector<16x256xf32>
    %215 = vector.extract_strided_slice %36 {offsets = [0, 17], sizes = [16, 1], strides = [1, 1]} : vector<16x25xf32> to vector<16x1xf32>
    %216 = vector.broadcast %215 : vector<16x1xf32> to vector<16x256xf32>
    %217 = arith.mulf %214, %216 : vector<16x256xf32>
    %218 = arith.addf %211, %217 : vector<16x256xf32>
    %219 = vector.extract_strided_slice %34 {offsets = [0, 17], sizes = [16, 239], strides = [1, 1]} : vector<16x256xf32> to vector<16x239xf32>
    %cst_47 = arith.constant 0.000000e+00 : f32
    %220 = vector.broadcast %cst_47 : f32 to vector<16x17xf32>
    %221 = tpu.concatenate %219, %220 in 1 : vector<16x239xf32>, vector<16x17xf32> -> vector<16x256xf32>
    %cst_48 = arith.constant 0.000000e+00 : f32
    %222 = vector.broadcast %cst_48 : f32 to vector<16x256xf32>
    %223 = vector.shape_cast %22 : vector<1x256xi1> to vector<1x256xi1>
    %224 = vector.broadcast %223 : vector<1x256xi1> to vector<16x256xi1>
    %225 = arith.select %224, %221, %222 : vector<16x256xi1>, vector<16x256xf32>
    %226 = vector.extract_strided_slice %36 {offsets = [0, 18], sizes = [16, 1], strides = [1, 1]} : vector<16x25xf32> to vector<16x1xf32>
    %227 = vector.broadcast %226 : vector<16x1xf32> to vector<16x256xf32>
    %228 = arith.mulf %225, %227 : vector<16x256xf32>
    %229 = arith.addf %218, %228 : vector<16x256xf32>
    %230 = vector.extract_strided_slice %34 {offsets = [0, 18], sizes = [16, 238], strides = [1, 1]} : vector<16x256xf32> to vector<16x238xf32>
    %cst_49 = arith.constant 0.000000e+00 : f32
    %231 = vector.broadcast %cst_49 : f32 to vector<16x18xf32>
    %232 = tpu.concatenate %230, %231 in 1 : vector<16x238xf32>, vector<16x18xf32> -> vector<16x256xf32>
    %cst_50 = arith.constant 0.000000e+00 : f32
    %233 = vector.broadcast %cst_50 : f32 to vector<16x256xf32>
    %234 = vector.shape_cast %24 : vector<1x256xi1> to vector<1x256xi1>
    %235 = vector.broadcast %234 : vector<1x256xi1> to vector<16x256xi1>
    %236 = arith.select %235, %232, %233 : vector<16x256xi1>, vector<16x256xf32>
    %237 = vector.extract_strided_slice %36 {offsets = [0, 19], sizes = [16, 1], strides = [1, 1]} : vector<16x25xf32> to vector<16x1xf32>
    %238 = vector.broadcast %237 : vector<16x1xf32> to vector<16x256xf32>
    %239 = arith.mulf %236, %238 : vector<16x256xf32>
    %240 = arith.addf %229, %239 : vector<16x256xf32>
    %241 = vector.extract_strided_slice %34 {offsets = [0, 30], sizes = [16, 226], strides = [1, 1]} : vector<16x256xf32> to vector<16x226xf32>
    %cst_51 = arith.constant 0.000000e+00 : f32
    %242 = vector.broadcast %cst_51 : f32 to vector<16x30xf32>
    %243 = tpu.concatenate %241, %242 in 1 : vector<16x226xf32>, vector<16x30xf32> -> vector<16x256xf32>
    %cst_52 = arith.constant 0.000000e+00 : f32
    %244 = vector.broadcast %cst_52 : f32 to vector<16x256xf32>
    %245 = vector.shape_cast %18 : vector<1x256xi1> to vector<1x256xi1>
    %246 = vector.broadcast %245 : vector<1x256xi1> to vector<16x256xi1>
    %247 = arith.select %246, %243, %244 : vector<16x256xi1>, vector<16x256xf32>
    %248 = vector.extract_strided_slice %36 {offsets = [0, 20], sizes = [16, 1], strides = [1, 1]} : vector<16x25xf32> to vector<16x1xf32>
    %249 = vector.broadcast %248 : vector<16x1xf32> to vector<16x256xf32>
    %250 = arith.mulf %247, %249 : vector<16x256xf32>
    %251 = arith.addf %240, %250 : vector<16x256xf32>
    %252 = vector.extract_strided_slice %34 {offsets = [0, 31], sizes = [16, 225], strides = [1, 1]} : vector<16x256xf32> to vector<16x225xf32>
    %cst_53 = arith.constant 0.000000e+00 : f32
    %253 = vector.broadcast %cst_53 : f32 to vector<16x31xf32>
    %254 = tpu.concatenate %252, %253 in 1 : vector<16x225xf32>, vector<16x31xf32> -> vector<16x256xf32>
    %cst_54 = arith.constant 0.000000e+00 : f32
    %255 = vector.broadcast %cst_54 : f32 to vector<16x256xf32>
    %256 = vector.shape_cast %20 : vector<1x256xi1> to vector<1x256xi1>
    %257 = vector.broadcast %256 : vector<1x256xi1> to vector<16x256xi1>
    %258 = arith.select %257, %254, %255 : vector<16x256xi1>, vector<16x256xf32>
    %259 = vector.extract_strided_slice %36 {offsets = [0, 21], sizes = [16, 1], strides = [1, 1]} : vector<16x25xf32> to vector<16x1xf32>
    %260 = vector.broadcast %259 : vector<16x1xf32> to vector<16x256xf32>
    %261 = arith.mulf %258, %260 : vector<16x256xf32>
    %262 = arith.addf %251, %261 : vector<16x256xf32>
    %263 = vector.extract_strided_slice %34 {offsets = [0, 32], sizes = [16, 224], strides = [1, 1]} : vector<16x256xf32> to vector<16x224xf32>
    %cst_55 = arith.constant 0.000000e+00 : f32
    %264 = vector.broadcast %cst_55 : f32 to vector<16x32xf32>
    %265 = tpu.concatenate %263, %264 in 1 : vector<16x224xf32>, vector<16x32xf32> -> vector<16x256xf32>
    %266 = vector.extract_strided_slice %36 {offsets = [0, 22], sizes = [16, 1], strides = [1, 1]} : vector<16x25xf32> to vector<16x1xf32>
    %267 = vector.broadcast %266 : vector<16x1xf32> to vector<16x256xf32>
    %268 = arith.mulf %265, %267 : vector<16x256xf32>
    %269 = arith.addf %262, %268 : vector<16x256xf32>
    %270 = vector.extract_strided_slice %34 {offsets = [0, 33], sizes = [16, 223], strides = [1, 1]} : vector<16x256xf32> to vector<16x223xf32>
    %cst_56 = arith.constant 0.000000e+00 : f32
    %271 = vector.broadcast %cst_56 : f32 to vector<16x33xf32>
    %272 = tpu.concatenate %270, %271 in 1 : vector<16x223xf32>, vector<16x33xf32> -> vector<16x256xf32>
    %cst_57 = arith.constant 0.000000e+00 : f32
    %273 = vector.broadcast %cst_57 : f32 to vector<16x256xf32>
    %274 = vector.shape_cast %22 : vector<1x256xi1> to vector<1x256xi1>
    %275 = vector.broadcast %274 : vector<1x256xi1> to vector<16x256xi1>
    %276 = arith.select %275, %272, %273 : vector<16x256xi1>, vector<16x256xf32>
    %277 = vector.extract_strided_slice %36 {offsets = [0, 23], sizes = [16, 1], strides = [1, 1]} : vector<16x25xf32> to vector<16x1xf32>
    %278 = vector.broadcast %277 : vector<16x1xf32> to vector<16x256xf32>
    %279 = arith.mulf %276, %278 : vector<16x256xf32>
    %280 = arith.addf %269, %279 : vector<16x256xf32>
    %281 = vector.extract_strided_slice %34 {offsets = [0, 34], sizes = [16, 222], strides = [1, 1]} : vector<16x256xf32> to vector<16x222xf32>
    %cst_58 = arith.constant 0.000000e+00 : f32
    %282 = vector.broadcast %cst_58 : f32 to vector<16x34xf32>
    %283 = tpu.concatenate %281, %282 in 1 : vector<16x222xf32>, vector<16x34xf32> -> vector<16x256xf32>
    %cst_59 = arith.constant 0.000000e+00 : f32
    %284 = vector.broadcast %cst_59 : f32 to vector<16x256xf32>
    %285 = vector.shape_cast %24 : vector<1x256xi1> to vector<1x256xi1>
    %286 = vector.broadcast %285 : vector<1x256xi1> to vector<16x256xi1>
    %287 = arith.select %286, %283, %284 : vector<16x256xi1>, vector<16x256xf32>
    %288 = vector.extract_strided_slice %36 {offsets = [0, 24], sizes = [16, 1], strides = [1, 1]} : vector<16x25xf32> to vector<16x1xf32>
    %289 = vector.broadcast %288 : vector<16x1xf32> to vector<16x256xf32>
    %290 = arith.mulf %287, %289 : vector<16x256xf32>
    %291 = arith.addf %280, %290 : vector<16x256xf32>
    %cst_60 = arith.constant 0.000000e+00 : f32
    %292 = vector.broadcast %cst_60 : f32 to vector<16x256xf32>
    %293 = arith.maximumf %291, %292 : vector<16x256xf32>
    %c1_61 = arith.constant 1 : index
    %c0_62 = arith.constant 0 : index
    %c0_63 = arith.constant 0 : index
    %294 = vector.load %arg4[%c1_61, %c0_62, %c0_63] : memref<2x16x25xf32, #tpu.memory_space<vmem>>, vector<1x16x25xf32>
    %295 = vector.shape_cast %294 : vector<1x16x25xf32> to vector<16x25xf32>
    %c1_64 = arith.constant 1 : index
    %c0_65 = arith.constant 0 : index
    %c0_66 = arith.constant 0 : index
    %296 = vector.load %arg5[%c1_64, %c0_65, %c0_66] : memref<2x16x1xf32, #tpu.memory_space<vmem>>, vector<1x16x1xf32>
    %297 = vector.shape_cast %296 : vector<1x16x1xf32> to vector<16x1xf32>
    %cst_67 = arith.constant 0.000000e+00 : f32
    %298 = vector.broadcast %cst_67 : f32 to vector<16x34xf32>
    %299 = vector.extract_strided_slice %293 {offsets = [0, 0], sizes = [16, 222], strides = [1, 1]} : vector<16x256xf32> to vector<16x222xf32>
    %300 = tpu.concatenate %298, %299 in 1 : vector<16x34xf32>, vector<16x222xf32> -> vector<16x256xf32>
    %cst_68 = arith.constant 0.000000e+00 : f32
    %301 = vector.broadcast %cst_68 : f32 to vector<16x256xf32>
    %302 = vector.shape_cast %18 : vector<1x256xi1> to vector<1x256xi1>
    %303 = vector.broadcast %302 : vector<1x256xi1> to vector<16x256xi1>
    %304 = arith.select %303, %300, %301 : vector<16x256xi1>, vector<16x256xf32>
    %305 = vector.extract_strided_slice %295 {offsets = [0, 0], sizes = [16, 1], strides = [1, 1]} : vector<16x25xf32> to vector<16x1xf32>
    %306 = vector.broadcast %305 : vector<16x1xf32> to vector<16x256xf32>
    %307 = arith.mulf %304, %306 : vector<16x256xf32>
    %308 = vector.broadcast %297 : vector<16x1xf32> to vector<16x256xf32>
    %309 = arith.addf %308, %307 : vector<16x256xf32>
    %cst_69 = arith.constant 0.000000e+00 : f32
    %310 = vector.broadcast %cst_69 : f32 to vector<16x33xf32>
    %311 = vector.extract_strided_slice %293 {offsets = [0, 0], sizes = [16, 223], strides = [1, 1]} : vector<16x256xf32> to vector<16x223xf32>
    %312 = tpu.concatenate %310, %311 in 1 : vector<16x33xf32>, vector<16x223xf32> -> vector<16x256xf32>
    %cst_70 = arith.constant 0.000000e+00 : f32
    %313 = vector.broadcast %cst_70 : f32 to vector<16x256xf32>
    %314 = vector.shape_cast %20 : vector<1x256xi1> to vector<1x256xi1>
    %315 = vector.broadcast %314 : vector<1x256xi1> to vector<16x256xi1>
    %316 = arith.select %315, %312, %313 : vector<16x256xi1>, vector<16x256xf32>
    %317 = vector.extract_strided_slice %295 {offsets = [0, 1], sizes = [16, 1], strides = [1, 1]} : vector<16x25xf32> to vector<16x1xf32>
    %318 = vector.broadcast %317 : vector<16x1xf32> to vector<16x256xf32>
    %319 = arith.mulf %316, %318 : vector<16x256xf32>
    %320 = arith.addf %309, %319 : vector<16x256xf32>
    %cst_71 = arith.constant 0.000000e+00 : f32
    %321 = vector.broadcast %cst_71 : f32 to vector<16x32xf32>
    %322 = vector.extract_strided_slice %293 {offsets = [0, 0], sizes = [16, 224], strides = [1, 1]} : vector<16x256xf32> to vector<16x224xf32>
    %323 = tpu.concatenate %321, %322 in 1 : vector<16x32xf32>, vector<16x224xf32> -> vector<16x256xf32>
    %324 = vector.extract_strided_slice %295 {offsets = [0, 2], sizes = [16, 1], strides = [1, 1]} : vector<16x25xf32> to vector<16x1xf32>
    %325 = vector.broadcast %324 : vector<16x1xf32> to vector<16x256xf32>
    %326 = arith.mulf %323, %325 : vector<16x256xf32>
    %327 = arith.addf %320, %326 : vector<16x256xf32>
    %cst_72 = arith.constant 0.000000e+00 : f32
    %328 = vector.broadcast %cst_72 : f32 to vector<16x31xf32>
    %329 = vector.extract_strided_slice %293 {offsets = [0, 0], sizes = [16, 225], strides = [1, 1]} : vector<16x256xf32> to vector<16x225xf32>
    %330 = tpu.concatenate %328, %329 in 1 : vector<16x31xf32>, vector<16x225xf32> -> vector<16x256xf32>
    %cst_73 = arith.constant 0.000000e+00 : f32
    %331 = vector.broadcast %cst_73 : f32 to vector<16x256xf32>
    %332 = vector.shape_cast %22 : vector<1x256xi1> to vector<1x256xi1>
    %333 = vector.broadcast %332 : vector<1x256xi1> to vector<16x256xi1>
    %334 = arith.select %333, %330, %331 : vector<16x256xi1>, vector<16x256xf32>
    %335 = vector.extract_strided_slice %295 {offsets = [0, 3], sizes = [16, 1], strides = [1, 1]} : vector<16x25xf32> to vector<16x1xf32>
    %336 = vector.broadcast %335 : vector<16x1xf32> to vector<16x256xf32>
    %337 = arith.mulf %334, %336 : vector<16x256xf32>
    %338 = arith.addf %327, %337 : vector<16x256xf32>
    %cst_74 = arith.constant 0.000000e+00 : f32
    %339 = vector.broadcast %cst_74 : f32 to vector<16x30xf32>
    %340 = vector.extract_strided_slice %293 {offsets = [0, 0], sizes = [16, 226], strides = [1, 1]} : vector<16x256xf32> to vector<16x226xf32>
    %341 = tpu.concatenate %339, %340 in 1 : vector<16x30xf32>, vector<16x226xf32> -> vector<16x256xf32>
    %cst_75 = arith.constant 0.000000e+00 : f32
    %342 = vector.broadcast %cst_75 : f32 to vector<16x256xf32>
    %343 = vector.shape_cast %24 : vector<1x256xi1> to vector<1x256xi1>
    %344 = vector.broadcast %343 : vector<1x256xi1> to vector<16x256xi1>
    %345 = arith.select %344, %341, %342 : vector<16x256xi1>, vector<16x256xf32>
    %346 = vector.extract_strided_slice %295 {offsets = [0, 4], sizes = [16, 1], strides = [1, 1]} : vector<16x25xf32> to vector<16x1xf32>
    %347 = vector.broadcast %346 : vector<16x1xf32> to vector<16x256xf32>
    %348 = arith.mulf %345, %347 : vector<16x256xf32>
    %349 = arith.addf %338, %348 : vector<16x256xf32>
    %cst_76 = arith.constant 0.000000e+00 : f32
    %350 = vector.broadcast %cst_76 : f32 to vector<16x18xf32>
    %351 = vector.extract_strided_slice %293 {offsets = [0, 0], sizes = [16, 238], strides = [1, 1]} : vector<16x256xf32> to vector<16x238xf32>
    %352 = tpu.concatenate %350, %351 in 1 : vector<16x18xf32>, vector<16x238xf32> -> vector<16x256xf32>
    %cst_77 = arith.constant 0.000000e+00 : f32
    %353 = vector.broadcast %cst_77 : f32 to vector<16x256xf32>
    %354 = vector.shape_cast %18 : vector<1x256xi1> to vector<1x256xi1>
    %355 = vector.broadcast %354 : vector<1x256xi1> to vector<16x256xi1>
    %356 = arith.select %355, %352, %353 : vector<16x256xi1>, vector<16x256xf32>
    %357 = vector.extract_strided_slice %295 {offsets = [0, 5], sizes = [16, 1], strides = [1, 1]} : vector<16x25xf32> to vector<16x1xf32>
    %358 = vector.broadcast %357 : vector<16x1xf32> to vector<16x256xf32>
    %359 = arith.mulf %356, %358 : vector<16x256xf32>
    %360 = arith.addf %349, %359 : vector<16x256xf32>
    %cst_78 = arith.constant 0.000000e+00 : f32
    %361 = vector.broadcast %cst_78 : f32 to vector<16x17xf32>
    %362 = vector.extract_strided_slice %293 {offsets = [0, 0], sizes = [16, 239], strides = [1, 1]} : vector<16x256xf32> to vector<16x239xf32>
    %363 = tpu.concatenate %361, %362 in 1 : vector<16x17xf32>, vector<16x239xf32> -> vector<16x256xf32>
    %cst_79 = arith.constant 0.000000e+00 : f32
    %364 = vector.broadcast %cst_79 : f32 to vector<16x256xf32>
    %365 = vector.shape_cast %20 : vector<1x256xi1> to vector<1x256xi1>
    %366 = vector.broadcast %365 : vector<1x256xi1> to vector<16x256xi1>
    %367 = arith.select %366, %363, %364 : vector<16x256xi1>, vector<16x256xf32>
    %368 = vector.extract_strided_slice %295 {offsets = [0, 6], sizes = [16, 1], strides = [1, 1]} : vector<16x25xf32> to vector<16x1xf32>
    %369 = vector.broadcast %368 : vector<16x1xf32> to vector<16x256xf32>
    %370 = arith.mulf %367, %369 : vector<16x256xf32>
    %371 = arith.addf %360, %370 : vector<16x256xf32>
    %cst_80 = arith.constant 0.000000e+00 : f32
    %372 = vector.broadcast %cst_80 : f32 to vector<16x16xf32>
    %373 = vector.extract_strided_slice %293 {offsets = [0, 0], sizes = [16, 240], strides = [1, 1]} : vector<16x256xf32> to vector<16x240xf32>
    %374 = tpu.concatenate %372, %373 in 1 : vector<16x16xf32>, vector<16x240xf32> -> vector<16x256xf32>
    %375 = vector.extract_strided_slice %295 {offsets = [0, 7], sizes = [16, 1], strides = [1, 1]} : vector<16x25xf32> to vector<16x1xf32>
    %376 = vector.broadcast %375 : vector<16x1xf32> to vector<16x256xf32>
    %377 = arith.mulf %374, %376 : vector<16x256xf32>
    %378 = arith.addf %371, %377 : vector<16x256xf32>
    %cst_81 = arith.constant 0.000000e+00 : f32
    %379 = vector.broadcast %cst_81 : f32 to vector<16x15xf32>
    %380 = vector.extract_strided_slice %293 {offsets = [0, 0], sizes = [16, 241], strides = [1, 1]} : vector<16x256xf32> to vector<16x241xf32>
    %381 = tpu.concatenate %379, %380 in 1 : vector<16x15xf32>, vector<16x241xf32> -> vector<16x256xf32>
    %cst_82 = arith.constant 0.000000e+00 : f32
    %382 = vector.broadcast %cst_82 : f32 to vector<16x256xf32>
    %383 = vector.shape_cast %22 : vector<1x256xi1> to vector<1x256xi1>
    %384 = vector.broadcast %383 : vector<1x256xi1> to vector<16x256xi1>
    %385 = arith.select %384, %381, %382 : vector<16x256xi1>, vector<16x256xf32>
    %386 = vector.extract_strided_slice %295 {offsets = [0, 8], sizes = [16, 1], strides = [1, 1]} : vector<16x25xf32> to vector<16x1xf32>
    %387 = vector.broadcast %386 : vector<16x1xf32> to vector<16x256xf32>
    %388 = arith.mulf %385, %387 : vector<16x256xf32>
    %389 = arith.addf %378, %388 : vector<16x256xf32>
    %cst_83 = arith.constant 0.000000e+00 : f32
    %390 = vector.broadcast %cst_83 : f32 to vector<16x14xf32>
    %391 = vector.extract_strided_slice %293 {offsets = [0, 0], sizes = [16, 242], strides = [1, 1]} : vector<16x256xf32> to vector<16x242xf32>
    %392 = tpu.concatenate %390, %391 in 1 : vector<16x14xf32>, vector<16x242xf32> -> vector<16x256xf32>
    %cst_84 = arith.constant 0.000000e+00 : f32
    %393 = vector.broadcast %cst_84 : f32 to vector<16x256xf32>
    %394 = vector.shape_cast %24 : vector<1x256xi1> to vector<1x256xi1>
    %395 = vector.broadcast %394 : vector<1x256xi1> to vector<16x256xi1>
    %396 = arith.select %395, %392, %393 : vector<16x256xi1>, vector<16x256xf32>
    %397 = vector.extract_strided_slice %295 {offsets = [0, 9], sizes = [16, 1], strides = [1, 1]} : vector<16x25xf32> to vector<16x1xf32>
    %398 = vector.broadcast %397 : vector<16x1xf32> to vector<16x256xf32>
    %399 = arith.mulf %396, %398 : vector<16x256xf32>
    %400 = arith.addf %389, %399 : vector<16x256xf32>
    %cst_85 = arith.constant 0.000000e+00 : f32
    %401 = vector.broadcast %cst_85 : f32 to vector<16x2xf32>
    %402 = vector.extract_strided_slice %293 {offsets = [0, 0], sizes = [16, 254], strides = [1, 1]} : vector<16x256xf32> to vector<16x254xf32>
    %403 = tpu.concatenate %401, %402 in 1 : vector<16x2xf32>, vector<16x254xf32> -> vector<16x256xf32>
    %cst_86 = arith.constant 0.000000e+00 : f32
    %404 = vector.broadcast %cst_86 : f32 to vector<16x256xf32>
    %405 = vector.shape_cast %18 : vector<1x256xi1> to vector<1x256xi1>
    %406 = vector.broadcast %405 : vector<1x256xi1> to vector<16x256xi1>
    %407 = arith.select %406, %403, %404 : vector<16x256xi1>, vector<16x256xf32>
    %408 = vector.extract_strided_slice %295 {offsets = [0, 10], sizes = [16, 1], strides = [1, 1]} : vector<16x25xf32> to vector<16x1xf32>
    %409 = vector.broadcast %408 : vector<16x1xf32> to vector<16x256xf32>
    %410 = arith.mulf %407, %409 : vector<16x256xf32>
    %411 = arith.addf %400, %410 : vector<16x256xf32>
    %cst_87 = arith.constant 0.000000e+00 : f32
    %412 = vector.broadcast %cst_87 : f32 to vector<16x1xf32>
    %413 = vector.extract_strided_slice %293 {offsets = [0, 0], sizes = [16, 255], strides = [1, 1]} : vector<16x256xf32> to vector<16x255xf32>
    %414 = tpu.concatenate %412, %413 in 1 : vector<16x1xf32>, vector<16x255xf32> -> vector<16x256xf32>
    %cst_88 = arith.constant 0.000000e+00 : f32
    %415 = vector.broadcast %cst_88 : f32 to vector<16x256xf32>
    %416 = vector.shape_cast %20 : vector<1x256xi1> to vector<1x256xi1>
    %417 = vector.broadcast %416 : vector<1x256xi1> to vector<16x256xi1>
    %418 = arith.select %417, %414, %415 : vector<16x256xi1>, vector<16x256xf32>
    %419 = vector.extract_strided_slice %295 {offsets = [0, 11], sizes = [16, 1], strides = [1, 1]} : vector<16x25xf32> to vector<16x1xf32>
    %420 = vector.broadcast %419 : vector<16x1xf32> to vector<16x256xf32>
    %421 = arith.mulf %418, %420 : vector<16x256xf32>
    %422 = arith.addf %411, %421 : vector<16x256xf32>
    %423 = vector.extract_strided_slice %295 {offsets = [0, 12], sizes = [16, 1], strides = [1, 1]} : vector<16x25xf32> to vector<16x1xf32>
    %424 = vector.broadcast %423 : vector<16x1xf32> to vector<16x256xf32>
    %425 = arith.mulf %293, %424 : vector<16x256xf32>
    %426 = arith.addf %422, %425 : vector<16x256xf32>
    %427 = vector.extract_strided_slice %293 {offsets = [0, 1], sizes = [16, 255], strides = [1, 1]} : vector<16x256xf32> to vector<16x255xf32>
    %cst_89 = arith.constant 0.000000e+00 : f32
    %428 = vector.broadcast %cst_89 : f32 to vector<16x1xf32>
    %429 = tpu.concatenate %427, %428 in 1 : vector<16x255xf32>, vector<16x1xf32> -> vector<16x256xf32>
    %cst_90 = arith.constant 0.000000e+00 : f32
    %430 = vector.broadcast %cst_90 : f32 to vector<16x256xf32>
    %431 = vector.shape_cast %22 : vector<1x256xi1> to vector<1x256xi1>
    %432 = vector.broadcast %431 : vector<1x256xi1> to vector<16x256xi1>
    %433 = arith.select %432, %429, %430 : vector<16x256xi1>, vector<16x256xf32>
    %434 = vector.extract_strided_slice %295 {offsets = [0, 13], sizes = [16, 1], strides = [1, 1]} : vector<16x25xf32> to vector<16x1xf32>
    %435 = vector.broadcast %434 : vector<16x1xf32> to vector<16x256xf32>
    %436 = arith.mulf %433, %435 : vector<16x256xf32>
    %437 = arith.addf %426, %436 : vector<16x256xf32>
    %438 = vector.extract_strided_slice %293 {offsets = [0, 2], sizes = [16, 254], strides = [1, 1]} : vector<16x256xf32> to vector<16x254xf32>
    %cst_91 = arith.constant 0.000000e+00 : f32
    %439 = vector.broadcast %cst_91 : f32 to vector<16x2xf32>
    %440 = tpu.concatenate %438, %439 in 1 : vector<16x254xf32>, vector<16x2xf32> -> vector<16x256xf32>
    %cst_92 = arith.constant 0.000000e+00 : f32
    %441 = vector.broadcast %cst_92 : f32 to vector<16x256xf32>
    %442 = vector.shape_cast %24 : vector<1x256xi1> to vector<1x256xi1>
    %443 = vector.broadcast %442 : vector<1x256xi1> to vector<16x256xi1>
    %444 = arith.select %443, %440, %441 : vector<16x256xi1>, vector<16x256xf32>
    %445 = vector.extract_strided_slice %295 {offsets = [0, 14], sizes = [16, 1], strides = [1, 1]} : vector<16x25xf32> to vector<16x1xf32>
    %446 = vector.broadcast %445 : vector<16x1xf32> to vector<16x256xf32>
    %447 = arith.mulf %444, %446 : vector<16x256xf32>
    %448 = arith.addf %437, %447 : vector<16x256xf32>
    %449 = vector.extract_strided_slice %293 {offsets = [0, 14], sizes = [16, 242], strides = [1, 1]} : vector<16x256xf32> to vector<16x242xf32>
    %cst_93 = arith.constant 0.000000e+00 : f32
    %450 = vector.broadcast %cst_93 : f32 to vector<16x14xf32>
    %451 = tpu.concatenate %449, %450 in 1 : vector<16x242xf32>, vector<16x14xf32> -> vector<16x256xf32>
    %cst_94 = arith.constant 0.000000e+00 : f32
    %452 = vector.broadcast %cst_94 : f32 to vector<16x256xf32>
    %453 = vector.shape_cast %18 : vector<1x256xi1> to vector<1x256xi1>
    %454 = vector.broadcast %453 : vector<1x256xi1> to vector<16x256xi1>
    %455 = arith.select %454, %451, %452 : vector<16x256xi1>, vector<16x256xf32>
    %456 = vector.extract_strided_slice %295 {offsets = [0, 15], sizes = [16, 1], strides = [1, 1]} : vector<16x25xf32> to vector<16x1xf32>
    %457 = vector.broadcast %456 : vector<16x1xf32> to vector<16x256xf32>
    %458 = arith.mulf %455, %457 : vector<16x256xf32>
    %459 = arith.addf %448, %458 : vector<16x256xf32>
    %460 = vector.extract_strided_slice %293 {offsets = [0, 15], sizes = [16, 241], strides = [1, 1]} : vector<16x256xf32> to vector<16x241xf32>
    %cst_95 = arith.constant 0.000000e+00 : f32
    %461 = vector.broadcast %cst_95 : f32 to vector<16x15xf32>
    %462 = tpu.concatenate %460, %461 in 1 : vector<16x241xf32>, vector<16x15xf32> -> vector<16x256xf32>
    %cst_96 = arith.constant 0.000000e+00 : f32
    %463 = vector.broadcast %cst_96 : f32 to vector<16x256xf32>
    %464 = vector.shape_cast %20 : vector<1x256xi1> to vector<1x256xi1>
    %465 = vector.broadcast %464 : vector<1x256xi1> to vector<16x256xi1>
    %466 = arith.select %465, %462, %463 : vector<16x256xi1>, vector<16x256xf32>
    %467 = vector.extract_strided_slice %295 {offsets = [0, 16], sizes = [16, 1], strides = [1, 1]} : vector<16x25xf32> to vector<16x1xf32>
    %468 = vector.broadcast %467 : vector<16x1xf32> to vector<16x256xf32>
    %469 = arith.mulf %466, %468 : vector<16x256xf32>
    %470 = arith.addf %459, %469 : vector<16x256xf32>
    %471 = vector.extract_strided_slice %293 {offsets = [0, 16], sizes = [16, 240], strides = [1, 1]} : vector<16x256xf32> to vector<16x240xf32>
    %cst_97 = arith.constant 0.000000e+00 : f32
    %472 = vector.broadcast %cst_97 : f32 to vector<16x16xf32>
    %473 = tpu.concatenate %471, %472 in 1 : vector<16x240xf32>, vector<16x16xf32> -> vector<16x256xf32>
    %474 = vector.extract_strided_slice %295 {offsets = [0, 17], sizes = [16, 1], strides = [1, 1]} : vector<16x25xf32> to vector<16x1xf32>
    %475 = vector.broadcast %474 : vector<16x1xf32> to vector<16x256xf32>
    %476 = arith.mulf %473, %475 : vector<16x256xf32>
    %477 = arith.addf %470, %476 : vector<16x256xf32>
    %478 = vector.extract_strided_slice %293 {offsets = [0, 17], sizes = [16, 239], strides = [1, 1]} : vector<16x256xf32> to vector<16x239xf32>
    %cst_98 = arith.constant 0.000000e+00 : f32
    %479 = vector.broadcast %cst_98 : f32 to vector<16x17xf32>
    %480 = tpu.concatenate %478, %479 in 1 : vector<16x239xf32>, vector<16x17xf32> -> vector<16x256xf32>
    %cst_99 = arith.constant 0.000000e+00 : f32
    %481 = vector.broadcast %cst_99 : f32 to vector<16x256xf32>
    %482 = vector.shape_cast %22 : vector<1x256xi1> to vector<1x256xi1>
    %483 = vector.broadcast %482 : vector<1x256xi1> to vector<16x256xi1>
    %484 = arith.select %483, %480, %481 : vector<16x256xi1>, vector<16x256xf32>
    %485 = vector.extract_strided_slice %295 {offsets = [0, 18], sizes = [16, 1], strides = [1, 1]} : vector<16x25xf32> to vector<16x1xf32>
    %486 = vector.broadcast %485 : vector<16x1xf32> to vector<16x256xf32>
    %487 = arith.mulf %484, %486 : vector<16x256xf32>
    %488 = arith.addf %477, %487 : vector<16x256xf32>
    %489 = vector.extract_strided_slice %293 {offsets = [0, 18], sizes = [16, 238], strides = [1, 1]} : vector<16x256xf32> to vector<16x238xf32>
    %cst_100 = arith.constant 0.000000e+00 : f32
    %490 = vector.broadcast %cst_100 : f32 to vector<16x18xf32>
    %491 = tpu.concatenate %489, %490 in 1 : vector<16x238xf32>, vector<16x18xf32> -> vector<16x256xf32>
    %cst_101 = arith.constant 0.000000e+00 : f32
    %492 = vector.broadcast %cst_101 : f32 to vector<16x256xf32>
    %493 = vector.shape_cast %24 : vector<1x256xi1> to vector<1x256xi1>
    %494 = vector.broadcast %493 : vector<1x256xi1> to vector<16x256xi1>
    %495 = arith.select %494, %491, %492 : vector<16x256xi1>, vector<16x256xf32>
    %496 = vector.extract_strided_slice %295 {offsets = [0, 19], sizes = [16, 1], strides = [1, 1]} : vector<16x25xf32> to vector<16x1xf32>
    %497 = vector.broadcast %496 : vector<16x1xf32> to vector<16x256xf32>
    %498 = arith.mulf %495, %497 : vector<16x256xf32>
    %499 = arith.addf %488, %498 : vector<16x256xf32>
    %500 = vector.extract_strided_slice %293 {offsets = [0, 30], sizes = [16, 226], strides = [1, 1]} : vector<16x256xf32> to vector<16x226xf32>
    %cst_102 = arith.constant 0.000000e+00 : f32
    %501 = vector.broadcast %cst_102 : f32 to vector<16x30xf32>
    %502 = tpu.concatenate %500, %501 in 1 : vector<16x226xf32>, vector<16x30xf32> -> vector<16x256xf32>
    %cst_103 = arith.constant 0.000000e+00 : f32
    %503 = vector.broadcast %cst_103 : f32 to vector<16x256xf32>
    %504 = vector.shape_cast %18 : vector<1x256xi1> to vector<1x256xi1>
    %505 = vector.broadcast %504 : vector<1x256xi1> to vector<16x256xi1>
    %506 = arith.select %505, %502, %503 : vector<16x256xi1>, vector<16x256xf32>
    %507 = vector.extract_strided_slice %295 {offsets = [0, 20], sizes = [16, 1], strides = [1, 1]} : vector<16x25xf32> to vector<16x1xf32>
    %508 = vector.broadcast %507 : vector<16x1xf32> to vector<16x256xf32>
    %509 = arith.mulf %506, %508 : vector<16x256xf32>
    %510 = arith.addf %499, %509 : vector<16x256xf32>
    %511 = vector.extract_strided_slice %293 {offsets = [0, 31], sizes = [16, 225], strides = [1, 1]} : vector<16x256xf32> to vector<16x225xf32>
    %cst_104 = arith.constant 0.000000e+00 : f32
    %512 = vector.broadcast %cst_104 : f32 to vector<16x31xf32>
    %513 = tpu.concatenate %511, %512 in 1 : vector<16x225xf32>, vector<16x31xf32> -> vector<16x256xf32>
    %cst_105 = arith.constant 0.000000e+00 : f32
    %514 = vector.broadcast %cst_105 : f32 to vector<16x256xf32>
    %515 = vector.shape_cast %20 : vector<1x256xi1> to vector<1x256xi1>
    %516 = vector.broadcast %515 : vector<1x256xi1> to vector<16x256xi1>
    %517 = arith.select %516, %513, %514 : vector<16x256xi1>, vector<16x256xf32>
    %518 = vector.extract_strided_slice %295 {offsets = [0, 21], sizes = [16, 1], strides = [1, 1]} : vector<16x25xf32> to vector<16x1xf32>
    %519 = vector.broadcast %518 : vector<16x1xf32> to vector<16x256xf32>
    %520 = arith.mulf %517, %519 : vector<16x256xf32>
    %521 = arith.addf %510, %520 : vector<16x256xf32>
    %522 = vector.extract_strided_slice %293 {offsets = [0, 32], sizes = [16, 224], strides = [1, 1]} : vector<16x256xf32> to vector<16x224xf32>
    %cst_106 = arith.constant 0.000000e+00 : f32
    %523 = vector.broadcast %cst_106 : f32 to vector<16x32xf32>
    %524 = tpu.concatenate %522, %523 in 1 : vector<16x224xf32>, vector<16x32xf32> -> vector<16x256xf32>
    %525 = vector.extract_strided_slice %295 {offsets = [0, 22], sizes = [16, 1], strides = [1, 1]} : vector<16x25xf32> to vector<16x1xf32>
    %526 = vector.broadcast %525 : vector<16x1xf32> to vector<16x256xf32>
    %527 = arith.mulf %524, %526 : vector<16x256xf32>
    %528 = arith.addf %521, %527 : vector<16x256xf32>
    %529 = vector.extract_strided_slice %293 {offsets = [0, 33], sizes = [16, 223], strides = [1, 1]} : vector<16x256xf32> to vector<16x223xf32>
    %cst_107 = arith.constant 0.000000e+00 : f32
    %530 = vector.broadcast %cst_107 : f32 to vector<16x33xf32>
    %531 = tpu.concatenate %529, %530 in 1 : vector<16x223xf32>, vector<16x33xf32> -> vector<16x256xf32>
    %cst_108 = arith.constant 0.000000e+00 : f32
    %532 = vector.broadcast %cst_108 : f32 to vector<16x256xf32>
    %533 = vector.shape_cast %22 : vector<1x256xi1> to vector<1x256xi1>
    %534 = vector.broadcast %533 : vector<1x256xi1> to vector<16x256xi1>
    %535 = arith.select %534, %531, %532 : vector<16x256xi1>, vector<16x256xf32>
    %536 = vector.extract_strided_slice %295 {offsets = [0, 23], sizes = [16, 1], strides = [1, 1]} : vector<16x25xf32> to vector<16x1xf32>
    %537 = vector.broadcast %536 : vector<16x1xf32> to vector<16x256xf32>
    %538 = arith.mulf %535, %537 : vector<16x256xf32>
    %539 = arith.addf %528, %538 : vector<16x256xf32>
    %540 = vector.extract_strided_slice %293 {offsets = [0, 34], sizes = [16, 222], strides = [1, 1]} : vector<16x256xf32> to vector<16x222xf32>
    %cst_109 = arith.constant 0.000000e+00 : f32
    %541 = vector.broadcast %cst_109 : f32 to vector<16x34xf32>
    %542 = tpu.concatenate %540, %541 in 1 : vector<16x222xf32>, vector<16x34xf32> -> vector<16x256xf32>
    %cst_110 = arith.constant 0.000000e+00 : f32
    %543 = vector.broadcast %cst_110 : f32 to vector<16x256xf32>
    %544 = vector.shape_cast %24 : vector<1x256xi1> to vector<1x256xi1>
    %545 = vector.broadcast %544 : vector<1x256xi1> to vector<16x256xi1>
    %546 = arith.select %545, %542, %543 : vector<16x256xi1>, vector<16x256xf32>
    %547 = vector.extract_strided_slice %295 {offsets = [0, 24], sizes = [16, 1], strides = [1, 1]} : vector<16x25xf32> to vector<16x1xf32>
    %548 = vector.broadcast %547 : vector<16x1xf32> to vector<16x256xf32>
    %549 = arith.mulf %546, %548 : vector<16x256xf32>
    %550 = arith.addf %539, %549 : vector<16x256xf32>
    %c0_111 = arith.constant 0 : index
    %c0_112 = arith.constant 0 : index
    %551 = vector.load %arg6[%c0_111, %c0_112] : memref<1x256xf32, #tpu.memory_space<vmem>>, vector<1x256xf32>
    %552 = vector.broadcast %551 : vector<1x256xf32> to vector<16x256xf32>
    %553 = arith.mulf %550, %552 : vector<16x256xf32>
    %554 = arith.addf %34, %553 : vector<16x256xf32>
    %c0_113 = arith.constant 0 : index
    %c0_114 = arith.constant 0 : index
    %c0_115 = arith.constant 0 : index
    %555 = vector.load %arg2[%c0_113, %c0_114, %c0_115] : memref<1x16x256xf32, #tpu.memory_space<vmem>>, vector<1x16x256xf32>
    %556 = vector.shape_cast %555 : vector<1x16x256xf32> to vector<16x256xf32>
    %557 = arith.addf %554, %556 : vector<16x256xf32>
    %cst_116 = arith.constant 0.000000e+00 : f32
    %558 = vector.broadcast %cst_116 : f32 to vector<16x256xf32>
    %559 = arith.maximumf %557, %558 : vector<16x256xf32>
    %c0_117 = arith.constant 0 : index
    %c0_118 = arith.constant 0 : index
    %c0_119 = arith.constant 0 : index
    %560 = vector.load %arg7[%c0_117, %c0_118, %c0_119] : memref<1x16x256xf32, #tpu.memory_space<vmem>>, vector<1x16x256xf32>
    %561 = vector.shape_cast %560 : vector<1x16x256xf32> to vector<16x256xf32>
    %562 = vector.shape_cast %559 : vector<16x256xf32> to vector<1x16x256xf32>
    tpu.vector_store %arg7[%c0_117, %c0_118, %c0_119], %562 {strides = array<i32>} : memref<1x16x256xf32, #tpu.memory_space<vmem>>, vector<1x16x256xf32>,
    return
  }
  func.func @transform_0(%arg0: i32) -> (i32, i32, i32) {
    %c0_i32 = arith.constant 0 : i32
    %c0_i32_0 = arith.constant 0 : i32
    %c0_i32_1 = arith.constant 0 : i32
    return %arg0, %c0_i32, %c0_i32_0 : i32, i32, i32
  }
  func.func @transform_1(%arg0: i32) -> (i32, i32, i32) {
    %c0_i32 = arith.constant 0 : i32
    %c0_i32_0 = arith.constant 0 : i32
    %c0_i32_1 = arith.constant 0 : i32
    return %arg0, %c0_i32, %c0_i32_0 : i32, i32, i32
  }
  func.func @transform_2(%arg0: i32) -> (i32, i32, i32) {
    %c0_i32 = arith.constant 0 : i32
    %c0_i32_0 = arith.constant 0 : i32
    %c0_i32_1 = arith.constant 0 : i32
    %c0_i32_2 = arith.constant 0 : i32
    return %c0_i32, %c0_i32_0, %c0_i32_1 : i32, i32, i32
  }
  func.func @transform_3(%arg0: i32) -> (i32, i32, i32) {
    %c0_i32 = arith.constant 0 : i32
    %c0_i32_0 = arith.constant 0 : i32
    %c0_i32_1 = arith.constant 0 : i32
    %c0_i32_2 = arith.constant 0 : i32
    return %c0_i32, %c0_i32_0, %c0_i32_1 : i32, i32, i32
  }
  func.func @transform_4(%arg0: i32) -> (i32, i32, i32) {
    %c0_i32 = arith.constant 0 : i32
    %c0_i32_0 = arith.constant 0 : i32
    %c0_i32_1 = arith.constant 0 : i32
    %c0_i32_2 = arith.constant 0 : i32
    return %c0_i32, %c0_i32_0, %c0_i32_1 : i32, i32, i32
  }
  func.func @transform_5(%arg0: i32) -> (i32, i32) {
    %c0_i32 = arith.constant 0 : i32
    %c0_i32_0 = arith.constant 0 : i32
    %c0_i32_1 = arith.constant 0 : i32
    return %c0_i32, %c0_i32_0 : i32, i32
  }
  func.func @transform_6(%arg0: i32) -> (i32, i32, i32) {
    %c0_i32 = arith.constant 0 : i32
    %c0_i32_0 = arith.constant 0 : i32
    %c0_i32_1 = arith.constant 0 : i32
    return %arg0, %c0_i32, %c0_i32_0 : i32, i32, i32
  }
}

</mosaic_0001>

<bundles_post_ra>
// kernel: bottleneck_forward.4
= control target key start
LH: loop header
LB: loop body
LE: loop exit
PB: predicated region body
PF: predicated region fallthrough
CT: control target
= control target key end

     0   :  { %s396_s12 = smov 0   ;;  %s424_s0 = inlined_call_operand.vmem [shape: f32[2,16,256], index: 0, kind: input, shape index: {}]   ;;  %s425_s1 = inlined_call_operand.vmem [shape: bf16[4,16], index: 1, kind: input, shape index: {}]   ;;  %s426_s2 = inlined_call_operand.vmem [shape: f32[2,4,256], index: 2, kind: output, shape index: {0}]   ;;  %s427_s3 = inlined_call_operand.vmem [shape: f32[2,4,2], index: 3, kind: output, shape index: {1}]  }
   0x1 LB: > { %s343_s13 = sadd.s32 4294967295, %s373_s12   ;;  %p347_p0 = scmp.ge.s32.totalorder %s373_s12, 1  ;;  %s373_s12 = sphi %s396_s12, %s14_s12  }
   0x2   : > { %p140_p1 = scmp.lt.s32.totalorder %s373_s12, 3 }
   0x4   : > { %p141_p2 = pnand %p347_p0, %p140_p1 }
   0x5   : > { %p168_p3 = scmp.lt.s32.totalorder (!%p141_p2), %s343_s13, 1  ;;  %v375_v0 = vmov (!%p141_p2), 0   ;;  %v183_v7 = vld [vmem:[%s425_s1] sm:$0x3] (!%p141_p2)  ;;  %vm190_vm0 = vcmask (!%p141_p2), 130048   ;;  %vm240_vm1 = vcmask (!%p141_p2), 1043456  }
   0x6   : > { %144 = sbr.rel (%p141_p2) target bundleno = 387 (0x183), region = 28  ;;  %226 = vmatprep.mubr.bf16.mxu0 (!%p141_p2), %v375_v0  ;;  %vm253_vm2 = vcmask (!%p141_p2), 7168   ;;  %vm255_vm3 = vcmask (!%p141_p2), 11264  }
   0xd   : > { %s429_s13 = smov (!%p168_p3, %s343_s13), 1 }
   0xe   : > { %s356_s14 = sshll.u32 %s429_s13, 5  ;;  %s357_s20 = sshll.u32 %s429_s13, 3 }
   0xf   : > { %s172_s17 = scalar_lea.vmem %s424_s0, %s356_s14  ;;  %s177_s23 = scalar_lea.vmem %s426_s2, %s357_s20 }
  0x10   : > { %v185_v1 = vld [vmem:[%s172_s17 + $0x8] sm:$0xff]  ;;  %v187_v2 = vld [vmem:[%s172_s17 + $0x18] sm:$0xff]  ;;  %v184_v3 = vld [vmem:[%s172_s17] sm:$0xff]  ;;  %s352_s24 = sshll.u32 %s429_s13, 2 }
  0x11   : > { %v189_v4 = vpack.c.bf16 %v187_v2, %v185_v1  ;;  %v186_v5 = vld [vmem:[%s172_s17 + $0x10] sm:$0xff]  ;;  %s181_s27 = scalar_lea.vmem %s427_s3, %s352_s24 }
  0x12   : > { %v188_v6 = vpack.c.bf16 %v186_v5, %v184_v3 }
  0x13   : > { %194 = vmatprep.subr.bf16.mxu0 %v189_v4 }
  0x14   : > { %195 = vmatpush1.bf16.msra.mxu0 %v188_v6 }
  0x17   : > { %353 = vmatmul.mubr.msk.bf16.vlgmr.msra.gmra.mrb[0].mxu0 %vm190_vm0, %v183_v7 }
  0xea   : > { %v228_v8 = vpop.f32.mrb[0].mxu0 }
  0xeb   : > { %v246_v9 = vmul.f32 %v228_v8, %v228_v8  ;;  %v230_v10 = vpop.f32.mrb[1].mxu0  ;;  %v241_v11 = vsel %vm240_vm1, %v228_v8, 0.0 }
  0xec   : > { %v237_v12 = vcombine.low %v228_v8, %v230_v10  ;;  %v247_v13 = vmul.f32 %v230_v10, %v230_v10  ;;  %v232_v14 = vpop.f32.mrb[2].mxu0  ;;  %v242_v15 = vsel %vm240_vm1, %v230_v10, 0.0 }
  0xed   : > { %v233_v16 = vpop.f32.mrb[3].mxu0  ;;  %v243_v17 = vadd.f32 %v242_v15, %v241_v11  ;;  %v248_v18 = vsel %vm240_vm1, %v246_v9, 0.0 }
  0xee   : > { %239 = vst [vmem:[%s177_s23] sm:$0xff] %v237_v12  ;;  %v249_v19 = vsel %vm240_vm1, %v247_v13, 0.0 }
  0xef   : > { %244 = vadd.xlane.f32.xlu0 %v243_v17  ;;  %v250_v20 = vadd.f32 %v249_v19, %v248_v18 }
  0xf3   : > { %251 = vadd.xlane.f32.xlu0 %v250_v20 }
 0x17c   : > { %v245_v21 = vpop.xlane.xlu0 %244 }
 0x180   : > { %v252_v22 = vpop.xlane.xlu0 %251 }
 0x181   : > { %v254_v23 = vsel %vm253_vm2, %v245_v21, %v252_v22 }
 0x182   : > { %256 = vst.msk [vmem:[%s181_s27] sm:$0xf] %vm255_vm3, %v254_v23 }
 0x183 PF: > { %s14_s12 = sadd.s32 1, %s373_s12  }
 0x184   : > { %p11_p4 = scmp.ge.s32.totalorder %s14_s12, 4  }
 0x186   :  { %13 = sbr.rel (!%p11_p4) target bundleno = 1 (0x1), region = 70 }

// kernel: bottleneck_forward.6
= control target key start
LH: loop header
LB: loop body
LE: loop exit
PB: predicated region body
PF: predicated region fallthrough
CT: control target
= control target key end

     0   :  { %s490_s15 = smov 0   ;;  %s524_s0 = inlined_call_operand.vmem [shape: f32[2,4,256], index: 0, kind: input, shape index: {}]   ;;  %s525_s1 = inlined_call_operand.vmem [shape: f32[2,4,1], index: 1, kind: input, shape index: {}]   ;;  %s526_s2 = inlined_call_operand.vmem [shape: bf16[16,4], index: 2, kind: input, shape index: {}]   ;;  %s527_s3 = inlined_call_operand.vmem [shape: f32[2,16,256], index: 3, kind: output, shape index: {0}]   ;;  %s528_s4 = inlined_call_operand.vmem [shape: f32[2,16,2], index: 4, kind: output, shape index: {1}]  }
   0x1 LB: > { %s423_s16 = sadd.s32 4294967295, %s461_s15   ;;  %p427_p0 = scmp.ge.s32.totalorder %s461_s15, 1  ;;  %s461_s15 = sphi %s490_s15, %s15_s15  }
   0x2   : > { %p165_p1 = scmp.lt.s32.totalorder %s461_s15, 3 }
   0x4   : > { %p166_p2 = pnand %p427_p0, %p165_p1 }
   0x5   : > { %v213_v0 = vld [vmem:[%s525_s1] sm:$0xf] (!%p166_p2)  ;;  %v463_v1 = vmov (!%p166_p2), 0   ;;  %v434_v2 = vld [vmem:[%s525_s1 + $0x4] sm:$0xf] (!%p166_p2)  ;;  %p196_p3 = scmp.lt.s32.totalorder (!%p166_p2), %s423_s16, 1  ;;  %v221_v5 = vlaneseq (!%p166_p2) }
   0x6   : > { %169 = sbr.rel (%p166_p2) target bundleno = 520 (0x208), region = 32  ;;  %453 = vset.pattern.permute.xlu0 (!%p166_p2), %v463_v1  ;;  %298 = vmatprep.mubr.bf16.mxu0 (!%p166_p2), %v463_v1  ;;  %v464_v3 = vmov (!%p166_p2), 839922192   ;;  %vm259_vm0 = vcmask (!%p166_p2), 1041408   ;;  %v454_v21 = vld [vmem:[%s526_s2] sm:$0xff] (!%p166_p2)   ;;  %vm255_vm1 = vcmask (!%p166_p2), 31744  }
   0x7   : > { %216 = vperm.xlu0 (!%p166_p2), %453, %v213_v0   ;;  %v219_v4 = vunpack.c.l.s4 (!%p166_p2), %v464_v3  ;;  %v222_v7 = vshrl.u32 (!%p166_p2), %v221_v5, 7  ;;  %vm329_vm2 = vcmask (!%p166_p2), 7168   ;;  %vm332_vm3 = vcmask (!%p166_p2), 15360  }
   0x9   : > { %v220_v6 = vunpack.c.0.s8 (!%p166_p2), %v219_v4 }
   0xb   : > { %231 = vperm.xlu0 (!%p166_p2), %453, %v434_v2   ;;  %v223_v8 = vsub.s32 (!%p166_p2), %v220_v6, %v222_v7 }
   0xd   : > { %s530_s16 = smov (!%p196_p3, %s423_s16), 1 }
   0xe   : > { %s440_s21 = sshll.u32 %s530_s16, 3  ;;  %s441_s27 = sshll.u32 %s530_s16, 5 }
   0xf   : > { %s200_s24 = scalar_lea.vmem %s524_s0, %s440_s21  ;;  %s205_s30 = scalar_lea.vmem %s527_s3, %s441_s27 }
  0x10   : > { %v212_v11 = vld [vmem:[%s200_s24] sm:$0xff]  ;;  %s442_s5 = sshll.u32 %s530_s16, 4 }
  0x11   : > { %s210_s8 = scalar_lea.vmem %s528_s4, %s442_s5 }
  0x86   : > { %v217_v9 = vpop.permute.xlu0 %216 }
  0x87   : > { %v224_v10 = vrot.slane %v217_v9, %v223_v8 }
  0x89   : > { %v226_v13 = vmul.f32 %v224_v10, %v212_v11 }
  0x8a   : > { %v232_v12 = vpop.permute.xlu0 %231 }
  0x8b   : > { %v239_v14 = vrot.slane %v232_v12, %v223_v8 }
  0x8d   : > { %v241_v15 = vadd.f32 %v239_v14, %v226_v13 }
  0x8f   : > { %v242_v16 = vmax.f32 %v241_v15, 0.0 }
  0x91   : > { %v246_v17 = vcombine.high %v242_v16, %v242_v16  ;;  %v248_v18 = vpack.c.bf16 %v242_v16, %v242_v16 }
  0x93   : > { %v249_v19 = vpack.c.bf16 %v246_v17, %v246_v17  ;;  %v261_v20 = vsel %vm259_vm0, %v248_v18, 0 }
  0x95   : > { %436 = vmatprep.subr.msk.bf16.mxu0 %vm259_vm0, %v249_v19 }
  0x96   : > { %267 = vmatpush1.bf16.msra.mxu0 %v261_v20 }
  0x99   : > { %437 = vmatmul.mubr.msk.bf16.vlgmr.msra.gmra.mrb[0].mxu0 %vm255_vm1, %v454_v21 }
 0x16c   : > { %v300_v22 = vpop.f32.mrb[0].mxu0 }
 0x16d   : > { %309 = vst [vmem:[%s205_s30] sm:$0xff] %v300_v22  ;;  %v302_v23 = vpop.f32.mrb[1].mxu0  ;;  %v319_v24 = vmul.f32 %v300_v22, %v300_v22 }
 0x16e   : > { %310 = vst [vmem:[%s205_s30 + $0x8] sm:$0xff] %v302_v23  ;;  %v304_v25 = vpop.f32.mrb[2].mxu0  ;;  %v313_v26 = vadd.f32 %v302_v23, %v300_v22  ;;  %v320_v27 = vmul.f32 %v302_v23, %v302_v23 }
 0x16f   : > { %311 = vst [vmem:[%s205_s30 + $0x10] sm:$0xff] %v304_v25  ;;  %v306_v28 = vpop.f32.mrb[3].mxu0  ;;  %v321_v29 = vmul.f32 %v304_v25, %v304_v25 }
 0x170   : > { %312 = vst [vmem:[%s205_s30 + $0x18] sm:$0xff] %v306_v28  ;;  %v322_v30 = vmul.f32 %v306_v28, %v306_v28  ;;  %314 = vadd.xlane.f32.xlu1 %v313_v26  ;;  %v323_v31 = vadd.f32 %v320_v27, %v319_v24  ;;  %v316_v32 = vadd.f32 %v306_v28, %v304_v25 }
 0x172   : > { %324 = vadd.xlane.f32.xlu0 %v323_v31  ;;  %v326_v33 = vadd.f32 %v322_v30, %v321_v29 }
 0x174   : > { %317 = vadd.xlane.f32.xlu1 %v316_v32 }
 0x178   : > { %327 = vadd.xlane.f32.xlu1 %v326_v33 }
 0x1fd   : > { %v315_v34 = vpop.xlane.xlu1 %314 }
 0x1ff   : > { %v325_v35 = vpop.xlane.xlu0 %324 }
 0x200   : > { %v330_v36 = vsel %vm329_vm2, %v315_v34, %v325_v35 }
 0x201   : > { %333 = vst.msk [vmem:[%s210_s8] sm:$0xff] %vm332_vm3, %v330_v36  ;;  %v318_v37 = vpop.xlane.xlu1 %317 }
 0x205   : > { %v328_v38 = vpop.xlane.xlu1 %327 }
 0x206   : > { %v331_v39 = vsel %vm329_vm2, %v318_v37, %v328_v38 }
 0x207   : > { %334 = vst.msk [vmem:[%s210_s8 + $0x8] sm:$0xff] %vm332_vm3, %v331_v39 }
 0x208 PF: > { %s15_s15 = sadd.s32 1, %s461_s15  }
 0x209   : > { %p12_p4 = scmp.ge.s32.totalorder %s15_s15, 4  }
 0x20b   :  { %14 = sbr.rel (!%p12_p4) target bundleno = 1 (0x1), region = 75 }

// kernel: bottleneck_forward.5
= control target key start
LH: loop header
LB: loop body
LE: loop exit
PB: predicated region body
PF: predicated region fallthrough
CT: control target
= control target key end

     0   :  { %s680_s15 = smov 0   ;;  %s796_s0 = inlined_call_operand.vmem [shape: f32[2,4,256], index: 0, kind: input, shape index: {}]   ;;  %s797_s1 = inlined_call_operand.vmem [shape: f32[2,4,1], index: 1, kind: input, shape index: {}]   ;;  %s798_s2 = inlined_call_operand.vmem [shape: bf16[4,36], index: 2, kind: input, shape index: {}]   ;;  %s799_s3 = inlined_call_operand.vmem [shape: f32[2,4,256], index: 3, kind: output, shape index: {0}]   ;;  %s800_s4 = inlined_call_operand.vmem [shape: f32[2,4,2], index: 4, kind: output, shape index: {1}]  }
   0x1 LB: > { %s561_s16 = sadd.s32 4294967295, %s643_s15   ;;  %p565_p0 = scmp.ge.s32.totalorder %s643_s15, 1  ;;  %s643_s15 = sphi %s680_s15, %s15_s15  }
   0x2   : > { %p165_p1 = scmp.lt.s32.totalorder %s643_s15, 3 }
   0x4   : > { %p166_p2 = pnand %p565_p0, %p165_p1 }
   0x5   : > { %v211_v0 = vld [vmem:[%s797_s1] sm:$0xf] (!%p166_p2)  ;;  %v645_v1 = vmov (!%p166_p2), 0   ;;  %v571_v2 = vld [vmem:[%s797_s1 + $0x4] sm:$0xf] (!%p166_p2)  ;;  %p195_p3 = scmp.lt.s32.totalorder (!%p166_p2), %s561_s16, 1  ;;  %v219_v5 = vlaneseq (!%p166_p2) }
   0x6   : > { %169 = sbr.rel (%p166_p2) target bundleno = 654 (0x28e), region = 32  ;;  %596 = vset.pattern.permute.xlu0 (!%p166_p2), %v645_v1  ;;  %446 = vmatprep.mubr.bf16.mxu0 (!%p166_p2), %v645_v1  ;;  %v646_v3 = vmov (!%p166_p2), 839922192   ;;  %s647_s25 = smov (!%p166_p2), 17   ;;  %vm278_vm0 = vcmask (!%p166_p2), 138240   ;;  %vm316_vm1 = vcmask (!%p166_p2), 7168  }
   0x7   : > { %214 = vperm.xlu0 (!%p166_p2), %596, %v211_v0   ;;  %v217_v4 = vunpack.c.l.s4 (!%p166_p2), %v646_v3  ;;  %v220_v7 = vshrl.u32 (!%p166_p2), %v219_v5, 7  ;;  %s648_s26 = smov (!%p166_p2), 1   ;;  %s649_s27 = smov (!%p166_p2), 127   ;;  %v242_v20 = vand.u32 (!%p166_p2), 127, %v219_v5  ;;  %vm327_vm5 = vcmask (!%p166_p2), 1039360  }
   0x8   : > { %s650_s28 = smov (!%p166_p2), 16   ;;  %s651_s29 = smov (!%p166_p2), 113   ;;  %vm293_vm6 = vcmask (!%p166_p2), 130048   ;;  %vm338_vm7 = vcmask (!%p166_p2), 924672   ;;  %vm301_vm8 = vcmask (!%p166_p2), 121856   ;;  %vm387_vm10 = vcmask (!%p166_p2), 1043456  }
   0x9   : > { %v218_v6 = vunpack.c.0.s8 (!%p166_p2), %v217_v4  ;;  %s652_s30 = smov (!%p166_p2), 15   ;;  %s653_s5 = smov (!%p166_p2), 112   ;;  %v243_v21 = vadd.s32 (!%p166_p2), 128, %v242_v20  ;;  %v248_v22 = vand.u32 (!%p166_p2), 15, %v242_v20  ;;  %vm349_vm11 = vcmask (!%p166_p2), 916480  }
   0xa   : > { %s654_s6 = smov (!%p166_p2), 111   ;;  %vm357_vm12 = vcmask (!%p166_p2), 908288   ;;  %vm407_vm13 = vcmask (!%p166_p2), 1041408   ;;  %vm403_vm14 = vcmask (!%p166_p2), 293888   ;;  %vm473_vm15 = vcmask (!%p166_p2), 11264  }
   0xb   : > { %229 = vperm.xlu0 (!%p166_p2), %596, %v571_v2   ;;  %v221_v8 = vsub.s32 (!%p166_p2), %v218_v6, %v220_v7  ;;  %v255_v23 = vand.u32 (!%p166_p2), 15, %v243_v21  ;;  %vm712_vm2 = vcmp.ge.s32.totalorder (!%p166_p2), %v248_v22, 1  ;;  %vm726_vm9 = vcmp.lt.s32.totalorder (!%p166_p2), %v248_v22, 15 }
   0xd   : > { %s810_s16 = smov (!%p195_p3, %s561_s16), 1  ;;  %vm716_vm3 = vcmp.ge.s32.totalorder %v255_v23, 1  ;;  %vm720_vm4 = vcmp.lt.s32.totalorder %v255_v23, 15 }
   0xe   : > { %s576_s21 = sshll.u32 %s810_s16, 3  ;;  %s570_s12 = sshll.u32 %s810_s16, 2 }
   0xf   : > { %s199_s24 = scalar_lea.vmem %s796_s0, %s576_s21  ;;  %s204_s11 = scalar_lea.vmem %s799_s3, %s576_s21 }
  0x10   : > { %v210_v11 = vld [vmem:[%s199_s24] sm:$0xff]  ;;  %s208_s17 = scalar_lea.vmem %s800_s4, %s570_s12 }
  0x86   : > { %v215_v9 = vpop.permute.xlu0 %214 }
  0x87   : > { %v222_v10 = vrot.slane %v215_v9, %v221_v8 }
  0x89   : > { %v224_v13 = vmul.f32 %v222_v10, %v210_v11 }
  0x8a   : > { %v230_v12 = vpop.permute.xlu0 %229 }
  0x8b   : > { %v237_v14 = vrot.slane %v230_v12, %v221_v8 }
  0x8d   : > { %v239_v15 = vadd.f32 %v237_v14, %v224_v13 }
  0x8f   : > { %v702_v16 = vmax.f32 %v239_v15, 0.0 }
  0x91   : > { %v706_v17 = vcombine.high %v702_v16, %v702_v16 }
  0x93   : > { %v607_v18 = vpack.i.bf16 %v706_v17, %v702_v16  ;;  %v617_v19 = vpack.i.bf16 %v702_v16, %v706_v17 }
  0x95   : > { %608 = vrot.lane.b32.xlu0 %v607_v18, %s647_s25  ;;  %598 = vrot.lane.b32.xlu1 %v607_v18, %s648_s26 }
  0x99   : > { %618 = vrot.lane.b32.xlu0 %v617_v19, %s649_s27  ;;  %603 = vrot.lane.b32.xlu1 %v607_v18, %s650_s28 }
  0x9d   : > { %628 = vrot.lane.b32.xlu0 %v617_v19, %s651_s29  ;;  %613 = vrot.lane.b32.xlu1 %v607_v18, %s652_s30 }
  0xa1   : > { %623 = vrot.lane.b32.xlu1 %v617_v19, %s653_s5 }
  0xa5   : > { %633 = vrot.lane.b32.xlu1 %v607_v18, %s654_s6 }
 0x107   : > { %v609_v24 = vpop.permute.xlu0 %608  ;;  %v599_v25 = vpop.permute.xlu1 %598 }
 0x108   : > { %v601_v26 = vunpack.i.h.bf16 %v599_v25  ;;  %v600_v27 = vunpack.i.l.bf16 %v599_v25  ;;  %v611_v28 = vunpack.i.h.bf16 %v609_v24  ;;  %v610_v29 = vunpack.i.l.bf16 %v609_v24 }
 0x10a   : > { %v317_v33 = vsel %vm316_vm1, %v600_v27, %v601_v26  ;;  %v320_v34 = vsel %vm316_vm1, 0.0, %v600_v27  ;;  %v282_v41 = vsel %vm278_vm0, 0.0, %v610_v29  ;;  %v279_v43 = vsel %vm278_vm0, %v610_v29, %v611_v28 }
 0x10b   : > { %v619_v35 = vpop.permute.xlu0 %618  ;;  %v604_v36 = vpop.permute.xlu1 %603  ;;  %v321_v44 = vsel %vm712_vm2, %v320_v34, 0.0  ;;  %v322_v47 = vsel %vm716_vm3, %v317_v33, 0.0  ;;  %v288_v56 = vsel %vm716_vm3, %v279_v43, 0.0  ;;  %v287_v57 = vsel %vm712_vm2, %v282_v41, 0.0  ;;  %v402_v41 = vld [vmem:[%s798_s2] sm:$0x3] }
 0x10c   : > { %v621_v38 = vunpack.i.h.bf16 %v619_v35  ;;  %v620_v39 = vunpack.i.l.bf16 %v619_v35  ;;  %v606_v40 = vunpack.i.h.bf16 %v604_v36  ;;  %v605_v42 = vunpack.i.l.bf16 %v604_v36 }
 0x10d   : > { %v371_v62 = vrot.slane %v321_v44, 4  ;;  %v372_v0 = vrot.slane %v322_v47, 4 }
 0x10e   : > { %v328_v45 = vsel %vm327_vm5, %v621_v38, %v620_v39  ;;  %v331_v46 = vsel %vm327_vm5, %v620_v39, 0.0  ;;  %v296_v49 = vsel %vm293_vm6, 0.0, %v605_v42  ;;  %v294_v52 = vsel %vm293_vm6, %v605_v42, %v606_v40 }
 0x10f   : > { %v333_v48 = vsel %vm720_vm4, %v331_v46, 0.0  ;;  %v629_v50 = vpop.permute.xlu0 %628  ;;  %v614_v51 = vpop.permute.xlu1 %613  ;;  %v332_v53 = vsel %vm726_vm9, %v328_v45, 0.0  ;;  %v365_v58 = vrot.slane %v296_v49, 4  ;;  %v366_v61 = vrot.slane %v294_v52, 4 }
 0x110   : > { %v631_v54 = vunpack.i.h.bf16 %v629_v50  ;;  %v630_v55 = vunpack.i.l.bf16 %v629_v50  ;;  %v616_v59 = vunpack.i.h.bf16 %v614_v51  ;;  %v615_v60 = vunpack.i.l.bf16 %v614_v51 }
 0x111   : > { %v379_v63 = vrot.slane %v333_v48, 4  ;;  %v378_v1 = vrot.slane %v332_v53, 4  ;;  %v389_v11 = vsel %vm387_vm10, %v288_v56, %v366_v61  ;;  %v388_v13 = vsel %vm387_vm10, %v287_v57, %v365_v58 }
 0x112   : > { %v339_v2 = vsel %vm338_vm7, %v631_v54, %v630_v55  ;;  %v342_v3 = vsel %vm338_vm7, %v630_v55, 0.0  ;;  %v305_v4 = vsel %vm301_vm8, 0.0, %v615_v60  ;;  %v302_v6 = vsel %vm301_vm8, %v615_v60, %v616_v59 }
 0x113   : > { %v624_v5 = vpop.permute.xlu1 %623  ;;  %v311_v9 = vsel %vm720_vm4, %v302_v6, 0.0  ;;  %v310_v10 = vsel %vm726_vm9, %v305_v4, 0.0  ;;  %v344_v24 = vsel %vm716_vm3, %v342_v3, 0.0  ;;  %v343_v27 = vsel %vm712_vm2, %v339_v2, 0.0 }
 0x114   : > { %v626_v7 = vunpack.i.h.bf16 %v624_v5  ;;  %v625_v8 = vunpack.i.l.bf16 %v624_v5  ;;  %v391_v12 = vsel %vm387_vm10, %v311_v9, %v372_v0  ;;  %v390_v14 = vsel %vm387_vm10, %v310_v10, %v371_v62 }
 0x115   : > { %v397_v19 = vpack.c.bf16 %v391_v12, %v389_v11  ;;  %v396_v20 = vpack.c.bf16 %v390_v14, %v388_v13  ;;  %v393_v28 = vsel %vm387_vm10, %v706_v17, %v379_v63  ;;  %v392_v33 = vsel %vm387_vm10, %v702_v16, %v378_v1 }
 0x116   : > { %v350_v15 = vsel %vm349_vm11, %v626_v7, %v625_v8  ;;  %v352_v18 = vsel %vm349_vm11, %v625_v8, 0.0 }
 0x117   : > { %v383_v21 = vrot.slane %v350_v15, 4  ;;  %v384_v22 = vrot.slane %v352_v18, 4  ;;  %v634_v23 = vpop.permute.xlu1 %633  ;;  %414 = vmatprep.subr.bf16.mxu0 %v397_v19 }
 0x118   : > { %v636_v25 = vunpack.i.h.bf16 %v634_v23  ;;  %v635_v26 = vunpack.i.l.bf16 %v634_v23  ;;  %415 = vmatpush1.bf16.msra.mxu0 %v396_v20 }
 0x119   : > { %v395_v29 = vsel %vm387_vm10, %v344_v24, %v384_v22  ;;  %v394_v34 = vsel %vm387_vm10, %v343_v27, %v383_v21 }
 0x11a   : > { %v361_v35 = vsel %vm357_vm12, %v636_v25, 0.0  ;;  %v399_v31 = vpack.c.bf16 %v395_v29, %v393_v28  ;;  %v398_v36 = vpack.c.bf16 %v394_v34, %v392_v33  ;;  %v358_v38 = vsel %vm357_vm12, %v635_v26, %v636_v25 }
 0x11b   : > { %v363_v30 = vsel %vm720_vm4, %v361_v35, 0.0  ;;  %v362_v39 = vsel %vm726_vm9, %v358_v38, 0.0 }
 0x11c   : > { %v401_v17 = vpack.c.bf16 %v363_v30, %v363_v30  ;;  %416 = vmatprep.subr.bf16.mxu0 %v399_v31  ;;  %v400_v40 = vpack.c.bf16 %v362_v39, %v362_v39 }
 0x11d   : > { %417 = vmatpush1.bf16.msra.mxu0 %v398_v36 }
 0x11e   : > { %572 = vmatprep.subr.msk.bf16.mxu0 %vm407_vm13, %v401_v17  ;;  %v409_v16 = vsel %vm407_vm13, %v400_v40, 0 }
 0x121   : > { %419 = vmatpush1.bf16.msra.mxu0 %v409_v16 }
 0x124   : > { %573 = vmatmul.mubr.msk.bf16.vlgmr.msra.gmra.mrb[0].mxu0 %vm403_vm14, %v402_v41 }
 0x1f7   : > { %v448_v42 = vpop.f32.mrb[0].mxu0 }
 0x1f8   : > { %v465_v32 = vmul.f32 %v448_v42, %v448_v42  ;;  %v450_v37 = vpop.f32.mrb[1].mxu0  ;;  %v460_v43 = vsel %vm387_vm10, %v448_v42, 0.0 }
 0x1f9   : > { %v457_v44 = vcombine.low %v448_v42, %v450_v37  ;;  %v466_v45 = vmul.f32 %v450_v37, %v450_v37  ;;  %v452_v46 = vpop.f32.mrb[2].mxu0  ;;  %v461_v47 = vsel %vm387_vm10, %v450_v37, 0.0 }
 0x1fa   : > { %v453_v48 = vpop.f32.mrb[3].mxu0  ;;  %v462_v49 = vadd.f32 %v461_v47, %v460_v43  ;;  %v467_v50 = vsel %vm387_vm10, %v465_v32, 0.0 }
 0x1fb   : > { %459 = vst [vmem:[%s204_s11] sm:$0xff] %v457_v44  ;;  %v468_v51 = vsel %vm387_vm10, %v466_v45, 0.0 }
 0x1fc   : > { %463 = vadd.xlane.f32.xlu0 %v462_v49  ;;  %v469_v52 = vadd.f32 %v468_v51, %v467_v50 }
 0x1fe   : > { %470 = vadd.xlane.f32.xlu1 %v469_v52 }
 0x289   : > { %v464_v53 = vpop.xlane.xlu0 %463 }
 0x28b   : > { %v471_v54 = vpop.xlane.xlu1 %470 }
 0x28c   : > { %v472_v55 = vsel %vm316_vm1, %v464_v53, %v471_v54 }
 0x28d   : > { %474 = vst.msk [vmem:[%s208_s17] sm:$0xf] %vm473_vm15, %v472_v55 }
 0x28e PF: > { %s15_s15 = sadd.s32 1, %s643_s15  }
 0x28f   : > { %p12_p4 = scmp.ge.s32.totalorder %s15_s15, 4  }
 0x291   :  { %14 = sbr.rel (!%p12_p4) target bundleno = 1 (0x1), region = 75 }

// kernel: bottleneck_forward.7
= control target key start
LH: loop header
LB: loop body
LE: loop exit
PB: predicated region body
PF: predicated region fallthrough
CT: control target
= control target key end

     0   :  { %s2530_s21 = smov 0   ;;  %s4632_s0 = inlined_call_operand.vmem [shape: f32[2,16,256], index: 0, kind: input, shape index: {}]   ;;  %s4633_s1 = inlined_call_operand.vmem [shape: f32[2,16,256], index: 1, kind: input, shape index: {}]   ;;  %s4634_s2 = inlined_call_operand.vmem [shape: f32[2,16,1], index: 2, kind: input, shape index: {}]   ;;  %s4635_s3 = inlined_call_operand.vmem [shape: f32[2,16,25], index: 3, kind: input, shape index: {}]   ;;  %s4636_s4 = inlined_call_operand.vmem [shape: f32[2,16,1], index: 4, kind: input, shape index: {}]   ;;  %s4637_s5 = inlined_call_operand.vmem [shape: f32[1,256], index: 5, kind: input, shape index: {}]   ;;  %s4638_s6 = inlined_call_operand.vmem [shape: f32[2,16,256], index: 6, kind: output, shape index: {}]  }
   0x1 LB: > { %s2261_s22 = sadd.s32 4294967295, %s2444_s21   ;;  %p2265_p0 = scmp.ge.s32.totalorder %s2444_s21, 1  ;;  %s2444_s21 = sphi %s2530_s21, %s16_s21  }
   0x2   : > { %p222_p1 = scmp.lt.s32.totalorder %s2444_s21, 3 }
   0x4   : > { %p223_p2 = pnand %p2265_p0, %p222_p1 }
   0x6   : > { %226 = sbr.rel (%p223_p2) target bundleno = 1065 (0x429), region = 44 }
   0xd   : > { %v2272_v0 = vld [vmem:[%s4634_s2 + $0x10] sm:$0xff]  ;;  %v311_v1 = vld [vmem:[%s4634_s2] sm:$0xff]  ;;  %v4680_v2 = vmov 0   ;;  %v2273_v3 = vld [vmem:[%s4634_s2 + $0x18] sm:$0xff]  ;;  %v4666_v7 = vmov 1   ;;  %v4664_v9 = vmov 2  }
   0xe   : > { %2341 = vset.pattern.permute.xlu1 %v4680_v2  ;;  %2340 = vset.pattern.permute.xlu0 %v4680_v2  ;;  %v312_v4 = vld [vmem:[%s4634_s2 + $0x8] sm:$0xff]  ;;  %v2560_v6 = vld [vmem:[%s4635_s3] sm:$0xff]  ;;  %v4662_v10 = vmov 3   ;;  %v4660_v11 = vmov 4   ;;  %v4658_v12 = vmov 5   ;;  %v4654_v13 = vmov 6  }
   0xf   : > { %332 = vperm.xlu1 %2341, %v2272_v0   ;;  %315 = vperm.xlu0 %2340, %v311_v1   ;;  %v2555_v5 = vld [vmem:[%s4635_s3 + $0x8] sm:$0xff]  ;;  %v4652_v14 = vmov 7   ;;  %v4650_v15 = vmov 8   ;;  %v4648_v16 = vmov 9   ;;  %p257_p3 = scmp.lt.s32.totalorder %s2261_s22, 1  ;;  %s2456_s17 = smov 34  }
  0x10   : > { %v347_v8 = vld [vmem:[%s4636_s4 + $0x8] sm:$0xff]  ;;  %s2457_s18 = smov 33   ;;  %s2458_s19 = smov 32   ;;  %v4646_v37 = vmov 10   ;;  %v4644_v42 = vmov 11   ;;  %v4639_v45 = vmov 12  }
  0x11   : > { %s5063_s22 = smov (!%p257_p3, %s2261_s22), 1  ;;  %s2459_s20 = smov 31   ;;  %v4640_v48 = vmov 13   ;;  %v4642_v53 = vmov 14   ;;  %v4656_v58 = vmov 15   ;;  %v4670_v63 = vmov 16  }
  0x12   : > { %s2604_s13 = sshll.u32 %s5063_s22, 5  ;;  %s2460_s22 = smov 30   ;;  %vm360_vm0 = vcmask 277504   ;;  %vm4764_vm2 = vcmask 269312   ;;  %vm4761_vm6 = vcmask 261120   ;;  %vm4753_vm8 = vcmask 252928  }
  0x13   : > { %337 = vperm.xlu1 %2341, %v2273_v3   ;;  %320 = vperm.xlu0 %2340, %v312_v4   ;;  %s261_s16 = scalar_lea.vmem %s4632_s0, %s2604_s13  ;;  %s2461_s23 = smov 18   ;;  %vm4752_vm10 = vcmask 244736   ;;  %vm4754_vm12 = vcmask 146432   ;;  %vm4755_vm14 = vcmask 138240   ;;  %vm4757_vm15 = vcmask 130048  }
  0x14   : > { %v307_v17 = vld [vmem:[%s261_s16] sm:$0xff]  ;;  %v308_v18 = vld [vmem:[%s261_s16 + $0x8] sm:$0xff]  ;;  %v309_v23 = vld [vmem:[%s261_s16 + $0x10] sm:$0xff]  ;;  %s2462_s24 = smov 17   ;;  %s2463_s25 = smov 16  }
  0x15   : > { %v310_v24 = vld [vmem:[%s261_s16 + $0x18] sm:$0xff]  ;;  %s2464_s26 = smov 15   ;;  %s2465_s27 = smov 14  }
  0x16   : > { %s2466_s28 = smov 2   ;;  %s2468_s29 = smov 1  }
  0x17   : > { %384 = vperm.xlu1 %2341, %v2555_v5   ;;  %2342 = vset.pattern.permute.xlu0 %v4666_v7  ;;  %s2471_s30 = smov 127   ;;  %s4699_s7 = smov 126  }
  0x18   : > { %431 = vperm.xlu0 %2342, %v2560_v6   ;;  %s4687_s8 = smov 114   ;;  %s4676_s9 = smov 113  }
  0x19   : > { %s4697_s10 = smov 112   ;;  %s2481_s11 = smov 111  }
  0x1a   : > { %s2483_s12 = smov 110   ;;  %s2485_s14 = smov 98  }
  0x1b   : > { %398 = vperm.xlu1 %2341, %v347_v8   ;;  %s2487_s15 = smov 97   ;;  %s2489_s16 = smov 96  }
  0x1c   : > { %2345 = vset.pattern.permute.xlu0 %v4664_v9 }
  0x1d   : > { %468 = vperm.xlu0 %2345, %v2555_v5  }
  0x1f   : > { %2343 = vset.pattern.permute.xlu1 %v4666_v7  ;;  %v4678_v7 = vmov 22  }
  0x20   : > { %435 = vperm.xlu1 %2343, %v2555_v5  }
  0x21   : > { %2346 = vset.pattern.permute.xlu0 %v4662_v10 }
  0x22   : > { %505 = vperm.xlu0 %2346, %v2560_v6  }
  0x24   : > { %2344 = vset.pattern.permute.xlu1 %v4664_v9 }
  0x25   : > { %464 = vperm.xlu1 %2344, %v2560_v6  }
  0x26   : > { %2349 = vset.pattern.permute.xlu0 %v4660_v11 }
  0x27   : > { %550 = vperm.xlu0 %2349, %v2555_v5  }
  0x29   : > { %2347 = vset.pattern.permute.xlu1 %v4662_v10 }
  0x2a   : > { %509 = vperm.xlu1 %2347, %v2555_v5  }
  0x2b   : > { %2350 = vset.pattern.permute.xlu0 %v4658_v12 }
  0x2c   : > { %583 = vperm.xlu0 %2350, %v2560_v6  }
  0x2e   : > { %2348 = vset.pattern.permute.xlu1 %v4660_v11 }
  0x2f   : > { %546 = vperm.xlu1 %2348, %v2560_v6  }
  0x30   : > { %2353 = vset.pattern.permute.xlu0 %v4654_v13 }
  0x31   : > { %624 = vperm.xlu0 %2353, %v2555_v5  }
  0x33   : > { %2351 = vset.pattern.permute.xlu1 %v4658_v12  ;;  %v4668_v12 = vmov 21  }
  0x34   : > { %587 = vperm.xlu1 %2351, %v2555_v5  }
  0x35   : > { %2354 = vset.pattern.permute.xlu0 %v4652_v14 }
  0x36   : > { %653 = vperm.xlu0 %2354, %v2560_v6  }
  0x38   : > { %2352 = vset.pattern.permute.xlu1 %v4654_v13 }
  0x39   : > { %620 = vperm.xlu1 %2352, %v2560_v6  }
  0x3a   : > { %2357 = vset.pattern.permute.xlu0 %v4650_v15 }
  0x3b   : > { %694 = vperm.xlu0 %2357, %v2555_v5  }
  0x3d   : > { %2355 = vset.pattern.permute.xlu1 %v4652_v14 }
  0x3e   : > { %657 = vperm.xlu1 %2355, %v2555_v5  }
  0x3f   : > { %2358 = vset.pattern.permute.xlu0 %v4648_v16 }
  0x42   : > { %2356 = vset.pattern.permute.xlu1 %v4650_v15 }
  0x43   : > { %690 = vperm.xlu1 %2356, %v2560_v6  }
  0x47   : > { %2359 = vset.pattern.permute.xlu1 %v4648_v16 }
  0x8e   : > { %v333_v19 = vpop.permute.xlu1 %332  ;;  %v316_v20 = vpop.permute.xlu0 %315 }
  0x8f   : > { %v323_v21 = vmul.f32 %v316_v20, %v307_v17  ;;  %v324_v22 = vmul.f32 %v316_v20, %v308_v18  ;;  %v4684_v18 = vmov 17  }
  0x91   : > { %v2610_v25 = vadd.f32 %v333_v19, %v323_v21  ;;  %v2612_v26 = vadd.f32 %v333_v19, %v324_v22 }
  0x92   : > { %v321_v27 = vpop.permute.xlu0 %320  ;;  %v338_v30 = vpop.permute.xlu1 %337 }
  0x93   : > { %4778 = vst [vmem:[#allocation2_spill] sm:$0xff] %v2610_v25  ;;  %4779 = vst [vmem:[#allocation3_spill] sm:$0xff] %v2612_v26  ;;  %v325_v28 = vmul.f32 %v321_v27, %v309_v23  ;;  %v326_v29 = vmul.f32 %v321_v27, %v310_v24  ;;  %354 = vrot.lane.b32.xlu1 %v2612_v26, %s2456_s17  ;;  %352 = vrot.lane.b32.xlu0 %v2610_v25, %s2456_s17  ;;  %v4682_v23 = vmov 18  }
  0x95   : > { %v2618_v31 = vadd.f32 %v338_v30, %v325_v28  ;;  %v2620_v32 = vadd.f32 %v338_v30, %v326_v29 }
  0x96   : > { %v2674_v33 = vpop.permute.xlu1 %384 }
  0x97   : > { %4780 = vst [vmem:[#allocation4_spill] sm:$0xff] %v2618_v31  ;;  %4781 = vst [vmem:[#allocation5_spill] sm:$0xff] %v2620_v32  ;;  %358 = vrot.lane.b32.xlu1 %v2620_v32, %s2456_s17  ;;  %356 = vrot.lane.b32.xlu0 %v2618_v31, %s2456_s17  ;;  %v2691_v36 = vpop.permute.xlu0 %431 }
  0x9a   : > { %v2684_v34 = vpop.permute.xlu1 %398 }
  0x9b   : > { %407 = vrot.lane.b32.xlu1 %v2612_v26, %s2457_s18  ;;  %405 = vrot.lane.b32.xlu0 %v2610_v25, %s2457_s18 }
  0x9c   : > { %v2704_v39 = vpop.permute.xlu0 %468 }
  0x9f   : > { %411 = vrot.lane.b32.xlu1 %v2620_v32, %s2457_s18  ;;  %409 = vrot.lane.b32.xlu0 %v2618_v31, %s2457_s18  ;;  %v2689_v35 = vpop.permute.xlu1 %435 }
  0xa1   : > { %v2711_v41 = vpop.permute.xlu0 %505 }
  0xa3   : > { %446 = vrot.lane.b32.xlu1 %v2610_v25, %s2458_s19  ;;  %448 = vrot.lane.b32.xlu0 %v2612_v26, %s2458_s19 }
  0xa4   : > { %v2702_v38 = vpop.permute.xlu1 %464 }
  0xa6   : > { %v2723_v44 = vpop.permute.xlu0 %550 }
  0xa7   : > { %450 = vrot.lane.b32.xlu1 %v2618_v31, %s2458_s19  ;;  %452 = vrot.lane.b32.xlu0 %v2620_v32, %s2458_s19 }
  0xa9   : > { %v2709_v40 = vpop.permute.xlu1 %509 }
  0xab   : > { %479 = vrot.lane.b32.xlu1 %v2610_v25, %s2459_s20  ;;  %483 = vrot.lane.b32.xlu0 %v2618_v31, %s2459_s20  ;;  %v2731_v47 = vpop.permute.xlu0 %583 }
  0xae   : > { %v2721_v43 = vpop.permute.xlu1 %546 }
  0xaf   : > { %481 = vrot.lane.b32.xlu1 %v2612_v26, %s2459_s20  ;;  %522 = vrot.lane.b32.xlu0 %v2612_v26, %s2460_s22 }
  0xb0   : > { %v2741_v50 = vpop.permute.xlu0 %624 }
  0xb3   : > { %485 = vrot.lane.b32.xlu1 %v2620_v32, %s2459_s20  ;;  %526 = vrot.lane.b32.xlu0 %v2620_v32, %s2460_s22  ;;  %v2729_v46 = vpop.permute.xlu1 %587 }
  0xb5   : > { %v2751_v52 = vpop.permute.xlu0 %653 }
  0xb6   : > { %4782 = vst [vmem:[#allocation6_spill] sm:$0xff] %v2751_v52 }
  0xb7   : > { %520 = vrot.lane.b32.xlu1 %v2610_v25, %s2460_s22  ;;  %565 = vrot.lane.b32.xlu0 %v2618_v31, %s2461_s23 }
  0xb8   : > { %v2739_v49 = vpop.permute.xlu1 %620 }
  0xba   : > { %v2761_v55 = vpop.permute.xlu0 %694 }
  0xbb   : > { %524 = vrot.lane.b32.xlu1 %v2618_v31, %s2460_s22  ;;  %600 = vrot.lane.b32.xlu0 %v2612_v26, %s2462_s24  ;;  %4784 = vst [vmem:[#allocation8_spill] sm:$0xff] %v2761_v55  ;;  %v4797_v55 = vmov 0  }
  0xbd   : > { %v2749_v51 = vpop.permute.xlu1 %657 }
  0xbf   : > { %561 = vrot.lane.b32.xlu1 %v2610_v25, %s2461_s23  ;;  %604 = vrot.lane.b32.xlu0 %v2620_v32, %s2462_s24 }
  0xc2   : > { %v2759_v54 = vpop.permute.xlu1 %690 }
  0xc3   : > { %563 = vrot.lane.b32.xlu1 %v2612_v26, %s2461_s23  ;;  %639 = vrot.lane.b32.xlu0 %v2618_v31, %s2463_s25  ;;  %4783 = vst [vmem:[#allocation7_spill] sm:$0xff] %v2759_v54 }
  0xc7   : > { %567 = vrot.lane.b32.xlu1 %v2620_v32, %s2461_s23  ;;  %670 = vrot.lane.b32.xlu0 %v2612_v26, %s2464_s26 }
  0xcb   : > { %598 = vrot.lane.b32.xlu1 %v2610_v25, %s2462_s24  ;;  %674 = vrot.lane.b32.xlu0 %v2620_v32, %s2464_s26 }
  0xcf   : > { %602 = vrot.lane.b32.xlu1 %v2618_v31, %s2462_s24  ;;  %709 = vrot.lane.b32.xlu0 %v2618_v31, %s2465_s27 }
  0xd3   : > { %635 = vrot.lane.b32.xlu1 %v2610_v25, %s2463_s25  ;;  %727 = vperm.xlu0 %2358, %v2560_v6  }
  0xd7   : > { %637 = vrot.lane.b32.xlu1 %v2612_v26, %s2463_s25  ;;  %744 = vrot.lane.b32.xlu0 %v2612_v26, %s2466_s28 }
  0xd8   : > { %2361 = vset.pattern.permute.xlu0 %v4646_v37 }
  0xdb   : > { %641 = vrot.lane.b32.xlu1 %v2620_v32, %s2463_s25  ;;  %748 = vrot.lane.b32.xlu0 %v2620_v32, %s2466_s28 }
  0xdf   : > { %668 = vrot.lane.b32.xlu1 %v2610_v25, %s2464_s26  ;;  %768 = vperm.xlu0 %2361, %v2555_v5  }
  0xe3   : > { %672 = vrot.lane.b32.xlu1 %v2618_v31, %s2464_s26  ;;  %783 = vrot.lane.b32.xlu0 %v2618_v31, %s2468_s29 }
  0xe4   : > { %2362 = vset.pattern.permute.xlu0 %v4644_v42 }
  0xe7   : > { %705 = vrot.lane.b32.xlu1 %v2610_v25, %s2465_s27  ;;  %801 = vperm.xlu0 %2362, %v2560_v6  }
  0xeb   : > { %707 = vrot.lane.b32.xlu1 %v2612_v26, %s2465_s27  ;;  %2365 = vset.pattern.permute.xlu0 %v4639_v45 }
  0xec   : > { %821 = vperm.xlu0 %2365, %v2555_v5  }
  0xef   : > { %711 = vrot.lane.b32.xlu1 %v2620_v32, %s2465_s27 }
  0xf0   : > { %836 = vrot.lane.b32.xlu0 %v2618_v31, %s2471_s30 }
  0xf1   : > { %2366 = vset.pattern.permute.xlu0 %v4640_v48 }
  0xf3   : > { %731 = vperm.xlu1 %2359, %v2555_v5  }
  0xf4   : > { %854 = vperm.xlu0 %2366, %v2560_v6  }
  0xf7   : > { %742 = vrot.lane.b32.xlu1 %v2610_v25, %s2466_s28 }
  0xf8   : > { %871 = vrot.lane.b32.xlu0 %v2612_v26, %s4699_s7  ;;  %2360 = vset.pattern.permute.xlu1 %v4646_v37  ;;  %v4672_v37 = vmov 20  }
  0xf9   : > { %2369 = vset.pattern.permute.xlu0 %v4642_v53 }
  0xfb   : > { %746 = vrot.lane.b32.xlu1 %v2618_v31, %s2466_s28 }
  0xfc   : > { %875 = vrot.lane.b32.xlu0 %v2620_v32, %s4699_s7 }
  0xff   : > { %764 = vperm.xlu1 %2360, %v2560_v6  }
 0x100   : > { %895 = vperm.xlu0 %2369, %v2555_v5  }
 0x103   : > { %779 = vrot.lane.b32.xlu1 %v2610_v25, %s2468_s29 }
 0x104   : > { %910 = vrot.lane.b32.xlu0 %v2618_v31, %s4687_s8  ;;  %2363 = vset.pattern.permute.xlu1 %v4644_v42 }
 0x105   : > { %v2769_v56 = vpop.permute.xlu1 %354  ;;  %v2771_v57 = vpop.permute.xlu0 %352  ;;  %2370 = vset.pattern.permute.xlu0 %v4656_v58 }
 0x107   : > { %781 = vrot.lane.b32.xlu1 %v2612_v26, %s2468_s29 }
 0x108   : > { %928 = vperm.xlu0 %2370, %v2560_v6  }
 0x109   : > { %v2777_v59 = vpop.permute.xlu1 %358  ;;  %v2779_v60 = vpop.permute.xlu0 %356 }
 0x10b   : > { %785 = vrot.lane.b32.xlu1 %v2620_v32, %s2468_s29 }
 0x10c   : > { %945 = vrot.lane.b32.xlu0 %v2612_v26, %s4676_s9 }
 0x10d   : > { %v2785_v61 = vpop.permute.xlu1 %407  ;;  %v2787_v62 = vpop.permute.xlu0 %405  ;;  %2373 = vset.pattern.permute.xlu0 %v4670_v63 }
 0x10f   : > { %805 = vperm.xlu1 %2363, %v2555_v5  }
 0x110   : > { %949 = vrot.lane.b32.xlu0 %v2620_v32, %s4676_s9 }
 0x111   : > { %v2793_v0 = vpop.permute.xlu1 %411  ;;  %v2795_v1 = vpop.permute.xlu0 %409 }
 0x113   : > { %2364 = vset.pattern.permute.xlu1 %v4639_v45  ;;  %v4674_v45 = vmov 19  }
 0x114   : > { %817 = vperm.xlu1 %2364, %v2560_v6   ;;  %969 = vperm.xlu0 %2373, %v2555_v5  }
 0x115   : > { %v2800_v3 = vpop.permute.xlu1 %446  ;;  %v2802_v4 = vpop.permute.xlu0 %448 }
 0x118   : > { %832 = vrot.lane.b32.xlu1 %v2610_v25, %s2471_s30  ;;  %984 = vrot.lane.b32.xlu0 %v2618_v31, %s4697_s10 }
 0x119   : > { %v2808_v8 = vpop.permute.xlu1 %450  ;;  %v2810_v17 = vpop.permute.xlu0 %452  ;;  %2374 = vset.pattern.permute.xlu0 %v4684_v18  ;;  %2367 = vset.pattern.permute.xlu1 %v4640_v48 }
 0x11c   : > { %834 = vrot.lane.b32.xlu1 %v2612_v26, %s2471_s30  ;;  %998 = vperm.xlu0 %2374, %v2560_v6  }
 0x11d   : > { %v2817_v19 = vpop.permute.xlu1 %479  ;;  %v2819_v20 = vpop.permute.xlu0 %483 }
 0x120   : > { %838 = vrot.lane.b32.xlu1 %v2620_v32, %s2471_s30  ;;  %1015 = vrot.lane.b32.xlu0 %v2612_v26, %s2481_s11 }
 0x121   : > { %v2825_v21 = vpop.permute.xlu1 %481  ;;  %v2827_v22 = vpop.permute.xlu0 %522  ;;  %2377 = vset.pattern.permute.xlu0 %v4682_v23 }
 0x124   : > { %858 = vperm.xlu1 %2367, %v2555_v5   ;;  %1019 = vrot.lane.b32.xlu0 %v2620_v32, %s2481_s11 }
 0x125   : > { %v2833_v24 = vpop.permute.xlu1 %485  ;;  %v2835_v27 = vpop.permute.xlu0 %526 }
 0x128   : > { %869 = vrot.lane.b32.xlu1 %v2610_v25, %s4699_s7  ;;  %1039 = vperm.xlu0 %2377, %v2555_v5  }
 0x129   : > { %v2840_v28 = vpop.permute.xlu1 %520  ;;  %2368 = vset.pattern.permute.xlu1 %v4642_v53  ;;  %v2843_v29 = vpop.permute.xlu0 %565 }
 0x12c   : > { %873 = vrot.lane.b32.xlu1 %v2618_v31, %s4699_s7  ;;  %1054 = vrot.lane.b32.xlu0 %v2618_v31, %s2483_s12 }
 0x12d   : > { %v2849_v30 = vpop.permute.xlu1 %524  ;;  %2378 = vset.pattern.permute.xlu0 %v4674_v45  ;;  %v2852_v48 = vpop.permute.xlu0 %600 }
 0x130   : > { %891 = vperm.xlu1 %2368, %v2560_v6   ;;  %1072 = vperm.xlu0 %2378, %v2560_v6  }
 0x131   : > { %v2856_v53 = vpop.permute.xlu1 %561  ;;  %v2866_v16 = vpop.permute.xlu0 %604 }
 0x134   : > { %906 = vrot.lane.b32.xlu1 %v2610_v25, %s4687_s8  ;;  %1089 = vrot.lane.b32.xlu0 %v2612_v26, %s2485_s14 }
 0x135   : > { %v2862_v42 = vpop.permute.xlu1 %563  ;;  %2381 = vset.pattern.permute.xlu0 %v4672_v37  ;;  %2371 = vset.pattern.permute.xlu1 %v4656_v58  ;;  %v2874_v14 = vpop.permute.xlu0 %639 }
 0x138   : > { %908 = vrot.lane.b32.xlu1 %v2612_v26, %s4687_s8  ;;  %1093 = vrot.lane.b32.xlu0 %v2620_v32, %s2485_s14 }
 0x139   : > { %v2872_v15 = vpop.permute.xlu1 %567  ;;  %v2887_v11 = vpop.permute.xlu0 %670 }
 0x13a   : > { %4785 = vst [vmem:[#allocation9_spill] sm:$0xff] %v2887_v11 }
 0x13c   : > { %912 = vrot.lane.b32.xlu1 %v2620_v32, %s4687_s8  ;;  %1113 = vperm.xlu0 %2381, %v2555_v5   ;;  %s4768_s8 = smov 94  }
 0x13d   : > { %v2879_v13 = vpop.permute.xlu1 %598  ;;  %v2895_v9 = vpop.permute.xlu0 %674 }
 0x140   : > { %932 = vperm.xlu1 %2371, %v2555_v5   ;;  %1128 = vrot.lane.b32.xlu0 %v2618_v31, %s2487_s15 }
 0x141   : > { %v2884_v58 = vpop.permute.xlu1 %602  ;;  %2382 = vset.pattern.permute.xlu0 %v4668_v12 }
 0x144   : > { %943 = vrot.lane.b32.xlu1 %v2610_v25, %s4676_s9  ;;  %1146 = vperm.xlu0 %2382, %v2560_v6  }
 0x145   : > { %v2892_v10 = vpop.permute.xlu1 %635  ;;  %2372 = vset.pattern.permute.xlu1 %v4670_v63  ;;  %v2907_v63 = vpop.permute.xlu0 %709 }
 0x146   : > { %4787 = vst [vmem:[#allocation11_spill] sm:$0xff] %v2907_v63 }
 0x148   : > { %947 = vrot.lane.b32.xlu1 %v2618_v31, %s4676_s9  ;;  %1163 = vrot.lane.b32.xlu0 %v2612_v26, %s2489_s16  ;;  %s4770_s9 = smov 95  }
 0x149   : > { %2385 = vset.pattern.permute.xlu0 %v4678_v7  ;;  %v2902_v12 = vpop.permute.xlu1 %637  ;;  %v4689_v7 = vmov 23  }
 0x14a   : > { %4786 = vst [vmem:[#allocation10_spill] sm:$0xff] %v2902_v12 }
 0x14c   : > { %965 = vperm.xlu1 %2372, %v2560_v6   ;;  %1167 = vrot.lane.b32.xlu0 %v2620_v32, %s2489_s16 }
 0x14d   : > { %v2909_v37 = vpop.permute.xlu1 %641 }
 0x150   : > { %980 = vrot.lane.b32.xlu1 %v2610_v25, %s4697_s10  ;;  %1183 = vperm.xlu0 %2385, %v2555_v5  }
 0x151   : > { %2375 = vset.pattern.permute.xlu1 %v4684_v18  ;;  %v2922_v2 = vpop.permute.xlu1 %668 }
 0x152   : > { %v2915_v45 = vpop.permute.xlu0 %727 }
 0x153   : > { %4788 = vst [vmem:[#allocation12_spill] sm:$0xff] %v2915_v45 }
 0x154   : > { %982 = vrot.lane.b32.xlu1 %v2612_v26, %s4697_s10  ;;  %1198 = vrot.lane.b32.xlu0 %v2618_v31, %s4770_s9 }
 0x155   : > { %2386 = vset.pattern.permute.xlu0 %v4689_v7  ;;  %v2931_v45 = vpop.permute.xlu1 %672  ;;  %v4693_v7 = vmov 24  }
 0x156   : > { %v2924_v23 = vpop.permute.xlu0 %744 }
 0x157   : > { %4789 = vst [vmem:[#allocation13_spill] sm:$0xff] %v2924_v23  ;;  %v4792_v23 = vmov 18  }
 0x158   : > { %986 = vrot.lane.b32.xlu1 %v2620_v32, %s4697_s10  ;;  %1216 = vperm.xlu0 %2386, %v2560_v6  }
 0x15a   : > { %v2929_v18 = vpop.permute.xlu0 %748 }
 0x15b   : > { %4790 = vst [vmem:[#allocation14_spill] sm:$0xff] %v2929_v18  ;;  %v2944_v18 = vpop.permute.xlu1 %705 }
 0x15c   : > { %1002 = vperm.xlu1 %2375, %v2555_v5   ;;  %1233 = vrot.lane.b32.xlu0 %v2612_v26, %s4768_s8  ;;  %4793 = vst [vmem:[#allocation16_spill] sm:$0xff] %v2944_v18  ;;  %v4799_v18 = vmov 19  }
 0x15d   : > { %2389 = vset.pattern.permute.xlu0 %v4693_v7 }
 0x15e   : > { %v2937_v54 = vpop.permute.xlu0 %768 }
 0x15f   : > { %4791 = vst [vmem:[#allocation15_spill] sm:$0xff] %v2937_v54  ;;  %v2953_v54 = vpop.permute.xlu1 %707 }
 0x160   : > { %1013 = vrot.lane.b32.xlu1 %v2610_v25, %s2481_s11  ;;  %1237 = vrot.lane.b32.xlu0 %v2620_v32, %s4768_s8  ;;  %4796 = vst [vmem:[#allocation19_spill] sm:$0xff] %v2953_v54 }
 0x161   : > { %2376 = vset.pattern.permute.xlu1 %v4792_v23  ;;  %v346_v23 = vld [vmem:[%s4636_s4] sm:$0xff] }
 0x162   : > { %v2946_v63 = vpop.permute.xlu0 %783 }
 0x163   : > { %4794 = vst [vmem:[#allocation17_spill] sm:$0xff] %v2946_v63 }
 0x164   : > { %1017 = vrot.lane.b32.xlu1 %v2618_v31, %s2481_s11  ;;  %1257 = vperm.xlu0 %2389, %v2555_v5  }
 0x166   : > { %v2951_v7 = vpop.permute.xlu0 %801 }
 0x167   : > { %4795 = vst [vmem:[#allocation18_spill] sm:$0xff] %v2951_v7  ;;  %v2966_v7 = vpop.permute.xlu1 %711 }
 0x168   : > { %1035 = vperm.xlu1 %2376, %v2560_v6   ;;  %2390 = vset.pattern.permute.xlu0 %v4797_v55 }
 0x169   : > { %379 = vperm.xlu0 %2390, %v2560_v6  }
 0x16b   : > { %v2961_v63 = vpop.permute.xlu0 %821 }
 0x16c   : > { %4798 = vst [vmem:[#allocation20_spill] sm:$0xff] %v2961_v63  ;;  %1050 = vrot.lane.b32.xlu1 %v2610_v25, %s2483_s12 }
 0x16d   : > { %393 = vperm.xlu0 %2390, %v346_v23   ;;  %2379 = vset.pattern.permute.xlu1 %v4799_v18 }
 0x16f   : > { %v2968_v54 = vpop.permute.xlu0 %836 }
 0x170   : > { %4800 = vst [vmem:[#allocation21_spill] sm:$0xff] %v2968_v54  ;;  %1052 = vrot.lane.b32.xlu1 %v2612_v26, %s2483_s12  ;;  %v4807_v54 = vmov 20  }
 0x172   : > { %v2972_v52 = vpop.permute.xlu1 %731 }
 0x173   : > { %4801 = vst [vmem:[#allocation22_spill] sm:$0xff] %v2972_v52  ;;  %v2974_v11 = vpop.permute.xlu0 %854 }
 0x174   : > { %4802 = vst [vmem:[#allocation23_spill] sm:$0xff] %v2974_v11  ;;  %1056 = vrot.lane.b32.xlu1 %v2620_v32, %s2483_s12 }
 0x176   : > { %v2978_v63 = vpop.permute.xlu1 %742 }
 0x177   : > { %4803 = vst [vmem:[#allocation24_spill] sm:$0xff] %v2978_v63  ;;  %v2980_v12 = vpop.permute.xlu0 %871 }
 0x178   : > { %4804 = vst [vmem:[#allocation25_spill] sm:$0xff] %v2980_v12  ;;  %1076 = vperm.xlu1 %2379, %v2555_v5  }
 0x17a   : > { %v2983_v23 = vpop.permute.xlu1 %746 }
 0x17b   : > { %4805 = vst [vmem:[#allocation26_spill] sm:$0xff] %v2983_v23  ;;  %v2985_v18 = vpop.permute.xlu0 %875 }
 0x17c   : > { %4806 = vst [vmem:[#allocation27_spill] sm:$0xff] %v2985_v18  ;;  %1087 = vrot.lane.b32.xlu1 %v2610_v25, %s2485_s14 }
 0x17d   : > { %2380 = vset.pattern.permute.xlu1 %v4807_v54  ;;  %v4814_v54 = vmov 21  }
 0x17e   : > { %v2990_v52 = vpop.permute.xlu1 %764 }
 0x17f   : > { %4808 = vst [vmem:[#allocation28_spill] sm:$0xff] %v2990_v52  ;;  %v2992_v11 = vpop.permute.xlu0 %895 }
 0x180   : > { %4809 = vst [vmem:[#allocation29_spill] sm:$0xff] %v2992_v11  ;;  %1091 = vrot.lane.b32.xlu1 %v2618_v31, %s2485_s14 }
 0x182   : > { %v2996_v63 = vpop.permute.xlu1 %779 }
 0x183   : > { %4810 = vst [vmem:[#allocation30_spill] sm:$0xff] %v2996_v63  ;;  %v2998_v12 = vpop.permute.xlu0 %910 }
 0x184   : > { %4811 = vst [vmem:[#allocation31_spill] sm:$0xff] %v2998_v12  ;;  %1109 = vperm.xlu1 %2380, %v2560_v6  }
 0x186   : > { %v3001_v23 = vpop.permute.xlu1 %781 }
 0x187   : > { %4812 = vst [vmem:[#allocation32_spill] sm:$0xff] %v3001_v23  ;;  %v3003_v18 = vpop.permute.xlu0 %928 }
 0x188   : > { %4813 = vst [vmem:[#allocation33_spill] sm:$0xff] %v3003_v18  ;;  %1124 = vrot.lane.b32.xlu1 %v2610_v25, %s2487_s15 }
 0x189   : > { %2383 = vset.pattern.permute.xlu1 %v4814_v54 }
 0x18a   : > { %v3008_v52 = vpop.permute.xlu1 %785 }
 0x18b   : > { %4815 = vst [vmem:[#allocation34_spill] sm:$0xff] %v3008_v52  ;;  %v3010_v11 = vpop.permute.xlu0 %945 }
 0x18c   : > { %4816 = vst [vmem:[#allocation35_spill] sm:$0xff] %v3010_v11  ;;  %1126 = vrot.lane.b32.xlu1 %v2612_v26, %s2487_s15  ;;  %v4823_v11 = vmov 22  }
 0x18e   : > { %v3014_v63 = vpop.permute.xlu1 %805 }
 0x18f   : > { %4817 = vst [vmem:[#allocation36_spill] sm:$0xff] %v3014_v63  ;;  %v3016_v12 = vpop.permute.xlu0 %949 }
 0x190   : > { %4818 = vst [vmem:[#allocation37_spill] sm:$0xff] %v3016_v12  ;;  %1130 = vrot.lane.b32.xlu1 %v2620_v32, %s2487_s15 }
 0x193   : > { %v3020_v18 = vpop.permute.xlu1 %817  ;;  %v3022_v23 = vpop.permute.xlu0 %969 }
 0x194   : > { %4819 = vst [vmem:[#allocation38_spill] sm:$0xff] %v3020_v18  ;;  %4820 = vst [vmem:[#allocation39_spill] sm:$0xff] %v3022_v23  ;;  %1150 = vperm.xlu1 %2383, %v2555_v5  }
 0x197   : > { %v3025_v54 = vpop.permute.xlu1 %832  ;;  %v3027_v52 = vpop.permute.xlu0 %984 }
 0x198   : > { %4821 = vst [vmem:[#allocation40_spill] sm:$0xff] %v3025_v54  ;;  %4822 = vst [vmem:[#allocation41_spill] sm:$0xff] %v3027_v52  ;;  %1161 = vrot.lane.b32.xlu1 %v2610_v25, %s2489_s16 }
 0x199   : > { %2384 = vset.pattern.permute.xlu1 %v4823_v11  ;;  %v4830_v11 = vmov 23  }
 0x19b   : > { %v3032_v63 = vpop.permute.xlu1 %834  ;;  %v3034_v12 = vpop.permute.xlu0 %998 }
 0x19c   : > { %4824 = vst [vmem:[#allocation42_spill] sm:$0xff] %v3032_v63  ;;  %4825 = vst [vmem:[#allocation43_spill] sm:$0xff] %v3034_v12  ;;  %1165 = vrot.lane.b32.xlu1 %v2618_v31, %s2489_s16 }
 0x19f   : > { %v3038_v18 = vpop.permute.xlu1 %838  ;;  %v3040_v23 = vpop.permute.xlu0 %1015 }
 0x1a0   : > { %4826 = vst [vmem:[#allocation44_spill] sm:$0xff] %v3038_v18  ;;  %4827 = vst [vmem:[#allocation45_spill] sm:$0xff] %v3040_v23  ;;  %1179 = vperm.xlu1 %2384, %v2560_v6  }
 0x1a3   : > { %v3043_v54 = vpop.permute.xlu1 %858  ;;  %v3045_v52 = vpop.permute.xlu0 %1019 }
 0x1a4   : > { %4828 = vst [vmem:[#allocation46_spill] sm:$0xff] %v3043_v54  ;;  %4829 = vst [vmem:[#allocation47_spill] sm:$0xff] %v3045_v52  ;;  %1194 = vrot.lane.b32.xlu1 %v2610_v25, %s4770_s9 }
 0x1a5   : > { %2387 = vset.pattern.permute.xlu1 %v4830_v11 }
 0x1a7   : > { %v3050_v63 = vpop.permute.xlu1 %869  ;;  %v3052_v12 = vpop.permute.xlu0 %1039 }
 0x1a8   : > { %4831 = vst [vmem:[#allocation48_spill] sm:$0xff] %v3050_v63  ;;  %4832 = vst [vmem:[#allocation49_spill] sm:$0xff] %v3052_v12  ;;  %1196 = vrot.lane.b32.xlu1 %v2612_v26, %s4770_s9  ;;  %v4839_v12 = vmov 24  }
 0x1ab   : > { %v3056_v18 = vpop.permute.xlu1 %873  ;;  %v3058_v23 = vpop.permute.xlu0 %1054 }
 0x1ac   : > { %4833 = vst [vmem:[#allocation50_spill] sm:$0xff] %v3056_v18  ;;  %4834 = vst [vmem:[#allocation51_spill] sm:$0xff] %v3058_v23  ;;  %1200 = vrot.lane.b32.xlu1 %v2620_v32, %s4770_s9 }
 0x1af   : > { %v3062_v52 = vpop.permute.xlu1 %891  ;;  %v3064_v54 = vpop.permute.xlu0 %1072 }
 0x1b0   : > { %4835 = vst [vmem:[#allocation52_spill] sm:$0xff] %v3062_v52  ;;  %4836 = vst [vmem:[#allocation53_spill] sm:$0xff] %v3064_v54  ;;  %1220 = vperm.xlu1 %2387, %v2555_v5  }
 0x1b3   : > { %v3067_v11 = vpop.permute.xlu1 %906  ;;  %v3069_v63 = vpop.permute.xlu0 %1089 }
 0x1b4   : > { %4837 = vst [vmem:[#allocation54_spill] sm:$0xff] %v3067_v11  ;;  %4838 = vst [vmem:[#allocation55_spill] sm:$0xff] %v3069_v63  ;;  %1231 = vrot.lane.b32.xlu1 %v2610_v25, %s4768_s8 }
 0x1b5   : > { %2388 = vset.pattern.permute.xlu1 %v4839_v12 }
 0x1b7   : > { %v3074_v18 = vpop.permute.xlu1 %908  ;;  %v3076_v23 = vpop.permute.xlu0 %1093 }
 0x1b8   : > { %4840 = vst [vmem:[#allocation56_spill] sm:$0xff] %v3074_v18  ;;  %4841 = vst [vmem:[#allocation57_spill] sm:$0xff] %v3076_v23  ;;  %1235 = vrot.lane.b32.xlu1 %v2618_v31, %s4768_s8 }
 0x1bb   : > { %v3080_v52 = vpop.permute.xlu1 %912  ;;  %v3082_v54 = vpop.permute.xlu0 %1113 }
 0x1bc   : > { %4842 = vst [vmem:[#allocation58_spill] sm:$0xff] %v3080_v52  ;;  %4843 = vst [vmem:[#allocation59_spill] sm:$0xff] %v3082_v54  ;;  %1253 = vperm.xlu1 %2388, %v2560_v6   ;;  %v4744_v54 = vlaneseq }
 0x1bf   : > { %v3085_v5 = vpop.permute.xlu1 %932  ;;  %v3087_v63 = vpop.permute.xlu0 %1128 }
 0x1c0   : > { %4844 = vst [vmem:[#allocation60_spill] sm:$0xff] %v3085_v5  ;;  %4845 = vst [vmem:[#allocation61_spill] sm:$0xff] %v3087_v63  ;;  %2391 = vset.pattern.permute.xlu1 %v4797_v55  ;;  %v273_v63 = vand.u32 127, %v4744_v54 }
 0x1c3   : > { %v3090_v12 = vpop.permute.xlu1 %943  ;;  %v3092_v11 = vpop.permute.xlu0 %1146 }
 0x1c4   : > { %4846 = vst [vmem:[#allocation62_spill] sm:$0xff] %v3090_v12  ;;  %4847 = vst [vmem:[#allocation63_spill] sm:$0xff] %v3092_v11  ;;  %v274_v11 = vadd.s32 128, %v273_v63 }
 0x1c7   : > { %v3094_v23 = vpop.permute.xlu1 %947  ;;  %v3096_v18 = vpop.permute.xlu0 %1163 }
 0x1c8   : > { %4848 = vst [vmem:[#allocation64_spill] sm:$0xff] %v3094_v23  ;;  %4849 = vst [vmem:[#allocation65_spill] sm:$0xff] %v3096_v18  ;;  %v3115_v18 = vand.u32 15, %v273_v63 }
 0x1ca   : > { %vm299_vm1 = vcmp.ge.s32.totalorder %v3115_v18, 2  ;;  %vm301_vm4 = vcmp.ge.s32.totalorder %v3115_v18, 1  ;;  %vm303_vm7 = vcmp.lt.s32.totalorder %v3115_v18, 15  ;;  %vm305_vm11 = vcmp.lt.s32.totalorder %v3115_v18, 14 }
 0x1cb   : > { %v3098_v26 = vpop.permute.xlu1 %965  ;;  %v3100_v52 = vpop.permute.xlu0 %1167 }
 0x1cc   : > { %4850 = vst [vmem:[#allocation66_spill] sm:$0xff] %v3100_v52  ;;  %v3117_v52 = vand.u32 15, %v274_v11  ;;  %v421_v11 = vsel %vm4764_vm2, 0.0, %v2795_v1 }
 0x1ce   : > { %vm4767_vm3 = vcmp.ge.s32.totalorder %v3117_v52, 2  ;;  %vm302_vm5 = vcmp.ge.s32.totalorder %v3117_v52, 1  ;;  %vm304_vm9 = vcmp.lt.s32.totalorder %v3117_v52, 15  ;;  %vm306_vm13 = vcmp.lt.s32.totalorder %v3117_v52, 14 }
 0x1cf   : > { %v3102_v6 = vpop.permute.xlu1 %980  ;;  %v3104_v5 = vpop.permute.xlu0 %1183 }
 0x1d0   : > { %4851 = vst [vmem:[#allocation67_spill] sm:$0xff] %v3102_v6  ;;  %4852 = vst [vmem:[#allocation68_spill] sm:$0xff] %v3104_v5  ;;  %v368_v6 = vsel %vm360_vm0, 0.0, %v2779_v60 }
 0x1d1   : > { %v375_v63 = vsel %vm299_vm1, %v368_v6, 0.0  ;;  %v367_v6 = vsel %vm360_vm0, 0.0, %v2771_v57 }
 0x1d3   : > { %v3107_v55 = vpop.permute.xlu1 %982  ;;  %v3109_v12 = vpop.permute.xlu0 %1198 }
 0x1d4   : > { %4853 = vst [vmem:[#allocation69_spill] sm:$0xff] %v3107_v55  ;;  %4854 = vst [vmem:[#allocation70_spill] sm:$0xff] %v3109_v12  ;;  %v362_v12 = vsel %vm360_vm0, %v2779_v60, %v2777_v59  ;;  %v420_v55 = vsel %vm4764_vm2, 0.0, %v2787_v62 }
 0x1d5   : > { %v376_v60 = vsel %vm4767_vm3, %v362_v12, 0.0 }
 0x1d7   : > { %v3111_v25 = vpop.permute.xlu1 %986  ;;  %v3113_v23 = vpop.permute.xlu0 %1216 }
 0x1d8   : > { %4855 = vst [vmem:[#allocation71_spill] sm:$0xff] %v3111_v25  ;;  %4856 = vst [vmem:[#allocation72_spill] sm:$0xff] %v3113_v23  ;;  %v415_v23 = vsel %vm4764_vm2, %v2795_v1, %v2793_v0  ;;  %v428_v0 = vsel %vm301_vm4, %v421_v11, 0.0  ;;  %v414_v1 = vsel %vm4764_vm2, %v2787_v62, %v2785_v61  ;;  %v361_v61 = vsel %vm360_vm0, %v2771_v57, %v2769_v56 }
 0x1d9   : > { %v429_v12 = vsel %vm302_vm5, %v415_v23, 0.0  ;;  %v426_v62 = vsel %vm301_vm4, %v420_v55, 0.0  ;;  %v440_v23 = vmul.f32 %v2689_v35, %v428_v0  ;;  %v456_v56 = vsel %vm4761_vm6, %v2808_v8, %v2810_v17 }
 0x1da   : > { %v461_v57 = vsel %vm4761_vm6, 0.0, %v2800_v3  ;;  %v495_v0 = vsel %vm4753_vm8, 0.0, %v2819_v20  ;;  %v474_v25 = vmul.f32 %v2704_v39, %v456_v56  ;;  %vm1058_vm2 = vcmask 900096  }
 0x1db   : > { %v3121_v5 = vpop.permute.xlu1 %1002  ;;  %v3123_v54 = vpop.permute.xlu0 %1233 }
 0x1dc   : > { %4857 = vst [vmem:[#allocation73_spill] sm:$0xff] %v3121_v5  ;;  %4858 = vst [vmem:[#allocation74_spill] sm:$0xff] %v3123_v54  ;;  %v389_v5 = vmul.f32 %v2674_v33, %v375_v63  ;;  %v462_v63 = vsel %vm4761_vm6, 0.0, %v2808_v8  ;;  %v455_v8 = vsel %vm4761_vm6, %v2800_v3, %v2802_v4  ;;  %v502_v3 = vsel %vm303_vm7, %v495_v0, 0.0 }
 0x1dd   : > { %v473_v55 = vmul.f32 %v2704_v39, %v462_v63  ;;  %v488_v39 = vsel %vm4753_vm8, %v2817_v19, %v2825_v21  ;;  %vm1095_vm6 = vcmask 801792  }
 0x1de   : > { %v501_v0 = vsel %vm304_vm9, %v488_v39, 0.0 }
 0x1df   : > { %v3139_v54 = vpop.permute.xlu1 %1013  ;;  %v3141_v59 = vpop.permute.xlu0 %1237 }
 0x1e0   : > { %4859 = vst [vmem:[#allocation75_spill] sm:$0xff] %v3139_v54  ;;  %4860 = vst [vmem:[#allocation76_spill] sm:$0xff] %v3141_v59  ;;  %v390_v59 = vmul.f32 %v2674_v33, %v376_v60  ;;  %v373_v33 = vsel %vm299_vm1, %v367_v6, 0.0  ;;  %v403_v60 = vadd.f32 %v2684_v34, %v389_v5  ;;  %v489_v5 = vsel %vm4753_vm8, %v2819_v20, %v2833_v24 }
 0x1e1   : > { %v494_v20 = vsel %vm4753_vm8, 0.0, %v2817_v19  ;;  %v471_v24 = vmul.f32 %v2702_v38, %v461_v57  ;;  %v503_v4 = vsel %vm304_vm9, %v489_v5, 0.0  ;;  %v529_v19 = vsel %vm4752_vm10, %v2840_v28, %v2827_v22 }
 0x1e2   : > { %v404_v6 = vadd.f32 %v2684_v34, %v390_v59  ;;  %v444_v63 = vadd.f32 %v440_v23, %v403_v60  ;;  %v530_v22 = vsel %vm4752_vm10, %v2849_v30, %v2835_v27  ;;  %v570_v27 = vsel %vm4754_vm12, %v2856_v53, %v2862_v42 }
 0x1e3   : > { %v3163_v54 = vpop.permute.xlu1 %1017  ;;  %v3165_v11 = vpop.permute.xlu0 %1257  ;;  %vm4756_vm8 = vcmask 121856  }
 0x1e4   : > { %4861 = vst [vmem:[#allocation77_spill] sm:$0xff] %v3163_v54  ;;  %4862 = vst [vmem:[#allocation78_spill] sm:$0xff] %v3165_v11  ;;  %v427_v54 = vsel %vm302_vm5, %v414_v1, 0.0  ;;  %v441_v11 = vmul.f32 %v2689_v35, %v429_v12  ;;  %v438_v35 = vmul.f32 %v2691_v36, %v426_v62  ;;  %v374_v1 = vsel %vm4767_vm3, %v361_v61, 0.0 }
 0x1e5   : > { %v439_v12 = vmul.f32 %v2691_v36, %v427_v54  ;;  %v472_v61 = vmul.f32 %v2702_v38, %v455_v8  ;;  %v477_v36 = vadd.f32 %v473_v55, %v444_v63  ;;  %v536_v54 = vsel %vm4752_vm10, 0.0, %v2849_v30 }
 0x1e6   : > { %v445_v59 = vadd.f32 %v441_v11, %v404_v6  ;;  %v500_v62 = vsel %vm303_vm7, %v494_v20, 0.0  ;;  %v535_v11 = vsel %vm4752_vm10, 0.0, %v2840_v28  ;;  %v514_v38 = vmul.f32 %v2709_v40, %v502_v3 }
 0x1e7   : > { %v3196_v17 = vpop.permute.xlu1 %1035  ;;  %v515_v55 = vmul.f32 %v2709_v40, %v503_v4  ;;  %v543_v5 = vsel %vm305_vm11, %v536_v54, 0.0  ;;  %v541_v8 = vsel %vm305_vm11, %v535_v11, 0.0  ;;  %v577_v40 = vsel %vm4754_vm12, 0.0, %v2843_v29 }
 0x1e8   : > { %v380_v34 = vpop.permute.xlu0 %379  ;;  %v478_v57 = vadd.f32 %v474_v25, %v445_v59  ;;  %v512_v25 = vmul.f32 %v2711_v41, %v500_v62  ;;  %v542_v28 = vsel %vm306_vm13, %v529_v19, 0.0  ;;  %v518_v59 = vadd.f32 %v514_v38, %v477_v36 }
 0x1e9   : > { %v387_v23 = vmul.f32 %v380_v34, %v373_v33  ;;  %v388_v60 = vmul.f32 %v380_v34, %v374_v1  ;;  %v576_v1 = vsel %vm4754_vm12, 0.0, %v2856_v53  ;;  %v513_v3 = vmul.f32 %v2711_v41, %v501_v0 }
 0x1ea   : > { %v519_v4 = vadd.f32 %v515_v55, %v478_v57  ;;  %v555_v39 = vmul.f32 %v2723_v44, %v543_v5  ;;  %v544_v54 = vsel %vm306_vm13, %v530_v22, 0.0  ;;  %v580_v36 = vsel %vm299_vm1, %v577_v40, 0.0 }
 0x1eb   : > { %v3219_v56 = vpop.permute.xlu1 %1050  ;;  %v578_v41 = vsel %vm299_vm1, %v576_v1, 0.0  ;;  %v571_v11 = vsel %vm4754_vm12, %v2843_v29, %v2872_v15  ;;  %v614_v57 = vsel %vm4755_vm14, 0.0, %v2884_v58  ;;  %v607_v15 = vsel %vm4755_vm14, %v2879_v13, %v2852_v48 }
 0x1ec   : > { %v394_v21 = vpop.permute.xlu0 %393  ;;  %v590_v38 = vmul.f32 %v2731_v47, %v578_v41  ;;  %v592_v19 = vmul.f32 %v2729_v46, %v580_v36  ;;  %v608_v0 = vsel %vm4755_vm14, %v2884_v58, %v2866_v16  ;;  %vm4758_vm10 = vcmask 113664  }
 0x1ed   : > { %v401_v33 = vadd.f32 %v394_v21, %v387_v23  ;;  %v402_v6 = vadd.f32 %v394_v21, %v388_v60  ;;  %v613_v23 = vsel %vm4755_vm14, 0.0, %v2879_v13  ;;  %v579_v60 = vsel %vm4767_vm3, %v570_v27, 0.0  ;;  %v4863_v27 = vld [vmem:[#allocation10_spill] sm:$0xff] }
 0x1ee   : > { %v615_v21 = vsel %vm301_vm4, %v613_v23, 0.0  ;;  %v591_v5 = vmul.f32 %v2731_v47, %v579_v60  ;;  %v617_v13 = vsel %vm301_vm4, %v614_v57, 0.0  ;;  %vm4760_vm12 = vcmask 7168   ;;  %v4866_v23 = vld [vmem:[#allocation16_spill] sm:$0xff] }
 0x1ef   : > { %v442_v63 = vadd.f32 %v438_v35, %v401_v33  ;;  %v443_v20 = vadd.f32 %v439_v12, %v402_v6  ;;  %v3242_v34 = vpop.permute.xlu1 %1052  ;;  %v553_v35 = vmul.f32 %v2721_v43, %v541_v8  ;;  %v554_v12 = vmul.f32 %v2721_v43, %v542_v28  ;;  %v4867_v60 = vld [vmem:[#allocation8_spill] sm:$0xff] }
 0x1f0   : > { %v559_v43 = vadd.f32 %v555_v39, %v518_v59  ;;  %v616_v8 = vsel %vm302_vm5, %v607_v15, 0.0  ;;  %v627_v47 = vmul.f32 %v2739_v49, %v615_v21  ;;  %v618_v58 = vsel %vm302_vm5, %v608_v0, 0.0 }
 0x1f1   : > { %v475_v30 = vadd.f32 %v471_v24, %v442_v63  ;;  %v476_v62 = vadd.f32 %v472_v61, %v443_v20  ;;  %v556_v61 = vmul.f32 %v2723_v44, %v544_v54  ;;  %v581_v44 = vsel %vm4767_vm3, %v571_v11, 0.0 }
 0x1f2   : > { %v596_v40 = vadd.f32 %v592_v19, %v559_v43  ;;  %v593_v16 = vmul.f32 %v2729_v46, %v581_v44  ;;  %v629_v28 = vmul.f32 %v2741_v50, %v617_v13  ;;  %v650_v1 = vsel %vm4757_vm15, 0.0, %v2892_v10  ;;  %v4870_v19 = vld [vmem:[#allocation7_spill] sm:$0xff] }
 0x1f3   : > { %v516_v42 = vadd.f32 %v512_v25, %v475_v30  ;;  %v517_v53 = vadd.f32 %v513_v3, %v476_v62  ;;  %v3262_v24 = vpop.permute.xlu1 %1056  ;;  %v560_v6 = vadd.f32 %v556_v61, %v519_v4  ;;  %v651_v25 = vsel %vm4757_vm15, 0.0, %v2874_v14  ;;  %v4864_v30 = vld [vmem:[#allocation9_spill] sm:$0xff]  ;;  %v4865_v62 = vld [vmem:[#allocation6_spill] sm:$0xff] }
 0x1f4   : > { %v678_v63 = vsel %vm4756_vm8, %v2931_v45, %v2895_v9  ;;  %v684_v20 = vsel %vm4756_vm8, 0.0, %v2931_v45  ;;  %vm4759_vm14 = vcmask 15360   ;;  %v628_v46 = vmul.f32 %v2739_v49, %v616_v8  ;;  %v4871_v8 = vld [vmem:[#allocation17_spill] sm:$0xff] }
 0x1f5   : > { %v557_v29 = vadd.f32 %v553_v35, %v516_v42  ;;  %v558_v55 = vadd.f32 %v554_v12, %v517_v53  ;;  %v645_v59 = vsel %vm4757_vm15, %v2874_v14, %v2909_v37  ;;  %v683_v3 = vsel %vm4756_vm8, 0.0, %v2922_v2 }
 0x1f6   : > { %v662_v54 = vmul.f32 %v2749_v51, %v651_v25  ;;  %v630_v9 = vmul.f32 %v2741_v50, %v618_v58  ;;  %v644_v45 = vsel %vm4757_vm15, %v2892_v10, %v4863_v27  ;;  %v677_v49 = vsel %vm4756_vm8, %v2922_v2, %v4864_v30  ;;  %v4876_v30 = vld [vmem:[#allocation20_spill] sm:$0xff] }
 0x1f7   : > { %v594_v48 = vadd.f32 %v590_v38, %v557_v29  ;;  %v3284_v33 = vpop.permute.xlu1 %1076  ;;  %v595_v22 = vadd.f32 %v591_v5, %v558_v55  ;;  %v660_v14 = vmul.f32 %v4865_v62, %v650_v1  ;;  %v687_v37 = vsel %vm303_vm7, %v684_v20, 0.0  ;;  %v4869_v29 = vld [vmem:[#allocation11_spill] sm:$0xff]  ;;  %v4872_v1 = vld [vmem:[#allocation12_spill] sm:$0xff] }
 0x1f8   : > { %v688_v35 = vsel %vm304_vm9, %v678_v63, 0.0  ;;  %v597_v36 = vadd.f32 %v593_v16, %v560_v6  ;;  %v633_v41 = vadd.f32 %v629_v28, %v596_v40  ;;  %v663_v50 = vmul.f32 %v2749_v51, %v645_v59  ;;  %v4868_v51 = vld [vmem:[#allocation19_spill] sm:$0xff]  ;;  %v4873_v20 = vld [vmem:[#allocation24_spill] sm:$0xff]  ;;  %v4874_v59 = vld [vmem:[#allocation26_spill] sm:$0xff] }
 0x1f9   : > { %v631_v4 = vadd.f32 %v627_v47, %v594_v48  ;;  %v632_v12 = vadd.f32 %v628_v46, %v595_v22  ;;  %v685_v10 = vsel %vm303_vm7, %v683_v3, 0.0  ;;  %v661_v11 = vmul.f32 %v4865_v62, %v644_v45  ;;  %v4877_v62 = vld [vmem:[#allocation13_spill] sm:$0xff] }
 0x1fa   : > { %v686_v2 = vsel %vm304_vm9, %v677_v49, 0.0  ;;  %v720_v42 = vsel %vm4758_vm10, 0.0, %v4866_v23  ;;  %v634_v43 = vadd.f32 %v630_v9, %v597_v36  ;;  %v699_v57 = vmul.f32 %v4867_v60, %v687_v37  ;;  %v4875_v9 = vld [vmem:[#allocation14_spill] sm:$0xff] }
 0x1fb   : > { %v3308_v39 = vpop.permute.xlu1 %1087  ;;  %v664_v53 = vadd.f32 %v660_v14, %v631_v4  ;;  %v700_v38 = vmul.f32 %v4867_v60, %v688_v35  ;;  %v714_v15 = vsel %vm4758_vm10, %v4866_v23, %v4868_v51  ;;  %v721_v55 = vsel %vm4758_vm10, 0.0, %v4869_v29  ;;  %v4878_v37 = vld [vmem:[#allocation30_spill] sm:$0xff] }
 0x1fc   : > { %v697_v44 = vmul.f32 %v4870_v19, %v685_v10  ;;  %vm4763_vm8 = vcmask 1031168   ;;  %v665_v21 = vadd.f32 %v661_v11, %v632_v12  ;;  %v667_v0 = vadd.f32 %v663_v50, %v634_v43  ;;  %v4881_v43 = vld [vmem:[#allocation32_spill] sm:$0xff] }
 0x1fd   : > { %v698_v5 = vmul.f32 %v4870_v19, %v686_v2  ;;  %v722_v13 = vsel %vm305_vm11, %v720_v42, 0.0  ;;  %v666_v48 = vadd.f32 %v662_v54, %v633_v41  ;;  %v723_v6 = vsel %vm306_vm13, %v714_v15, 0.0  ;;  %v4879_v41 = vld [vmem:[#allocation22_spill] sm:$0xff]  ;;  %v4880_v42 = vld [vmem:[#allocation28_spill] sm:$0xff]  ;;  %v4883_v19 = vld [vmem:[#allocation25_spill] sm:$0xff] }
 0x1fe   : > { %v715_v25 = vsel %vm4758_vm10, %v4869_v29, %v2966_v7  ;;  %v795_v40 = vsel %vm4760_vm12, 0.0, %v4871_v8  ;;  %v701_v16 = vadd.f32 %v697_v44, %v664_v53  ;;  %v704_v22 = vadd.f32 %v700_v38, %v667_v0  ;;  %v4882_v29 = vld [vmem:[#allocation34_spill] sm:$0xff] }
 0x1ff   : > { %v3331_v61 = vpop.permute.xlu1 %1091  ;;  %v703_v58 = vadd.f32 %v699_v57, %v666_v48  ;;  %v724_v28 = vsel %vm305_vm11, %v721_v55, 0.0  ;;  %vm4762_vm15 = vcmask 1039360   ;;  %v734_v63 = vmul.f32 %v4872_v1, %v722_v13 }
 0x200   : > { %v757_v46 = vsel %vm4759_vm14, 0.0, %v4873_v20  ;;  %v758_v7 = vsel %vm4759_vm14, 0.0, %v4874_v59  ;;  %vm4765_vm10 = vcmask 924672   ;;  %v702_v3 = vadd.f32 %v698_v5, %v665_v21  ;;  %v4884_v21 = vld [vmem:[#allocation15_spill] sm:$0xff] }
 0x201   : > { %v735_v4 = vmul.f32 %v4872_v1, %v723_v6  ;;  %v725_v54 = vsel %vm306_vm13, %v715_v25, 0.0  ;;  %v752_v27 = vsel %vm4759_vm14, %v4874_v59, %v4875_v9  ;;  %v798_v45 = vsel %vm301_vm4, %v795_v40, 0.0  ;;  %v4885_v40 = vld [vmem:[#allocation27_spill] sm:$0xff]  ;;  %v4886_v1 = vld [vmem:[#allocation18_spill] sm:$0xff]  ;;  %v4887_v59 = vld [vmem:[#allocation36_spill] sm:$0xff] }
 0x202   : > { %v3370_v49 = vmul.f32 %v4876_v30, %v2618_v31  ;;  %v751_v14 = vsel %vm4759_vm14, %v4873_v20, %v4877_v62  ;;  %v794_v35 = vsel %vm4760_vm12, 0.0, %v4878_v37  ;;  %v738_v12 = vadd.f32 %v734_v63, %v701_v16 }
 0x203   : > { %v3351_v47 = vpop.permute.xlu1 %1109  ;;  %v736_v50 = vmul.f32 %v4879_v41, %v724_v28  ;;  %v737_v10 = vmul.f32 %v4879_v41, %v725_v54  ;;  %v761_v11 = vsel %vm299_vm1, %v758_v7, 0.0  ;;  %v759_v2 = vsel %vm299_vm1, %v757_v46, 0.0 }
 0x204   : > { %v762_v23 = vsel %vm4767_vm3, %v752_v27, 0.0  ;;  %v771_v53 = vmul.f32 %v4880_v42, %v759_v2  ;;  %v788_v60 = vsel %vm4760_vm12, %v4878_v37, %v4881_v43  ;;  %vm1021_vm14 = vcmask 908288   ;;  %v4890_v37 = vld [vmem:[#allocation35_spill] sm:$0xff] }
 0x205   : > { %v739_v57 = vadd.f32 %v735_v4, %v702_v3  ;;  %v827_v38 = vmul.f32 %v4876_v30, %v2620_v32  ;;  %v760_v51 = vsel %vm4767_vm3, %v751_v14, 0.0  ;;  %v796_v15 = vsel %vm301_vm4, %v794_v35, 0.0  ;;  %v4888_v3 = vld [vmem:[#allocation42_spill] sm:$0xff]  ;;  %v4889_v4 = vld [vmem:[#allocation40_spill] sm:$0xff] }
 0x206   : > { %v789_v55 = vsel %vm4760_vm12, %v4871_v8, %v4882_v29  ;;  %v884_v44 = vsel %vm4763_vm8, %v4883_v19, 0.0  ;;  %v773_v0 = vmul.f32 %v4884_v21, %v761_v11  ;;  %v772_v5 = vmul.f32 %v4880_v42, %v760_v51  ;;  %v4894_v42 = vld [vmem:[#allocation44_spill] sm:$0xff]  ;;  %v4896_v29 = vld [vmem:[#allocation21_spill] sm:$0xff] }
 0x207   : > { %v3377_v36 = vpop.permute.xlu1 %1124  ;;  %v775_v13 = vadd.f32 %v771_v53, %v738_v12  ;;  %v740_v6 = vadd.f32 %v736_v50, %v703_v58  ;;  %v774_v25 = vmul.f32 %v4884_v21, %v762_v23  ;;  %v885_v16 = vsel %vm4763_vm8, %v4885_v40, 0.0  ;;  %v4891_v12 = vld [vmem:[#allocation37_spill] sm:$0xff]  ;;  %v4892_v50 = vld [vmem:[#allocation2_spill] sm:$0xff] }
 0x208   : > { %v797_v28 = vsel %vm302_vm5, %v788_v60, 0.0  ;;  %vm4766_vm12 = vcmask 932864   ;;  %v741_v8 = vadd.f32 %v737_v10, %v704_v22  ;;  %v808_v63 = vmul.f32 %v4886_v1, %v796_v15  ;;  %v4893_v10 = vld [vmem:[#allocation38_spill] sm:$0xff]  ;;  %v4895_v60 = vld [vmem:[#allocation29_spill] sm:$0xff] }
 0x209   : > { %v799_v20 = vsel %vm302_vm5, %v789_v55, 0.0  ;;  %v776_v46 = vadd.f32 %v772_v5, %v739_v57  ;;  %v810_v7 = vmul.f32 %v4887_v59, %v798_v45  ;;  %v841_v54 = vsel %vm4762_vm15, %v4889_v4, %v4888_v3 }
 0x20a   : > { %v811_v58 = vmul.f32 %v4887_v59, %v799_v20  ;;  %v887_v9 = vsel %vm306_vm13, %v884_v44, 0.0  ;;  %v889_v22 = vsel %vm306_vm13, %v885_v16, 0.0  ;;  %v809_v27 = vmul.f32 %v4886_v1, %v797_v28  ;;  %v4897_v44 = vld [vmem:[#allocation3_spill] sm:$0xff] }
 0x20b   : > { %v3404_v48 = vpop.permute.xlu1 %1126  ;;  %v777_v30 = vadd.f32 %v773_v0, %v740_v6  ;;  %v812_v62 = vadd.f32 %v808_v63, %v775_v13  ;;  %v958_v45 = vsel %vm4765_vm10, %v4890_v37, 0.0  ;;  %v778_v35 = vadd.f32 %v774_v25, %v741_v8  ;;  %v4898_v16 = vld [vmem:[#allocation23_spill] sm:$0xff]  ;;  %v4899_v8 = vld [vmem:[#allocation45_spill] sm:$0xff] }
 0x20c   : > { %v959_v41 = vsel %vm4765_vm10, %v4891_v12, 0.0  ;;  %v824_v11 = vmul.f32 %v4893_v10, %v4892_v50  ;;  %v847_v2 = vsel %vm4762_vm15, %v4888_v3, 0.0  ;;  %v849_v23 = vsel %vm303_vm7, %v841_v54, 0.0 }
 0x20d   : > { %v848_v53 = vsel %vm4762_vm15, %v4894_v42, 0.0  ;;  %v813_v43 = vadd.f32 %v809_v27, %v776_v46  ;;  %v901_v57 = vmul.f32 %v4895_v60, %v889_v22  ;;  %v814_v51 = vadd.f32 %v810_v7, %v777_v30  ;;  %v4900_v46 = vld [vmem:[#allocation48_spill] sm:$0xff]  ;;  %v4901_v7 = vld [vmem:[#allocation50_spill] sm:$0xff] }
 0x20e   : > { %v815_v15 = vadd.f32 %v811_v58, %v778_v35  ;;  %v842_v55 = vsel %vm4762_vm15, %v4896_v29, %v4894_v42  ;;  %v825_v21 = vmul.f32 %v4893_v10, %v4897_v44  ;;  %v963_v0 = vsel %vm302_vm5, %v959_v41, 0.0  ;;  %v4902_v22 = vld [vmem:[#allocation46_spill] sm:$0xff]  ;;  %v4904_v41 = vld [vmem:[#allocation56_spill] sm:$0xff] }
 0x20f   : > { %v3424_v14 = vpop.permute.xlu1 %1130  ;;  %v3448_v5 = vsel %vm302_vm5, %v958_v45, 0.0  ;;  %v828_v13 = vadd.f32 %v824_v11, %v812_v62  ;;  %v850_v25 = vsel %vm304_vm9, %v847_v2, 0.0  ;;  %v861_v28 = vmul.f32 %v4898_v16, %v849_v23  ;;  %v4903_v62 = vld [vmem:[#allocation39_spill] sm:$0xff]  ;;  %v4905_v10 = vld [vmem:[#allocation54_spill] sm:$0xff] }
 0x210   : > { %v1028_v1 = vsel %vm1021_vm14, %v4899_v8, 0.0  ;;  %v852_v63 = vsel %vm304_vm9, %v848_v53, 0.0  ;;  %v851_v20 = vsel %vm303_vm7, %v842_v55, 0.0  ;;  %v878_v59 = vsel %vm4763_vm8, %v4900_v46, %v4883_v19  ;;  %v4906_v2 = vld [vmem:[#allocation58_spill] sm:$0xff]  ;;  %v4907_v53 = vld [vmem:[#allocation47_spill] sm:$0xff] }
 0x211   : > { %v879_v58 = vsel %vm4763_vm8, %v4901_v7, %v4885_v40  ;;  %v829_v3 = vadd.f32 %v825_v21, %v813_v43  ;;  %v830_v4 = vadd.f32 %v3370_v49, %v814_v51  ;;  %v831_v54 = vadd.f32 %v827_v38, %v815_v15  ;;  %v4908_v51 = vld [vmem:[#allocation52_spill] sm:$0xff] }
 0x212   : > { %v863_v27 = vmul.f32 %v4902_v22, %v851_v20  ;;  %v864_v30 = vmul.f32 %v4902_v22, %v852_v63  ;;  %v3471_v45 = vmul.f32 %v4903_v62, %v963_v0  ;;  %v862_v35 = vmul.f32 %v4898_v16, %v850_v25  ;;  %v4909_v25 = vld [vmem:[#allocation31_spill] sm:$0xff]  ;;  %v4913_v22 = vld [vmem:[#allocation33_spill] sm:$0xff] }
 0x213   : > { %v3450_v6 = vpop.permute.xlu1 %1150  ;;  %v915_v19 = vsel %vm4766_vm12, %v4905_v10, %v4904_v41  ;;  %vm988_vm15 = vcmask 916480   ;;  %v865_v11 = vadd.f32 %v861_v28, %v828_v13  ;;  %v886_v49 = vsel %vm305_vm11, %v878_v59, 0.0  ;;  %v4910_v59 = vld [vmem:[#allocation55_spill] sm:$0xff] }
 0x214   : > { %v888_v38 = vsel %vm305_vm11, %v879_v58, 0.0  ;;  %v922_v23 = vsel %vm4766_vm12, %v4906_v2, 0.0  ;;  %v3487_v42 = vsel %vm304_vm9, %v1028_v1, 0.0  ;;  %v1029_v43 = vsel %vm1021_vm14, %v4907_v53, 0.0 }
 0x215   : > { %v898_v15 = vmul.f32 %v4908_v51, %v886_v49  ;;  %v921_v29 = vsel %vm4766_vm12, %v4904_v41, 0.0  ;;  %vm4777_vm8 = vcmask 785408   ;;  %v866_v55 = vadd.f32 %v862_v35, %v829_v3  ;;  %v4911_v3 = vld [vmem:[#allocation57_spill] sm:$0xff]  ;;  %v4915_v49 = vld [vmem:[#allocation64_spill] sm:$0xff] }
 0x216   : > { %v867_v21 = vadd.f32 %v863_v27, %v830_v4  ;;  %v868_v0 = vadd.f32 %v864_v30, %v831_v54  ;;  %v923_v13 = vsel %vm299_vm1, %v915_v19, 0.0  ;;  %v916_v16 = vsel %vm4766_vm12, %v4909_v25, %v4906_v2  ;;  %v4912_v54 = vld [vmem:[#allocation60_spill] sm:$0xff]  ;;  %v4914_v30 = vld [vmem:[#allocation62_spill] sm:$0xff]  ;;  %v4916_v2 = vld [vmem:[#allocation49_spill] sm:$0xff] }
 0x217   : > { %v3477_v40 = vpop.permute.xlu1 %1161  ;;  %v900_v28 = vmul.f32 %v4895_v60, %v888_v38  ;;  %v899_v1 = vmul.f32 %v4908_v51, %v887_v9  ;;  %v926_v63 = vsel %vm4767_vm3, %v922_v23, 0.0  ;;  %v902_v20 = vadd.f32 %v898_v15, %v865_v11 }
 0x218   : > { %v1102_v7 = vsel %vm1095_vm6, %v4910_v59, 0.0  ;;  %v924_v58 = vsel %vm4767_vm3, %v921_v29, 0.0  ;;  %v1103_v4 = vsel %vm1095_vm6, %v4911_v3, 0.0  ;;  %v938_v60 = vmul.f32 %v4912_v54, %v926_v63 }
 0x219   : > { %v935_v9 = vmul.f32 %v4913_v22, %v923_v13  ;;  %v925_v27 = vsel %vm299_vm1, %v916_v16, 0.0  ;;  %v952_v35 = vsel %vm4765_vm10, %v4914_v30, %v4890_v37  ;;  %v903_v41 = vadd.f32 %v899_v1, %v866_v55 }
 0x21a   : > { %v1033_v10 = vsel %vm304_vm9, %v1029_v43, 0.0  ;;  %v905_v19 = vadd.f32 %v901_v57, %v868_v0  ;;  %v937_v11 = vmul.f32 %v4912_v54, %v925_v27  ;;  %v953_v38 = vsel %vm4765_vm10, %v4915_v49, %v4891_v12  ;;  %v4917_v0 = vld [vmem:[#allocation71_spill] sm:$0xff]  ;;  %v4921_v54 = vld [vmem:[#allocation73_spill] sm:$0xff] }
 0x21b   : > { %v3503_v46 = vpop.permute.xlu1 %1165  ;;  %v1045_v23 = vmul.f32 %v4916_v2, %v1033_v10  ;;  %v904_v51 = vadd.f32 %v900_v28, %v867_v21  ;;  %v936_v15 = vmul.f32 %v4913_v22, %v924_v58  ;;  %v939_v29 = vadd.f32 %v935_v9, %v902_v20  ;;  %v4918_v28 = vld [vmem:[#allocation59_spill] sm:$0xff]  ;;  %v4919_v20 = vld [vmem:[#allocation69_spill] sm:$0xff] }
 0x21c   : > { %v1107_v37 = vsel %vm4767_vm3, %v1103_v4, 0.0  ;;  %v942_v55 = vadd.f32 %v938_v60, %v905_v19  ;;  %v960_v57 = vsel %vm301_vm4, %v952_v35, 0.0  ;;  %v3534_v43 = vsel %vm4767_vm3, %v1102_v7, 0.0  ;;  %v4920_v58 = vld [vmem:[#allocation67_spill] sm:$0xff]  ;;  %v4922_v9 = vld [vmem:[#allocation77_spill] sm:$0xff] }
 0x21d   : > { %v962_v12 = vsel %vm301_vm4, %v953_v38, 0.0  ;;  %v972_v21 = vmul.f32 %v3098_v26, %v960_v57  ;;  %v996_v25 = vsel %vm988_vm15, %v4917_v0, 0.0  ;;  %v940_v16 = vadd.f32 %v936_v15, %v903_v41  ;;  %v4923_v10 = vld [vmem:[#allocation65_spill] sm:$0xff] }
 0x21e   : > { %v3542_v1 = vmul.f32 %v4918_v28, %v1107_v37  ;;  %v941_v63 = vadd.f32 %v937_v11, %v904_v51  ;;  %v989_v4 = vsel %vm988_vm15, %v4920_v58, %v4919_v20  ;;  %v1008_v7 = vmul.f32 %v4921_v54, %v996_v25  ;;  %v4925_v38 = vld [vmem:[#allocation41_spill] sm:$0xff] }
 0x21f   : > { %v3526_v13 = vpop.permute.xlu1 %1179  ;;  %vm4775_vm10 = vcmask 793600   ;;  %v973_v60 = vmul.f32 %v3098_v26, %v3448_v5  ;;  %v995_v22 = vsel %vm988_vm15, %v4919_v20, 0.0  ;;  %vm4773_vm12 = vcmask 769024   ;;  %v4924_v5 = vld [vmem:[#allocation43_spill] sm:$0xff] }
 0x220   : > { %v1023_v27 = vsel %vm1021_vm14, %v4922_v9, %v4907_v53  ;;  %v976_v30 = vadd.f32 %v972_v21, %v939_v29  ;;  %v974_v41 = vmul.f32 %v4903_v62, %v962_v12  ;;  %v3558_v19 = vsel %vm4777_vm8, %v4923_v10, 0.0  ;;  %v4926_v53 = vld [vmem:[#allocation75_spill] sm:$0xff] }
 0x221   : > { %v979_v11 = vadd.f32 %v3471_v45, %v942_v55  ;;  %v1066_v26 = vsel %vm1058_vm2, %v3262_v24, 0.0  ;;  %v1005_v49 = vmul.f32 %v4924_v5, %v989_v4  ;;  %v990_v51 = vsel %vm988_vm15, %v4925_v38, %v4917_v0  ;;  %v4927_v12 = vld [vmem:[#allocation51_spill] sm:$0xff]  ;;  %v4930_v38 = vld [vmem:[#allocation68_spill] sm:$0xff] }
 0x222   : > { %v1022_v15 = vsel %vm1021_vm14, %v4926_v53, %v4899_v8  ;;  %v977_v62 = vadd.f32 %v973_v60, %v940_v16  ;;  %v1006_v29 = vmul.f32 %v4924_v5, %v995_v22  ;;  %v1007_v37 = vmul.f32 %v4921_v54, %v990_v51  ;;  %v4931_v53 = vld [vmem:[#allocation74_spill] sm:$0xff] }
 0x223   : > { %v1195_v35 = vpop.permute.xlu1 %1194  ;;  %v1012_v57 = vadd.f32 %v1008_v7, %v979_v11  ;;  %v1032_v45 = vsel %vm303_vm7, %v1023_v27, 0.0  ;;  %vm4772_vm3 = vcmask 777216   ;;  %v1059_v55 = vsel %vm1058_vm2, %v3219_v56, %v3242_v34 }
 0x224   : > { %v1060_v21 = vsel %vm1058_vm2, %v4927_v12, %v3262_v24  ;;  %v1070_v8 = vsel %vm306_vm13, %v1066_v26, 0.0  ;;  %v1009_v0 = vadd.f32 %v1005_v49, %v976_v30  ;;  %v978_v16 = vadd.f32 %v974_v41, %v941_v63 }
 0x225   : > { %v1030_v20 = vsel %vm303_vm7, %v1022_v15, 0.0  ;;  %v1082_v58 = vmul.f32 %v3284_v33, %v1070_v8  ;;  %v1097_v4 = vsel %vm1095_vm6, %v3331_v61, %v4911_v3  ;;  %v1044_v56 = vmul.f32 %v4916_v2, %v1032_v45 }
 0x226   : > { %v1042_v54 = vmul.f32 %v3196_v17, %v1030_v20  ;;  %v1065_v24 = vsel %vm1058_vm2, %v3242_v34, 0.0  ;;  %v1010_v7 = vadd.f32 %v1006_v29, %v977_v62  ;;  %v1011_v60 = vadd.f32 %v1007_v37, %v978_v16  ;;  %v4928_v34 = vld [vmem:[#allocation66_spill] sm:$0xff]  ;;  %v4932_v29 = vld [vmem:[#allocation61_spill] sm:$0xff] }
 0x227   : > { %v1197_v25 = vpop.permute.xlu1 %1196  ;;  %v1067_v63 = vsel %vm305_vm11, %v1059_v55, 0.0  ;;  %v1049_v22 = vadd.f32 %v1045_v23, %v1012_v57  ;;  %v1069_v9 = vsel %vm305_vm11, %v1060_v21, 0.0  ;;  %v1043_v27 = vmul.f32 %v3196_v17, %v3487_v42  ;;  %v4929_v17 = vld [vmem:[#allocation53_spill] sm:$0xff] }
 0x228   : > { %v1081_v61 = vmul.f32 %v3284_v33, %v1069_v9  ;;  %v1106_v3 = vsel %vm299_vm1, %v1097_v4, 0.0  ;;  %v1046_v2 = vadd.f32 %v1042_v54, %v1009_v0  ;;  %v1177_v41 = vsel %vm4777_vm8, %v4928_v34, 0.0 }
 0x229   : > { %v1068_v11 = vsel %vm306_vm13, %v1065_v24, 0.0  ;;  %v1086_v23 = vadd.f32 %v1082_v58, %v1049_v22  ;;  %v1096_v26 = vsel %vm1095_vm6, %v3308_v39, %v4910_v59  ;;  %v1048_v5 = vadd.f32 %v1044_v56, %v1011_v60  ;;  %v4933_v56 = vld [vmem:[#allocation70_spill] sm:$0xff]  ;;  %v4934_v60 = vld [vmem:[#allocation63_spill] sm:$0xff] }
 0x22a   : > { %v1079_v42 = vmul.f32 %v4929_v17, %v1067_v63  ;;  %v1047_v33 = vadd.f32 %v1043_v27, %v1010_v7  ;;  %v1133_v49 = vsel %vm4775_vm10, %v3377_v36, %v3404_v48  ;;  %v3613_v51 = vmul.f32 %v4930_v38, %v1177_v41 }
 0x22b   : > { %v1201_v30 = vpop.permute.xlu1 %1200  ;;  %v1246_v15 = vsel %vm4773_vm12, %v4931_v53, 0.0  ;;  %v1118_v62 = vmul.f32 %v4918_v28, %v1106_v3  ;;  %v1134_v39 = vsel %vm4775_vm10, %v4932_v29, %v3424_v14  ;;  %v1080_v59 = vmul.f32 %v4929_v17, %v1068_v11  ;;  %v4935_v11 = vld [vmem:[#allocation72_spill] sm:$0xff] }
 0x22c   : > { %v1085_v37 = vadd.f32 %v1081_v61, %v1048_v5  ;;  %v1104_v57 = vsel %vm299_vm1, %v1096_v26, 0.0  ;;  %v1083_v45 = vadd.f32 %v1079_v42, %v1046_v2  ;;  %v1139_v12 = vsel %vm4775_vm10, %v3404_v48, 0.0 }
 0x22d   : > { %v1116_v55 = vmul.f32 %v3351_v47, %v1104_v57  ;;  %v1141_v28 = vsel %vm301_vm4, %v1133_v49, 0.0  ;;  %v1123_v21 = vadd.f32 %v3542_v1, %v1086_v23  ;;  %v1084_v8 = vadd.f32 %v1080_v59, %v1047_v33  ;;  %v4936_v33 = vld [vmem:[#allocation76_spill] sm:$0xff]  ;;  %v4937_v59 = vld [vmem:[#allocation78_spill] sm:$0xff] }
 0x22e   : > { %v1143_v0 = vsel %vm301_vm4, %v1134_v39, 0.0  ;;  %v1171_v16 = vsel %vm4777_vm8, %v3503_v46, %v4928_v34  ;;  %v1203_v20 = vsel %vm4772_vm3, %v1195_v35, %v1197_v25  ;;  %v1122_v58 = vadd.f32 %v1118_v62, %v1085_v37 }
 0x22f   : > { %v1221_v36 = vpop.permute.xlu1 %1220  ;;  %v1140_v4 = vsel %vm4775_vm10, %v3424_v14, 0.0  ;;  %v1155_v48 = vmul.f32 %v3450_v6, %v1143_v0  ;;  %v1204_v54 = vsel %vm4772_vm3, %v4933_v56, %v1201_v30  ;;  %v1117_v1 = vmul.f32 %v3351_v47, %v3534_v43 }
 0x230   : > { %v1120_v24 = vadd.f32 %v1116_v55, %v1083_v45  ;;  %v1142_v7 = vsel %vm302_vm5, %v1139_v12, 0.0  ;;  %v1153_v46 = vmul.f32 %v4934_v60, %v1141_v28  ;;  %v1170_v35 = vsel %vm4777_vm8, %v3477_v40, %v4923_v10 }
 0x231   : > { %v1188_v14 = vmul.f32 %v4930_v38, %v1171_v16  ;;  %v1209_v22 = vsel %vm4772_vm3, %v1197_v25, 0.0  ;;  %v1211_v9 = vsel %vm303_vm7, %v1203_v20, 0.0  ;;  %v1121_v27 = vadd.f32 %v1117_v1, %v1084_v8 }
 0x232   : > { %v1144_v47 = vsel %vm302_vm5, %v1140_v4, 0.0  ;;  %v1186_v43 = vmul.f32 %v3526_v13, %v1170_v35  ;;  %v1213_v61 = vsel %vm303_vm7, %v1204_v54, 0.0  ;;  %v1154_v3 = vmul.f32 %v4934_v60, %v1142_v7  ;;  %v3694_v54 = vld [vmem:[%s4635_s3 + $0x10] sm:$0xff]  ;;  %v2277_v7 = vld [vmem:[%s4636_s4 + $0x18] sm:$0xff] }
 0x233   : > { %v1232_v63 = vpop.permute.xlu1 %1231  ;;  %v1156_v40 = vmul.f32 %v3450_v6, %v1144_v47  ;;  %v1159_v10 = vadd.f32 %v1155_v48, %v1122_v58  ;;  %v1225_v2 = vmul.f32 %v1221_v36, %v1213_v61  ;;  %v1157_v34 = vadd.f32 %v1153_v46, %v1120_v24  ;;  %v3714_v46 = vld [vmem:[%s4635_s3 + $0x18] sm:$0xff]  ;;  %v2276_v35 = vld [vmem:[%s4636_s4 + $0x10] sm:$0xff] }
 0x234   : > { %v1187_v25 = vmul.f32 %v3526_v13, %v3558_v19  ;;  %v1212_v41 = vsel %vm304_vm9, %v1209_v22, 0.0  ;;  %v1223_v23 = vmul.f32 %v4935_v11, %v1211_v9  ;;  %v1210_v17 = vsel %vm4772_vm3, %v1201_v30, 0.0 }
 0x235   : > { %v1192_v5 = vadd.f32 %v1188_v14, %v1159_v10  ;;  %v1240_v42 = vsel %vm4773_vm12, %v1232_v63, %v4931_v53  ;;  %v1158_v49 = vadd.f32 %v1154_v3, %v1121_v27  ;;  %v1190_v38 = vadd.f32 %v1186_v43, %v1157_v34 }
 0x236   : > { %v1249_v19 = vsel %vm306_vm13, %v1246_v15, 0.0  ;;  %v1160_v62 = vadd.f32 %v1156_v40, %v1123_v21  ;;  %v1224_v29 = vmul.f32 %v4935_v11, %v1212_v41  ;;  %v1214_v53 = vsel %vm304_vm9, %v1210_v17, 0.0 }
 0x237   : > { %v1236_v26 = vpop.permute.xlu1 %1235  ;;  %v1229_v39 = vadd.f32 %v1225_v2, %v1192_v5  ;;  %v1191_v37 = vadd.f32 %v1187_v25, %v1158_v49  ;;  %v1248_v57 = vsel %vm305_vm11, %v1240_v42, 0.0  ;;  %v1227_v55 = vadd.f32 %v1223_v23, %v1190_v38 }
 0x238   : > { %v1241_v6 = vsel %vm4773_vm12, %v1236_v26, %v4936_v33  ;;  %v1226_v12 = vmul.f32 %v1221_v36, %v1214_v53  ;;  %v1247_v15 = vsel %vm4773_vm12, %v4936_v33, 0.0  ;;  %v1193_v21 = vadd.f32 %v3613_v51, %v1160_v62 }
 0x239   : > { %v1250_v13 = vsel %vm305_vm11, %v1241_v6, 0.0  ;;  %v1228_v20 = vadd.f32 %v1224_v29, %v1191_v37  ;;  %v1251_v36 = vsel %vm306_vm13, %v1247_v15, 0.0  ;;  %v4938_v63 = vmov 1  }
 0x23a   : > { %v1262_v30 = vmul.f32 %v4937_v59, %v1250_v13  ;;  %v1230_v4 = vadd.f32 %v1226_v12, %v1193_v21  ;;  %v1263_v51 = vmul.f32 %v4937_v59, %v1251_v36  ;;  %v4939_v14 = vmov 2  }
 0x23b   : > { %v1254_v45 = vpop.permute.xlu1 %1253  ;;  %v4940_v22 = vmov 3   ;;  %v4941_v9 = vmov 4   ;;  %v4942_v27 = vmov 5   ;;  %v4943_v47 = vmov 6  }
 0x23c   : > { %v1266_v28 = vadd.f32 %v1262_v30, %v1229_v39  ;;  %v1260_v8 = vmul.f32 %v1254_v45, %v1248_v57  ;;  %v1261_v0 = vmul.f32 %v1254_v45, %v1249_v19  ;;  %v1267_v1 = vadd.f32 %v1263_v51, %v1230_v4 }
 0x23d   : > { %v4944_v43 = vmov 7   ;;  %v4945_v61 = vmov 8   ;;  %v4946_v3 = vmov 9   ;;  %v4947_v40 = vmov 10  }
 0x23e   : > { %v3683_v16 = vmax.f32 %v1266_v28, 0.0  ;;  %v1264_v58 = vadd.f32 %v1260_v8, %v1227_v55  ;;  %v1265_v48 = vadd.f32 %v1261_v0, %v1228_v20  ;;  %v3707_v60 = vmax.f32 %v1267_v1, 0.0 }
 0x23f   : > { %v4948_v10 = vmov 11   ;;  %v4949_v34 = vmov 13   ;;  %v4951_v5 = vmov 14   ;;  %v4953_v13 = vmov 15  }
 0x240   : > { %v3685_v56 = vmax.f32 %v1264_v58, 0.0  ;;  %1286 = vrot.lane.b32.xlu0 %v3683_v16, %s2456_s17  ;;  %v3699_v24 = vmax.f32 %v1265_v48, 0.0  ;;  %v4955_v59 = vmov 16   ;;  %v4957_v12 = vmov 17  }
 0x241   : > { %v4958_v0 = vmov 12   ;;  %v4959_v20 = vmov 18   ;;  %vm4963_vm3 = vcmask 269312   ;;  %vm4965_vm12 = vcmp.ge.s32.totalorder %v3117_v52, 2 }
 0x242   : > { %1282 = vrot.lane.b32.xlu1 %v3685_v56, %s2456_s17  ;;  %vm4966_vm10 = vmmov %vm4963_vm3  ;;  %vm4971_vm8 = vcmp.ge.s32.totalorder %v3117_v52, 2 }
 0x244   : > { %1304 = vperm.xlu0 %2390, %v3694_v54  }
 0x246   : > { %1284 = vrot.lane.b32.xlu1 %v3699_v24, %s2456_s17 }
 0x248   : > { %1323 = vperm.xlu0 %2390, %v2277_v7   ;;  %v4960_v7 = vmov 19  }
 0x24a   : > { %1288 = vrot.lane.b32.xlu1 %v3707_v60, %s2456_s17  ;;  %s4950_s17 = smov 126  }
 0x24c   : > { %1332 = vrot.lane.b32.xlu0 %v3699_v24, %s2457_s18 }
 0x24d   : > { %2393 = vset.pattern.permute.xlu0 %v4938_v63 }
 0x24e   : > { %1309 = vperm.xlu1 %2391, %v3714_v46  }
 0x250   : > { %1336 = vrot.lane.b32.xlu0 %v3707_v60, %s2457_s18 }
 0x252   : > { %1318 = vperm.xlu1 %2391, %v2276_v35  }
 0x254   : > { %1355 = vperm.xlu0 %2393, %v3714_v46  }
 0x256   : > { %1330 = vrot.lane.b32.xlu1 %v3685_v56, %s2457_s18 }
 0x257   : > { %2392 = vset.pattern.permute.xlu1 %v4938_v63 }
 0x258   : > { %1370 = vrot.lane.b32.xlu0 %v3683_v16, %s2458_s19 }
 0x259   : > { %2394 = vset.pattern.permute.xlu0 %v4939_v14 }
 0x25a   : > { %1334 = vrot.lane.b32.xlu1 %v3683_v16, %s2457_s18  ;;  %s4952_s18 = smov 114  }
 0x25c   : > { %1383 = vperm.xlu0 %2394, %v3694_v54  }
 0x25e   : > { %1351 = vperm.xlu1 %2392, %v3694_v54  }
 0x260   : > { %1400 = vrot.lane.b32.xlu0 %v3699_v24, %s2459_s20 }
 0x261   : > { %2397 = vset.pattern.permute.xlu0 %v4940_v22 }
 0x262   : > { %1366 = vrot.lane.b32.xlu1 %v3685_v56, %s2458_s19 }
 0x263   : > { %2395 = vset.pattern.permute.xlu1 %v4939_v14 }
 0x264   : > { %1404 = vrot.lane.b32.xlu0 %v3707_v60, %s2459_s20 }
 0x266   : > { %1368 = vrot.lane.b32.xlu1 %v3699_v24, %s2458_s19 }
 0x268   : > { %1423 = vperm.xlu0 %2397, %v3714_v46  }
 0x26a   : > { %1372 = vrot.lane.b32.xlu1 %v3707_v60, %s2458_s19  ;;  %s4954_s19 = smov 113  }
 0x26c   : > { %1438 = vrot.lane.b32.xlu0 %v3683_v16, %s2460_s22 }
 0x26d   : > { %2398 = vset.pattern.permute.xlu0 %v4941_v9 }
 0x26e   : > { %1387 = vperm.xlu1 %2395, %v3714_v46  }
 0x270   : > { %1455 = vperm.xlu0 %2398, %v3694_v54  }
 0x272   : > { %1398 = vrot.lane.b32.xlu1 %v3685_v56, %s2459_s20 }
 0x273   : > { %2396 = vset.pattern.permute.xlu1 %v4940_v22  ;;  %v4961_v22 = vmov 20  }
 0x274   : > { %1472 = vrot.lane.b32.xlu0 %v3699_v24, %s2461_s23 }
 0x275   : > { %2401 = vset.pattern.permute.xlu0 %v4942_v27 }
 0x276   : > { %1402 = vrot.lane.b32.xlu1 %v3683_v16, %s2459_s20  ;;  %s4956_s20 = smov 112  }
 0x278   : > { %1476 = vrot.lane.b32.xlu0 %v3707_v60, %s2461_s23 }
 0x27a   : > { %1419 = vperm.xlu1 %2396, %v3694_v54  }
 0x27c   : > { %1495 = vperm.xlu0 %2401, %v3714_v46  }
 0x27e   : > { %1434 = vrot.lane.b32.xlu1 %v3685_v56, %s2460_s22 }
 0x27f   : > { %2399 = vset.pattern.permute.xlu1 %v4941_v9 }
 0x280   : > { %1510 = vrot.lane.b32.xlu0 %v3683_v16, %s2462_s24 }
 0x281   : > { %2402 = vset.pattern.permute.xlu0 %v4943_v47 }
 0x282   : > { %1436 = vrot.lane.b32.xlu1 %v3699_v24, %s2460_s22 }
 0x284   : > { %1527 = vperm.xlu0 %2402, %v3694_v54  }
 0x286   : > { %1440 = vrot.lane.b32.xlu1 %v3707_v60, %s2460_s22  ;;  %s4991_s22 = smov 95  }
 0x288   : > { %1544 = vrot.lane.b32.xlu0 %v3699_v24, %s2463_s25 }
 0x289   : > { %2405 = vset.pattern.permute.xlu0 %v4944_v43 }
 0x28a   : > { %1459 = vperm.xlu1 %2399, %v3714_v46  }
 0x28c   : > { %1548 = vrot.lane.b32.xlu0 %v3707_v60, %s2463_s25 }
 0x28e   : > { %1470 = vrot.lane.b32.xlu1 %v3685_v56, %s2461_s23 }
 0x28f   : > { %2400 = vset.pattern.permute.xlu1 %v4942_v27 }
 0x290   : > { %1563 = vperm.xlu0 %2405, %v3714_v46  }
 0x292   : > { %1474 = vrot.lane.b32.xlu1 %v3683_v16, %s2461_s23  ;;  %s4996_s23 = smov 94  }
 0x294   : > { %1578 = vrot.lane.b32.xlu0 %v3683_v16, %s2464_s26 }
 0x295   : > { %2406 = vset.pattern.permute.xlu0 %v4945_v61 }
 0x296   : > { %1491 = vperm.xlu1 %2400, %v3694_v54  }
 0x298   : > { %1595 = vperm.xlu0 %2406, %v3694_v54  }
 0x29a   : > { %1506 = vrot.lane.b32.xlu1 %v3685_v56, %s2462_s24 }
 0x29b   : > { %2403 = vset.pattern.permute.xlu1 %v4943_v47 }
 0x29c   : > { %1612 = vrot.lane.b32.xlu0 %v3699_v24, %s2465_s27 }
 0x29d   : > { %2409 = vset.pattern.permute.xlu0 %v4946_v3 }
 0x29e   : > { %1508 = vrot.lane.b32.xlu1 %v3699_v24, %s2462_s24 }
 0x2a0   : > { %1616 = vrot.lane.b32.xlu0 %v3707_v60, %s2465_s27 }
 0x2a2   : > { %1512 = vrot.lane.b32.xlu1 %v3707_v60, %s2462_s24 }
 0x2a4   : > { %1635 = vperm.xlu0 %2409, %v3714_v46  }
 0x2a6   : > { %1531 = vperm.xlu1 %2403, %v3714_v46  }
 0x2a8   : > { %1650 = vrot.lane.b32.xlu0 %v3683_v16, %s2466_s28 }
 0x2a9   : > { %2410 = vset.pattern.permute.xlu0 %v4947_v40 }
 0x2aa   : > { %1542 = vrot.lane.b32.xlu1 %v3685_v56, %s2463_s25 }
 0x2ab   : > { %2404 = vset.pattern.permute.xlu1 %v4944_v43  ;;  %v4962_v43 = vmov 22  }
 0x2ac   : > { %1667 = vperm.xlu0 %2410, %v3694_v54  }
 0x2ae   : > { %1546 = vrot.lane.b32.xlu1 %v3683_v16, %s2463_s25 }
 0x2b0   : > { %1684 = vrot.lane.b32.xlu0 %v3699_v24, %s2468_s29 }
 0x2b1   : > { %2413 = vset.pattern.permute.xlu0 %v4948_v10 }
 0x2b2   : > { %1559 = vperm.xlu1 %2404, %v3694_v54   ;;  %v3836_v25 = vpop.permute.xlu0 %1286 }
 0x2b4   : > { %1688 = vrot.lane.b32.xlu0 %v3707_v60, %s2468_s29  ;;  %v3831_v2 = vpop.permute.xlu1 %1282 }
 0x2b6   : > { %1574 = vrot.lane.b32.xlu1 %v3685_v56, %s2464_s26 }
 0x2b7   : > { %2407 = vset.pattern.permute.xlu1 %v4945_v61 }
 0x2b8   : > { %1707 = vperm.xlu0 %2413, %v3714_v46   ;;  %v3841_v41 = vpop.permute.xlu1 %1284 }
 0x2ba   : > { %1576 = vrot.lane.b32.xlu1 %v3699_v24, %s2464_s26 }
 0x2bc   : > { %1734 = vrot.lane.b32.xlu0 %v3685_v56, %s2471_s30  ;;  %v3853_v26 = vpop.permute.xlu1 %1288 }
 0x2bd   : > { %2415 = vset.pattern.permute.xlu0 %v4949_v34 }
 0x2be   : > { %1580 = vrot.lane.b32.xlu1 %v3707_v60, %s2464_s26 }
 0x2c0   : > { %1738 = vrot.lane.b32.xlu0 %v3683_v16, %s2471_s30 }
 0x2c2   : > { %1599 = vperm.xlu1 %2407, %v3714_v46  }
 0x2c3   : > { %v3843_v11 = vpop.permute.xlu0 %1304 }
 0x2c4   : > { %1755 = vperm.xlu0 %2415, %v3694_v54  }
 0x2c6   : > { %1610 = vrot.lane.b32.xlu1 %v3685_v56, %s2465_s27 }
 0x2c7   : > { %v3848_v23 = vpop.permute.xlu0 %1323  ;;  %2408 = vset.pattern.permute.xlu1 %v4946_v3  ;;  %v1290_v3 = vsel %vm360_vm0, %v3831_v2, %v3841_v41 }
 0x2c8   : > { %1772 = vrot.lane.b32.xlu0 %v3699_v24, %s4950_s17  ;;  %v1299_v31 = vsel %vm4965_vm12, %v1290_v3, 0.0 }
 0x2c9   : > { %2418 = vset.pattern.permute.xlu0 %v4951_v5 }
 0x2ca   : > { %1614 = vrot.lane.b32.xlu1 %v3683_v16, %s2465_s27 }
 0x2cb   : > { %v3858_v17 = vpop.permute.xlu0 %1332 }
 0x2cc   : > { %1776 = vrot.lane.b32.xlu0 %v3707_v60, %s4950_s17 }
 0x2cd   : > { %v3862_v42 = vpop.permute.xlu1 %1309 }
 0x2ce   : > { %1631 = vperm.xlu1 %2408, %v3694_v54  }
 0x2cf   : > { %v3865_v33 = vpop.permute.xlu0 %1336 }
 0x2d0   : > { %1795 = vperm.xlu0 %2418, %v3714_v46  }
 0x2d1   : > { %v3868_v6 = vpop.permute.xlu1 %1318 }
 0x2d2   : > { %1646 = vrot.lane.b32.xlu1 %v3685_v56, %s2466_s28 }
 0x2d3   : > { %v3872_v49 = vpop.permute.xlu0 %1355  ;;  %2411 = vset.pattern.permute.xlu1 %v4947_v40 }
 0x2d4   : > { %1810 = vrot.lane.b32.xlu0 %v3683_v16, %s4952_s18 }
 0x2d5   : > { %v3877_v38 = vpop.permute.xlu1 %1330  ;;  %2419 = vset.pattern.permute.xlu0 %v4953_v13 }
 0x2d6   : > { %1648 = vrot.lane.b32.xlu1 %v3699_v24, %s2466_s28 }
 0x2d7   : > { %v3882_v19 = vpop.permute.xlu0 %1370 }
 0x2d8   : > { %1827 = vperm.xlu0 %2419, %v3694_v54  }
 0x2d9   : > { %v3885_v62 = vpop.permute.xlu1 %1334 }
 0x2da   : > { %1652 = vrot.lane.b32.xlu1 %v3707_v60, %s2466_s28  ;;  %s4559_s28 = scalar_lea.vmem %s4633_s1, %s2604_s13 }
 0x2db   : > { %v3889_v29 = vpop.permute.xlu0 %1383 }
 0x2dc   : > { %1844 = vrot.lane.b32.xlu0 %v3699_v24, %s4954_s19 }
 0x2dd   : > { %v3893_v39 = vpop.permute.xlu1 %1351  ;;  %2422 = vset.pattern.permute.xlu0 %v4955_v59 }
 0x2de   : > { %1671 = vperm.xlu1 %2411, %v3714_v46  }
 0x2df   : > { %v3897_v30 = vpop.permute.xlu0 %1400 }
 0x2e0   : > { %1848 = vrot.lane.b32.xlu0 %v3707_v60, %s4954_s19 }
 0x2e1   : > { %v3901_v37 = vpop.permute.xlu1 %1366 }
 0x2e2   : > { %1682 = vrot.lane.b32.xlu1 %v3685_v56, %s2468_s29 }
 0x2e3   : > { %v3905_v53 = vpop.permute.xlu0 %1404  ;;  %2412 = vset.pattern.permute.xlu1 %v4948_v10  ;;  %v1297_v10 = vsel %vm360_vm0, 0.0, %v3836_v25 }
 0x2e4   : > { %1867 = vperm.xlu0 %2422, %v3714_v46   ;;  %v1300_v50 = vsel %vm299_vm1, %v1297_v10, 0.0 }
 0x2e5   : > { %v3909_v57 = vpop.permute.xlu1 %1368 }
 0x2e6   : > { %1686 = vrot.lane.b32.xlu1 %v3683_v16, %s2468_s29 }
 0x2e7   : > { %v3913_v45 = vpop.permute.xlu0 %1423 }
 0x2e8   : > { %1882 = vrot.lane.b32.xlu0 %v3683_v16, %s4956_s20 }
 0x2e9   : > { %v3917_v55 = vpop.permute.xlu1 %1372  ;;  %2423 = vset.pattern.permute.xlu0 %v4957_v12 }
 0x2ea   : > { %1703 = vperm.xlu1 %2412, %v3694_v54  }
 0x2eb   : > { %v3921_v28 = vpop.permute.xlu0 %1438 }
 0x2ec   : > { %1895 = vperm.xlu0 %2423, %v3694_v54  }
 0x2ed   : > { %v3924_v8 = vpop.permute.xlu1 %1387 }
 0x2ee   : > { %2414 = vset.pattern.permute.xlu1 %v4958_v0  ;;  %v4964_v0 = vmov 23  }
 0x2ef   : > { %1719 = vperm.xlu1 %2414, %v3694_v54   ;;  %v3928_v15 = vpop.permute.xlu0 %1455 }
 0x2f0   : > { %1912 = vrot.lane.b32.xlu0 %v3699_v24, %s2481_s11 }
 0x2f1   : > { %v3932_v21 = vpop.permute.xlu1 %1398  ;;  %2426 = vset.pattern.permute.xlu0 %v4959_v20 }
 0x2f3   : > { %1723 = vperm.xlu1 %2414, %v3714_v46   ;;  %v3936_v58 = vpop.permute.xlu0 %1472 }
 0x2f4   : > { %1916 = vrot.lane.b32.xlu0 %v3707_v60, %s2481_s11 }
 0x2f5   : > { %v3940_v4 = vpop.permute.xlu1 %1402 }
 0x2f7   : > { %1736 = vrot.lane.b32.xlu1 %v3699_v24, %s2471_s30  ;;  %v1477_v48 = vpop.permute.xlu0 %1476 }
 0x2f8   : > { %1935 = vperm.xlu0 %2426, %v3714_v46   ;;  %2416 = vset.pattern.permute.xlu1 %v4949_v34  ;;  %v1291_v34 = vsel %vm360_vm0, %v3836_v25, %v3853_v26  ;;  %v1345_v25 = vsel %vm4966_vm10, 0.0, %v3885_v62  ;;  %vm4968_vm10 = vcmask 261120  }
 0x2f9   : > { %v3946_v36 = vpop.permute.xlu1 %1419 }
 0x2fb   : > { %1740 = vrot.lane.b32.xlu1 %v3707_v60, %s2471_s30  ;;  %v3950_v51 = vpop.permute.xlu0 %1495 }
 0x2fc   : > { %1950 = vrot.lane.b32.xlu0 %v3683_v16, %s2483_s12 }
 0x2fd   : > { %v3954_v1 = vpop.permute.xlu1 %1434  ;;  %2427 = vset.pattern.permute.xlu0 %v4960_v7 }
 0x2ff   : > { %1759 = vperm.xlu1 %2416, %v3714_v46   ;;  %v3958_v63 = vpop.permute.xlu0 %1510 }
 0x300   : > { %1967 = vperm.xlu0 %2427, %v3694_v54  }
 0x301   : > { %v1437_v35 = vpop.permute.xlu1 %1436 }
 0x303   : > { %1770 = vrot.lane.b32.xlu1 %v3685_v56, %s4950_s17  ;;  %v3963_v14 = vpop.permute.xlu0 %1527 }
 0x304   : > { %2430 = vset.pattern.permute.xlu0 %v4961_v22  ;;  %2417 = vset.pattern.permute.xlu1 %v4951_v5  ;;  %v1338_v5 = vsel %vm4963_vm3, %v3877_v38, %v3858_v17  ;;  %vm4967_vm3 = vmmov %vm4965_vm12  ;;  %v1313_v17 = vmul.f32 %v3843_v11, %v1299_v31  ;;  %vm4969_vm12 = vcmask 146432  }
 0x305   : > { %v3967_v9 = vpop.permute.xlu1 %1440  ;;  %2007 = vperm.xlu0 %2430, %v3714_v46   ;;  %v1301_v26 = vsel %vm4967_vm3, %v1291_v34, 0.0  ;;  %v1347_v32 = vsel %vm302_vm5, %v1338_v5, 0.0  ;;  %vm4970_vm3 = vcmask 269312  }
 0x306   : > { %v1359_v3 = vmul.f32 %v3893_v39, %v1347_v32  ;;  %v1315_v31 = vmul.f32 %v3862_v42, %v1301_v26  ;;  %v1339_v10 = vsel %vm4970_vm3, %v3885_v62, %v3865_v33 }
 0x307   : > { %1774 = vrot.lane.b32.xlu1 %v3683_v16, %s4950_s17  ;;  %v3972_v27 = vpop.permute.xlu0 %1544  ;;  %v1349_v5 = vsel %vm302_vm5, %v1339_v10, 0.0 }
 0x309   : > { %v3974_v47 = vpop.permute.xlu1 %1459  ;;  %2432 = vset.pattern.permute.xlu0 %v4962_v43 }
 0x30a   : > { %2071 = vperm.xlu0 %2432, %v3694_v54  }
 0x30b   : > { %1791 = vperm.xlu1 %2417, %v3694_v54   ;;  %v3979_v61 = vpop.permute.xlu0 %1548 }
 0x30d   : > { %v3984_v40 = vpop.permute.xlu1 %1470 }
 0x30e   : > { %1984 = vrot.lane.b32.xlu0 %v3699_v24, %s2485_s14 }
 0x30f   : > { %1806 = vrot.lane.b32.xlu1 %v3685_v56, %s4952_s18  ;;  %v3998_v41 = vpop.permute.xlu0 %1563  ;;  %2435 = vset.pattern.permute.xlu0 %v4964_v0  ;;  %v1314_v0 = vmul.f32 %v3862_v42, %v1300_v50  ;;  %v1348_v50 = vsel %vm301_vm4, %v1345_v25, 0.0 }
 0x310   : > { %2420 = vset.pattern.permute.xlu1 %v4953_v13  ;;  %v1374_v13 = vsel %vm4968_vm10, %v3901_v37, %v3909_v57  ;;  %vm4972_vm10 = vcmask 252928   ;;  %v1360_v25 = vmul.f32 %v3872_v49, %v1348_v50  ;;  %v1329_v50 = vadd.f32 %v3848_v23, %v1315_v31 }
 0x311   : > { %v1475_v44 = vpop.permute.xlu1 %1474  ;;  %v1406_v42 = vsel %vm4972_vm10, %v3932_v21, %v3897_v30  ;;  %v1391_v34 = vmul.f32 %v3889_v29, %v1374_v13 }
 0x312   : > { %v1479_v43 = vsel %vm4969_vm12, %v1475_v44, %v1477_v48  ;;  %1988 = vrot.lane.b32.xlu0 %v3707_v60, %s2485_s14  ;;  %v1327_v48 = vadd.f32 %v3868_v6, %v1313_v17  ;;  %vm4973_vm12 = vcmask 244736   ;;  %v1415_v17 = vsel %vm304_vm9, %v1406_v42, 0.0 }
 0x313   : > { %v1489_v32 = vsel %vm4971_vm8, %v1479_v43, 0.0  ;;  %1808 = vrot.lane.b32.xlu1 %v3699_v24, %s4952_s18  ;;  %v4031_v57 = vpop.permute.xlu0 %1578  ;;  %v1442_v33 = vsel %vm4973_vm12, %v3954_v1, %v1437_v35  ;;  %vm4974_vm8 = vmmov %vm4972_vm10  ;;  %vm4976_vm10 = vcmask 146432   ;;  %vm4977_vm12 = vcmask 261120  }
 0x314   : > { %v4040_v62 = vmul.f32 %v3950_v51, %v1489_v32  ;;  %v1363_v26 = vadd.f32 %v1359_v3, %v1327_v48  ;;  %v1407_v30 = vsel %vm4974_vm8, %v3940_v4, %v3905_v53  ;;  %vm4975_vm3 = vmmov %vm4974_vm8  ;;  %v1451_v13 = vsel %vm306_vm13, %v1442_v33, 0.0 }
 0x315   : > { %v4043_v43 = vpop.permute.xlu1 %1491  ;;  %v1413_v35 = vsel %vm4975_vm3, 0.0, %v3940_v4  ;;  %v1328_v3 = vadd.f32 %v3848_v23, %v1314_v0  ;;  %v1427_v53 = vmul.f32 %v3946_v36, %v1415_v17  ;;  %v1478_v4 = vsel %vm4976_vm10, %v3984_v40, %v3936_v58  ;;  %vm4978_vm8 = vmmov %vm4977_vm12 }
 0x316   : > { %2111 = vperm.xlu0 %2435, %v3714_v46   ;;  %v1381_v32 = vsel %vm4977_vm12, 0.0, %v3882_v19  ;;  %v1361_v48 = vmul.f32 %v3872_v49, %v1349_v5  ;;  %v1395_v42 = vadd.f32 %v1391_v34, %v1363_v26  ;;  %v1375_v33 = vsel %vm4978_vm8, %v3882_v19, %v3917_v55 }
 0x317   : > { %1812 = vrot.lane.b32.xlu1 %v3707_v60, %s4952_s18  ;;  %v4060_v10 = vpop.permute.xlu0 %1595  ;;  %v1392_v23 = vmul.f32 %v3924_v8, %v1381_v32  ;;  %v1416_v0 = vsel %vm303_vm7, %v1413_v35, 0.0  ;;  %v1417_v58 = vsel %vm304_vm9, %v1407_v30, 0.0  ;;  %v1463_v31 = vmul.f32 %v3928_v15, %v1451_v13 }
 0x318   : > { %vm4979_vm3 = vcmask 244736   ;;  %v1364_v34 = vadd.f32 %v1360_v25, %v1328_v3  ;;  %v1393_v19 = vmul.f32 %v3924_v8, %v1375_v33  ;;  %vm4980_vm10 = vcmp.ge.s32.totalorder %v3117_v52, 2 }
 0x319   : > { %v4074_v22 = vpop.permute.xlu1 %1506  ;;  %v1449_v49 = vsel %vm4979_vm3, 0.0, %v3921_v28  ;;  %v1487_v55 = vsel %vm4980_vm10, %v1478_v4, 0.0  ;;  %v4981_v26 = vmov 24   ;;  %v1431_v30 = vadd.f32 %v1427_v53, %v1395_v42  ;;  %vm4982_vm12 = vmmov %vm4979_vm3 }
 0x31a   : > { %2022 = vrot.lane.b32.xlu0 %v3683_v16, %s2487_s15  ;;  %v1443_v35 = vsel %vm4982_vm12, %v3921_v28, %v3967_v9  ;;  %vm4983_vm8 = vcmask 146432   ;;  %v1499_v25 = vmul.f32 %v4043_v43, %v1487_v55  ;;  %v1365_v13 = vadd.f32 %v1361_v48, %v1329_v50 }
 0x31b   : > { %1831 = vperm.xlu1 %2420, %v3714_v46   ;;  %v4090_v5 = vpop.permute.xlu0 %1612  ;;  %2436 = vset.pattern.permute.xlu0 %v4981_v26  ;;  %v1485_v17 = vsel %vm4983_vm8, 0.0, %v1475_v44  ;;  %v1428_v8 = vmul.f32 %v3913_v45, %v1416_v0  ;;  %v1429_v3 = vmul.f32 %v3913_v45, %v1417_v58  ;;  %v1396_v32 = vadd.f32 %v1392_v23, %v1364_v34 }
 0x31c   : > { %v1467_v33 = vadd.f32 %v1463_v31, %v1431_v30  ;;  %v1452_v26 = vsel %vm305_vm11, %v1449_v49, 0.0  ;;  %vm4984_vm3 = vcmask 138240   ;;  %v1397_v28 = vadd.f32 %v1393_v19, %v1365_v13 }
 0x31d   : > { %v1509_v4 = vpop.permute.xlu1 %1508  ;;  %v1453_v44 = vsel %vm306_vm13, %v1443_v35, 0.0  ;;  %v1488_v9 = vsel %vm299_vm1, %v1485_v17, 0.0  ;;  %v1464_v48 = vmul.f32 %v3974_v47, %v1452_v26  ;;  %v1296_v58 = vsel %vm360_vm0, 0.0, %v3831_v2  ;;  %vm4986_vm12 = vmmov %vm4984_vm3 }
 0x31e   : > { %v1514_v53 = vsel %vm4984_vm3, %v4074_v22, %v1509_v4  ;;  %2143 = vperm.xlu0 %2436, %v3694_v54   ;;  %v1465_v42 = vmul.f32 %v3974_v47, %v1453_v44  ;;  %v1503_v23 = vadd.f32 %v1499_v25, %v1467_v33  ;;  %vm4985_vm10 = vcmask 269312   ;;  %vm4987_vm8 = vmmov %vm4984_vm3 }
 0x31f   : > { %v1523_v45 = vsel %vm302_vm5, %v1514_v53, 0.0  ;;  %1842 = vrot.lane.b32.xlu1 %v3685_v56, %s4954_s19  ;;  %v4113_v50 = vpop.permute.xlu0 %1616  ;;  %v1344_v31 = vsel %vm4985_vm10, 0.0, %v3877_v38  ;;  %v1432_v49 = vadd.f32 %v1428_v8, %v1396_v32  ;;  %v1433_v34 = vadd.f32 %v1429_v3, %v1397_v28 }
 0x320   : > { %v1535_v0 = vmul.f32 %v3963_v14, %v1523_v45  ;;  %2421 = vset.pattern.permute.xlu1 %v4955_v59  ;;  %v1521_v55 = vsel %vm4986_vm12, 0.0, %v3958_v63  ;;  %v1500_v26 = vmul.f32 %v3950_v51, %v1488_v9  ;;  %v1298_v35 = vsel %vm299_vm1, %v1296_v58, 0.0 }
 0x321   : > { %v1513_v19 = vpop.permute.xlu1 %1512  ;;  %v1468_v38 = vadd.f32 %v1464_v48, %v1432_v49  ;;  %v1469_v59 = vadd.f32 %v1465_v42, %v1433_v34  ;;  %v1346_v51 = vsel %vm301_vm4, %v1344_v31, 0.0  ;;  %v1524_v17 = vsel %vm301_vm4, %v1521_v55, 0.0 }
 0x322   : > { %v4126_v47 = vadd.f32 %v1535_v0, %v1503_v23  ;;  %v1515_v30 = vsel %vm4987_vm8, %v3958_v63, %v1513_v19  ;;  %2056 = vrot.lane.b32.xlu0 %v3699_v24, %s2489_s16  ;;  %v1312_v32 = vmul.f32 %v3843_v11, %v1298_v35  ;;  %v1358_v33 = vmul.f32 %v3893_v39, %v1346_v51 }
 0x323   : > { %1846 = vrot.lane.b32.xlu1 %v3683_v16, %s4954_s19  ;;  %v4134_v2 = vpop.permute.xlu0 %1635  ;;  %v1525_v63 = vsel %vm302_vm5, %v1515_v30, 0.0  ;;  %v1504_v13 = vadd.f32 %v1500_v26, %v1468_v38  ;;  %v1505_v8 = vadd.f32 %v4040_v62, %v1469_v59  ;;  %vm4988_vm0 = vcmask 261120  }
 0x324   : > { %v1380_v53 = vsel %vm4988_vm0, 0.0, %v3901_v37  ;;  %vm4989_vm3 = vcmask 252928   ;;  %vm4990_vm10 = vcmask 244736   ;;  %v1326_v11 = vadd.f32 %v3868_v6, %v1312_v32 }
 0x325   : > { %v1532_v25 = vpop.permute.xlu1 %1531  ;;  %v1412_v44 = vsel %vm4989_vm3, 0.0, %v3932_v21  ;;  %v1448_v62 = vsel %vm4990_vm10, 0.0, %v3954_v1  ;;  %v1390_v39 = vmul.f32 %v3889_v29, %v1380_v53  ;;  %vm4992_vm12 = vcmask 146432  }
 0x326   : > { %v1536_v3 = vmul.f32 %v1532_v25, %v1524_v17  ;;  %v1537_v4 = vmul.f32 %v1532_v25, %v1525_v63  ;;  %2060 = vrot.lane.b32.xlu0 %v3707_v60, %s2489_s16  ;;  %v1414_v37 = vsel %vm303_vm7, %v1412_v44, 0.0  ;;  %v1450_v42 = vsel %vm305_vm11, %v1448_v62, 0.0 }
 0x327   : > { %1863 = vperm.xlu1 %2421, %v3694_v54   ;;  %v4152_v28 = vpop.permute.xlu0 %1650  ;;  %v1362_v1 = vadd.f32 %v1358_v33, %v1326_v11  ;;  %v1426_v23 = vmul.f32 %v3946_v36, %v1414_v37  ;;  %v1484_v6 = vsel %vm4992_vm12, 0.0, %v3984_v40  ;;  %v1520_v29 = vsel %vm4987_vm8, 0.0, %v4074_v22 }
 0x328   : > { %v1540_v9 = vadd.f32 %v1536_v3, %v1504_v13  ;;  %v1541_v45 = vadd.f32 %v1537_v4, %v1505_v8  ;;  %v1462_v31 = vmul.f32 %v3928_v15, %v1450_v42  ;;  %vm4993_vm0 = vcmask 130048  }
 0x329   : > { %v1543_v48 = vpop.permute.xlu1 %1542  ;;  %v1394_v58 = vadd.f32 %v1390_v39, %v1362_v1  ;;  %vm4994_vm3 = vmmov %vm4993_vm0  ;;  %v1486_v36 = vsel %vm299_vm1, %v1484_v6, 0.0  ;;  %v1522_v22 = vsel %vm301_vm4, %v1520_v29, 0.0  ;;  %vm4998_vm8 = vcmask 121856  }
 0x32a   : > { %2088 = vrot.lane.b32.xlu0 %v3699_v24, %s4991_s22  ;;  %v1498_v19 = vmul.f32 %v4043_v43, %v1486_v36  ;;  %vm4995_vm10 = vmmov %vm4993_vm0  ;;  %v1534_v35 = vmul.f32 %v3963_v14, %v1522_v22 }
 0x32b   : > { %1878 = vrot.lane.b32.xlu1 %v3685_v56, %s4956_s20  ;;  %v4168_v21 = vpop.permute.xlu0 %1667  ;;  %v1550_v55 = vsel %vm4995_vm10, %v1543_v48, %v3972_v27  ;;  %vm4997_vm12 = vmmov %vm4993_vm0 }
 0x32c   : > { %2424 = vset.pattern.permute.xlu1 %v4957_v12 }
 0x32d   : > { %v1547_v0 = vpop.permute.xlu1 %1546 }
 0x32e   : > { %v1551_v49 = vsel %vm4993_vm0, %v1547_v0, %v3979_v61  ;;  %v1557_v34 = vsel %vm4994_vm3, 0.0, %v1547_v0  ;;  %2092 = vrot.lane.b32.xlu0 %v3707_v60, %s4991_s22  ;;  %v1430_v61 = vadd.f32 %v1426_v23, %v1394_v58  ;;  %vm4999_vm0 = vmmov %vm4998_vm8 }
 0x32f   : > { %v1568_v12 = vmul.f32 %v3998_v41, %v1557_v34  ;;  %v1569_v40 = vmul.f32 %v3998_v41, %v1551_v49  ;;  %1880 = vrot.lane.b32.xlu1 %v3699_v24, %s4956_s20  ;;  %v4190_v15 = vpop.permute.xlu0 %1684  ;;  %v1556_v41 = vsel %vm4997_vm12, 0.0, %v1543_v48  ;;  %vm5000_vm3 = vmmov %vm4999_vm0  ;;  %vm5002_vm12 = vcmask 113664  }
 0x330   : > { %v1466_v59 = vadd.f32 %v1462_v31, %v1430_v61  ;;  %v1589_v48 = vsel %vm5000_vm3, 0.0, %v4031_v57  ;;  %vm5001_vm10 = vmmov %vm4999_vm0 }
 0x331   : > { %v1572_v26 = vadd.f32 %v1568_v12, %v1540_v9  ;;  %v1573_v30 = vadd.f32 %v1569_v40, %v1541_v45  ;;  %v1560_v38 = vpop.permute.xlu1 %1559  ;;  %v1592_v42 = vsel %vm303_vm7, %v1589_v48, 0.0 }
 0x332   : > { %v1567_v51 = vmul.f32 %v1560_v38, %v1550_v55  ;;  %2124 = vrot.lane.b32.xlu0 %v3699_v24, %s4996_s23  ;;  %v1502_v43 = vadd.f32 %v1498_v19, %v1466_v59  ;;  %v1566_v63 = vmul.f32 %v1560_v38, %v1556_v41 }
 0x333   : > { %1884 = vrot.lane.b32.xlu1 %v3707_v60, %s4956_s20  ;;  %v4201_v17 = vpop.permute.xlu0 %1688 }
 0x334   : > { %v1571_v27 = vadd.f32 %v1567_v51, %v4126_v47  ;;  %v1538_v13 = vadd.f32 %v1534_v35, %v1502_v43 }
 0x335   : > { %v1575_v25 = vpop.permute.xlu1 %1574 }
 0x336   : > { %v1588_v8 = vsel %vm4998_vm8, 0.0, %v1575_v25  ;;  %2128 = vrot.lane.b32.xlu0 %v3707_v60, %s4996_s23  ;;  %v1570_v4 = vadd.f32 %v1566_v63, %v1538_v13  ;;  %vm5003_vm8 = vmmov %vm5002_vm12 }
 0x337   : > { %v1590_v14 = vsel %vm303_vm7, %v1588_v8, 0.0  ;;  %1899 = vperm.xlu1 %2424, %v3714_v46   ;;  %v4210_v3 = vpop.permute.xlu0 %1707 }
 0x338   : > { %v1602_v32 = vmul.f32 %v4060_v10, %v1590_v14 }
 0x339   : > { %v1577_v33 = vpop.permute.xlu1 %1576 }
 0x33a   : > { %v1582_v47 = vsel %vm4999_vm0, %v1575_v25, %v1577_v33  ;;  %v1606_v53 = vadd.f32 %v1602_v32, %v1570_v4  ;;  %vm5004_vm0 = vmmov %vm5003_vm8 }
 0x33b   : > { %v1591_v44 = vsel %vm304_vm9, %v1582_v47, 0.0  ;;  %1910 = vrot.lane.b32.xlu1 %v3685_v56, %s2481_s11  ;;  %v4218_v62 = vpop.permute.xlu0 %1734  ;;  %vm5005_vm3 = vmmov %vm5004_vm0  ;;  %v5010_v47 = vmov 20  }
 0x33c   : > { %v1603_v9 = vmul.f32 %v4060_v10, %v1591_v44  ;;  %2425 = vset.pattern.permute.xlu1 %v4959_v20 }
 0x33d   : > { %v1581_v45 = vpop.permute.xlu1 %1580 }
 0x33e   : > { %v1607_v11 = vadd.f32 %v1603_v9, %v1571_v27  ;;  %v1583_v39 = vsel %vm5001_vm10, %v4031_v57, %v1581_v45  ;;  %vm5006_vm10 = vcmask 1031168  }
 0x33f   : > { %1914 = vrot.lane.b32.xlu1 %v3683_v16, %s2481_s11  ;;  %v4228_v37 = vpop.permute.xlu0 %1738  ;;  %v1593_v10 = vsel %vm304_vm9, %v1583_v39, 0.0  ;;  %s4576_s11 = scalar_lea.vmem %s4638_s6, %s2604_s13 }
 0x341   : > { %v1600_v20 = vpop.permute.xlu1 %1599 }
 0x342   : > { %v1604_v1 = vmul.f32 %v1600_v20, %v1592_v42  ;;  %v1605_v23 = vmul.f32 %v1600_v20, %v1593_v10 }
 0x343   : > { %1931 = vperm.xlu1 %2425, %v3694_v54   ;;  %v4235_v6 = vpop.permute.xlu0 %1755 }
 0x344   : > { %v1608_v29 = vadd.f32 %v1604_v1, %v1572_v26  ;;  %v1609_v57 = vadd.f32 %v1605_v23, %v1573_v30 }
 0x345   : > { %v1611_v0 = vpop.permute.xlu1 %1610 }
 0x346   : > { %v1618_v49 = vsel %vm5002_vm12, %v1611_v0, %v4090_v5  ;;  %vm5007_vm12 = vcmask 15360  }
 0x347   : > { %1946 = vrot.lane.b32.xlu1 %v3685_v56, %s2483_s12  ;;  %v4239_v58 = vpop.permute.xlu0 %1772  ;;  %v1627_v55 = vsel %vm306_vm13, %v1618_v49, 0.0 }
 0x348   : > { %2428 = vset.pattern.permute.xlu1 %v4960_v7  ;;  %v1624_v7 = vsel %vm5005_vm3, 0.0, %v1611_v0 }
 0x349   : > { %v1615_v31 = vpop.permute.xlu1 %1614  ;;  %v1626_v59 = vsel %vm305_vm11, %v1624_v7, 0.0 }
 0x34a   : > { %v1619_v34 = vsel %vm5003_vm8, %v1615_v31, %v4113_v50  ;;  %v1625_v36 = vsel %vm5004_vm0, 0.0, %v1615_v31  ;;  %vm5008_vm8 = vmmov %vm5007_vm12  ;;  %vm5009_vm0 = vcmp.ge.s32.totalorder %v3117_v52, 2 }
 0x34b   : > { %v1628_v22 = vsel %vm305_vm11, %v1625_v36, 0.0  ;;  %v1629_v12 = vsel %vm306_vm13, %v1619_v34, 0.0  ;;  %1948 = vrot.lane.b32.xlu1 %v3699_v24, %s2483_s12  ;;  %v4253_v40 = vpop.permute.xlu0 %1776  ;;  %vm5011_vm3 = vmmov %vm5008_vm8 }
 0x34c   : > { %v1640_v5 = vmul.f32 %v4134_v2, %v1628_v22  ;;  %v1641_v61 = vmul.f32 %v4134_v2, %v1629_v12  ;;  %v1785_v50 = vsel %vm5006_vm10, %v4253_v40, 0.0  ;;  %v1661_v45 = vsel %vm5011_vm3, 0.0, %v4152_v28  ;;  %vm5012_vm10 = vmmov %vm5011_vm3 }
 0x34d   : > { %v1632_v19 = vpop.permute.xlu1 %1631  ;;  %v1789_v35 = vsel %vm306_vm13, %v1785_v50, 0.0  ;;  %v1664_v42 = vsel %vm299_vm1, %v1661_v45, 0.0 }
 0x34e   : > { %v1639_v26 = vmul.f32 %v1632_v19, %v1627_v55  ;;  %v1644_v30 = vadd.f32 %v1640_v5, %v1608_v29  ;;  %v1645_v38 = vadd.f32 %v1641_v61, %v1609_v57  ;;  %v1638_v51 = vmul.f32 %v1632_v19, %v1626_v59 }
 0x34f   : > { %1952 = vrot.lane.b32.xlu1 %v3707_v60, %s2483_s12  ;;  %v4268_v2 = vpop.permute.xlu0 %1795  ;;  %v5016_v57 = vmov 22  }
 0x350   : > { %v1643_v41 = vadd.f32 %v1639_v26, %v1607_v11  ;;  %v4271_v43 = vmul.f32 %v4268_v2, %v1789_v35  ;;  %v1642_v13 = vadd.f32 %v1638_v51, %v1606_v53  ;;  %v5013_v11 = vmov 21  }
 0x351   : > { %v1647_v63 = vpop.permute.xlu1 %1646  ;;  %v5020_v26 = vmov 23  }
 0x352   : > { %v1660_v27 = vsel %vm5007_vm12, 0.0, %v1647_v63  ;;  %vm5014_vm12 = vmmov %vm5009_vm0 }
 0x353   : > { %v1662_v25 = vsel %vm299_vm1, %v1660_v27, 0.0  ;;  %1971 = vperm.xlu1 %2428, %v3714_v46   ;;  %v4320_v51 = vpop.permute.xlu0 %1810 }
 0x354   : > { %v1674_v8 = vmul.f32 %v4168_v21, %v1662_v25 }
 0x355   : > { %v1649_v14 = vpop.permute.xlu1 %1648 }
 0x356   : > { %v1654_v4 = vsel %vm5008_vm8, %v1647_v63, %v1649_v14  ;;  %v1678_v32 = vadd.f32 %v1674_v8, %v1642_v13  ;;  %vm5015_vm8 = vcmask 7168  }
 0x357   : > { %v1663_v33 = vsel %vm5009_vm0, %v1654_v4, 0.0  ;;  %2429 = vset.pattern.permute.xlu1 %v5010_v47  ;;  %vm5017_vm0 = vmmov %vm5015_vm8  ;;  %v1828_v4 = vpop.permute.xlu0 %1827 }
 0x358   : > { %v1675_v44 = vmul.f32 %v4168_v21, %v1663_v33  ;;  %2003 = vperm.xlu1 %2429, %v3694_v54   ;;  %vm5018_vm3 = vmmov %vm5017_vm0 }
 0x359   : > { %v1653_v9 = vpop.permute.xlu1 %1652 }
 0x35a   : > { %v1655_v53 = vsel %vm5012_vm10, %v4152_v28, %v1653_v9  ;;  %v1679_v48 = vadd.f32 %v1675_v44, %v1643_v41  ;;  %vm5019_vm10 = vmmov %vm5017_vm0  ;;  %v5023_v44 = vmov 24  }
 0x35b   : > { %v1665_v21 = vsel %vm5014_vm12, %v1655_v53, 0.0  ;;  %vm5021_vm12 = vcmask 1039360  }
 0x35c   : > { %2431 = vset.pattern.permute.xlu1 %v5013_v11 }
 0x35d   : > { %2039 = vperm.xlu1 %2431, %v3694_v54   ;;  %v1672_v39 = vpop.permute.xlu1 %1671 }
 0x35e   : > { %v1676_v10 = vmul.f32 %v1672_v39, %v1664_v42  ;;  %v1677_v20 = vmul.f32 %v1672_v39, %v1665_v21  ;;  %v1845_v21 = vpop.permute.xlu0 %1844 }
 0x360   : > { %v1680_v1 = vadd.f32 %v1676_v10, %v1644_v30  ;;  %v1681_v23 = vadd.f32 %v1677_v20, %v1645_v38 }
 0x361   : > { %2043 = vperm.xlu1 %2431, %v3714_v46   ;;  %v1683_v29 = vpop.permute.xlu1 %1682 }
 0x362   : > { %v1690_v28 = vsel %vm5015_vm8, %v1683_v29, %v4190_v15  ;;  %v1696_v31 = vsel %vm5017_vm0, 0.0, %v1683_v29  ;;  %vm5022_vm8 = vmmov %vm5021_vm12 }
 0x363   : > { %v1698_v7 = vsel %vm301_vm4, %v1696_v31, 0.0  ;;  %vm5024_vm0 = vmmov %vm5022_vm8 }
 0x365   : > { %2433 = vset.pattern.permute.xlu1 %v5016_v57  ;;  %v1687_v0 = vpop.permute.xlu1 %1686 }
 0x366   : > { %v1691_v49 = vsel %vm5018_vm3, %v1687_v0, %v4201_v17  ;;  %v1697_v34 = vsel %vm5019_vm10, 0.0, %v1687_v0  ;;  %2075 = vperm.xlu1 %2433, %v3714_v46   ;;  %v1699_v17 = vsel %vm302_vm5, %v1690_v28, 0.0  ;;  %vm5025_vm3 = vmmov %vm5024_vm0  ;;  %vm5026_vm10 = vcmask 1031168  }
 0x367   : > { %v1700_v36 = vsel %vm301_vm4, %v1697_v34, 0.0  ;;  %v1701_v22 = vsel %vm302_vm5, %v1691_v49, 0.0 }
 0x368   : > { %v1712_v15 = vmul.f32 %v4210_v3, %v1700_v36  ;;  %v1713_v12 = vmul.f32 %v4210_v3, %v1701_v22 }
 0x369   : > { %v1704_v5 = vpop.permute.xlu1 %1703 }
 0x36a   : > { %v1710_v61 = vmul.f32 %v1704_v5, %v1698_v7  ;;  %v1711_v50 = vmul.f32 %v1704_v5, %v1699_v17  ;;  %1982 = vrot.lane.b32.xlu1 %v3685_v56, %s2485_s14  ;;  %v1716_v19 = vadd.f32 %v1712_v15, %v1680_v1  ;;  %v1717_v55 = vadd.f32 %v1713_v12, %v1681_v23 }
 0x36b   : > { %2434 = vset.pattern.permute.xlu1 %v5020_v26 }
 0x36c   : > { %v1714_v30 = vadd.f32 %v1710_v61, %v1678_v32  ;;  %v1715_v38 = vadd.f32 %v1711_v50, %v1679_v48 }
 0x36e   : > { %1986 = vrot.lane.b32.xlu1 %v3683_v16, %s2485_s14  ;;  %v1720_v3 = vpop.permute.xlu1 %1719 }
 0x36f   : > { %v1726_v59 = vmul.f32 %v1720_v3, %v3685_v56  ;;  %v1727_v35 = vmul.f32 %v1720_v3, %v3699_v24 }
 0x371   : > { %v1730_v41 = vadd.f32 %v1726_v59, %v1714_v30  ;;  %v1731_v63 = vadd.f32 %v1727_v35, %v1715_v38 }
 0x372   : > { %2107 = vperm.xlu1 %2434, %v3694_v54   ;;  %v1724_v27 = vpop.permute.xlu1 %1723 }
 0x373   : > { %v1728_v25 = vmul.f32 %v1724_v27, %v3683_v16  ;;  %v1729_v13 = vmul.f32 %v1724_v27, %v3707_v60 }
 0x375   : > { %v1732_v8 = vadd.f32 %v1728_v25, %v1716_v19  ;;  %v1733_v14 = vadd.f32 %v1729_v13, %v1717_v55 }
 0x376   : > { %2018 = vrot.lane.b32.xlu1 %v3685_v56, %s2487_s15  ;;  %v1737_v32 = vpop.permute.xlu1 %1736 }
 0x377   : > { %v1742_v33 = vsel %vm5021_vm12, %v4218_v62, %v1737_v32  ;;  %v1748_v47 = vsel %vm5022_vm8, %v1737_v32, 0.0  ;;  %2437 = vset.pattern.permute.xlu1 %v5023_v44  ;;  %vm5027_vm12 = vmmov %vm5026_vm10 }
 0x378   : > { %v1750_v54 = vsel %vm303_vm7, %v1742_v33, 0.0  ;;  %v1751_v9 = vsel %vm304_vm9, %v1748_v47, 0.0  ;;  %v1784_v31 = vsel %vm5027_vm12, %v4239_v58, 0.0  ;;  %vm5028_vm8 = vmmov %vm5026_vm10 }
 0x379   : > { %v1762_v45 = vmul.f32 %v4235_v6, %v1750_v54  ;;  %v1763_v53 = vmul.f32 %v4235_v6, %v1751_v9 }
 0x37a   : > { %2020 = vrot.lane.b32.xlu1 %v3699_v24, %s2487_s15  ;;  %v1741_v48 = vpop.permute.xlu1 %1740 }
 0x37b   : > { %v1743_v62 = vsel %vm5024_vm0, %v4228_v37, %v1741_v48  ;;  %v1749_v11 = vsel %vm5025_vm3, %v1741_v48, 0.0  ;;  %v1766_v39 = vadd.f32 %v1762_v45, %v1730_v41  ;;  %v1767_v42 = vadd.f32 %v1763_v53, %v1731_v63  ;;  %v4348_v37 = vpop.permute.xlu0 %1848 }
 0x37c   : > { %v1753_v10 = vsel %vm304_vm9, %v1749_v11, 0.0  ;;  %v1752_v6 = vsel %vm303_vm7, %v1743_v62, 0.0  ;;  %vm5029_vm0 = vcmask 932864  }
 0x37d   : > { %vm5030_vm3 = vmmov %vm5029_vm0 }
 0x37e   : > { %2024 = vrot.lane.b32.xlu1 %v3707_v60, %s2487_s15  ;;  %v1760_v20 = vpop.permute.xlu1 %1759  ;;  %vm5032_vm12 = vmmov %vm5029_vm0 }
 0x37f   : > { %v1764_v24 = vmul.f32 %v1760_v20, %v1752_v6  ;;  %v1765_v1 = vmul.f32 %v1760_v20, %v1753_v10  ;;  %v4360_v34 = vpop.permute.xlu0 %1867 }
 0x381   : > { %v1768_v23 = vadd.f32 %v1764_v24, %v1732_v8  ;;  %v1769_v29 = vadd.f32 %v1765_v1, %v1733_v14 }
 0x382   : > { %2147 = vperm.xlu1 %2437, %v3714_v46   ;;  %v1771_v28 = vpop.permute.xlu1 %1770 }
 0x383   : > { %v1778_v57 = vsel %vm5026_vm10, %v1771_v28, %v4239_v58  ;;  %v1805_v60 = vadd.f32 %v4271_v43, %v1769_v29  ;;  %v1787_v58 = vsel %vm306_vm13, %v1784_v31, 0.0  ;;  %v1883_v17 = vpop.permute.xlu0 %1882  ;;  %vm5031_vm10 = vcmp.ge.s32.totalorder %v3117_v52, 2 }
 0x384   : > { %v1786_v22 = vsel %vm305_vm11, %v1778_v57, 0.0 }
 0x386   : > { %2054 = vrot.lane.b32.xlu1 %v3685_v56, %s2489_s16  ;;  %v1775_v0 = vpop.permute.xlu1 %1774 }
 0x387   : > { %v1779_v49 = vsel %vm5028_vm8, %v1775_v0, %v4253_v40  ;;  %v1896_v55 = vpop.permute.xlu0 %1895  ;;  %vm5033_vm8 = vmmov %vm5029_vm0 }
 0x388   : > { %v1788_v46 = vsel %vm305_vm11, %v1779_v49, 0.0 }
 0x389   : > { %v1800_v36 = vmul.f32 %v4268_v2, %v1788_v46 }
 0x38a   : > { %2058 = vrot.lane.b32.xlu1 %v3683_v16, %s2489_s16  ;;  %v1792_v43 = vpop.permute.xlu1 %1791 }
 0x38b   : > { %v1798_v15 = vmul.f32 %v1792_v43, %v1786_v22  ;;  %v1799_v12 = vmul.f32 %v1792_v43, %v1787_v58  ;;  %v1804_v40 = vadd.f32 %v1800_v36, %v1768_v23  ;;  %v4386_v25 = vpop.permute.xlu0 %1912 }
 0x38d   : > { %v1802_v7 = vadd.f32 %v1798_v15, %v1766_v39  ;;  %v1803_v5 = vadd.f32 %v1799_v12, %v1767_v42 }
 0x38e   : > { %2086 = vrot.lane.b32.xlu1 %v3685_v56, %s4991_s22  ;;  %v1807_v2 = vpop.permute.xlu1 %1806 }
 0x38f   : > { %v4394_v47 = vpop.permute.xlu0 %1916 }
 0x392   : > { %2090 = vrot.lane.b32.xlu1 %v3683_v16, %s4991_s22  ;;  %v1809_v61 = vpop.permute.xlu1 %1808 }
 0x393   : > { %v1814_v50 = vsel %vm5029_vm0, %v1807_v2, %v1809_v61  ;;  %v1820_v19 = vsel %vm5030_vm3, %v1809_v61, 0.0  ;;  %vm5034_vm0 = vmmov %vm5031_vm10  ;;  %vm5035_vm3 = vcmask 924672   ;;  %v4403_v48 = vpop.permute.xlu0 %1935 }
 0x394   : > { %v1822_v26 = vsel %vm299_vm1, %v1814_v50, 0.0  ;;  %v1823_v30 = vsel %vm5031_vm10, %v1820_v19, 0.0  ;;  %v1856_v54 = vsel %vm5035_vm3, %v1845_v21, 0.0  ;;  %vm5036_vm10 = vmmov %vm5035_vm3 }
 0x395   : > { %v1834_v38 = vmul.f32 %v1828_v4, %v1822_v26  ;;  %v1835_v3 = vmul.f32 %v1828_v4, %v1823_v30  ;;  %v1859_v39 = vsel %vm302_vm5, %v1856_v54, 0.0 }
 0x396   : > { %2122 = vrot.lane.b32.xlu1 %v3685_v56, %s4996_s23  ;;  %v1813_v59 = vpop.permute.xlu1 %1812 }
 0x397   : > { %v1815_v35 = vsel %vm5032_vm12, %v4320_v51, %v1813_v59  ;;  %v1821_v41 = vsel %vm5033_vm8, %v1813_v59, 0.0  ;;  %v1838_v63 = vadd.f32 %v1834_v38, %v1802_v7  ;;  %v1839_v27 = vadd.f32 %v1835_v3, %v1803_v5  ;;  %vm5037_vm12 = vmmov %vm5035_vm3  ;;  %v1951_v1 = vpop.permute.xlu0 %1950 }
 0x398   : > { %v1825_v13 = vsel %vm5034_vm0, %v1821_v41, 0.0  ;;  %v1824_v56 = vsel %vm299_vm1, %v1815_v35, 0.0  ;;  %vm5038_vm8 = vmmov %vm5035_vm3  ;;  %vm5044_vm3 = vcmask 769024  }
 0x399   : > { %v1857_v31 = vsel %vm5038_vm8, %v4348_v37, 0.0 }
 0x39a   : > { %2126 = vrot.lane.b32.xlu1 %v3683_v16, %s4996_s23  ;;  %v1832_v8 = vpop.permute.xlu1 %1831  ;;  %v1861_v43 = vsel %vm302_vm5, %v1857_v31, 0.0 }
 0x39b   : > { %v1836_v14 = vmul.f32 %v1832_v8, %v1824_v56  ;;  %v1837_v4 = vmul.f32 %v1832_v8, %v1825_v13  ;;  %v4411_v57 = vpop.permute.xlu0 %1967  ;;  %v1873_v22 = vmul.f32 %v4360_v34, %v1861_v43 }
 0x39d   : > { %v1840_v32 = vadd.f32 %v1836_v14, %v1804_v40  ;;  %v1841_v51 = vadd.f32 %v1837_v4, %v1805_v60 }
 0x39e   : > { %v1843_v33 = vpop.permute.xlu1 %1842 }
 0x39f   : > { %v1850_v9 = vsel %vm5036_vm10, %v1843_v33, %v1845_v21  ;;  %v4420_v58 = vpop.permute.xlu0 %2007  ;;  %v1877_v7 = vadd.f32 %v1873_v22, %v1841_v51  ;;  %vm5045_vm10 = vcmask 777216  }
 0x3a0   : > { %v1858_v11 = vsel %vm301_vm4, %v1850_v9, 0.0 }
 0x3a2   : > { %v1847_v44 = vpop.permute.xlu1 %1846 }
 0x3a3   : > { %v1851_v16 = vsel %vm5037_vm12, %v1847_v44, %v4348_v37  ;;  %v4426_v19 = vpop.permute.xlu0 %2071  ;;  %vm5046_vm12 = vmmov %vm5045_vm10 }
 0x3a4   : > { %v1860_v45 = vsel %vm301_vm4, %v1851_v16, 0.0 }
 0x3a5   : > { %v1872_v53 = vmul.f32 %v4360_v34, %v1860_v45 }
 0x3a6   : > { %v1864_v62 = vpop.permute.xlu1 %1863 }
 0x3a7   : > { %v1870_v42 = vmul.f32 %v1864_v62, %v1858_v11  ;;  %v1871_v10 = vmul.f32 %v1864_v62, %v1859_v39  ;;  %v1876_v21 = vadd.f32 %v1872_v53, %v1840_v32  ;;  %v4435_v38 = vpop.permute.xlu0 %1984 }
 0x3a9   : > { %v1874_v20 = vadd.f32 %v1870_v42, %v1838_v63  ;;  %v1875_v6 = vadd.f32 %v1871_v10, %v1839_v27 }
 0x3aa   : > { %v1879_v24 = vpop.permute.xlu1 %1878 }
 0x3ab   : > { %v1989_v13 = vpop.permute.xlu0 %1988 }
 0x3ae   : > { %v1881_v23 = vpop.permute.xlu1 %1880 }
 0x3af   : > { %v1886_v29 = vsel %vm988_vm15, %v1879_v24, %v1881_v23  ;;  %v1892_v28 = vsel %vm988_vm15, %v1881_v23, 0.0  ;;  %v4443_v32 = vpop.permute.xlu0 %2111 }
 0x3b0   : > { %v1902_v60 = vmul.f32 %v1896_v55, %v1886_v29  ;;  %v1903_v0 = vmul.f32 %v1896_v55, %v1892_v28  ;;  %v1924_v28 = vsel %vm1021_vm14, %v4386_v25, 0.0 }
 0x3b1   : > { %v1927_v43 = vsel %vm304_vm9, %v1924_v28, 0.0 }
 0x3b2   : > { %v1906_v49 = vadd.f32 %v1902_v60, %v1874_v20  ;;  %v4415_v46 = vadd.f32 %v1903_v0, %v1875_v6  ;;  %v1885_v36 = vpop.permute.xlu1 %1884 }
 0x3b3   : > { %v1887_v15 = vsel %vm988_vm15, %v1883_v17, %v1885_v36  ;;  %v1893_v12 = vsel %vm988_vm15, %v1885_v36, 0.0  ;;  %v4447_v54 = vpop.permute.xlu0 %2022  ;;  %vm5042_vm15 = vcmask 785408  }
 0x3b6   : > { %v1900_v40 = vpop.permute.xlu1 %1899 }
 0x3b7   : > { %v1904_v5 = vmul.f32 %v1900_v40, %v1887_v15  ;;  %v1905_v2 = vmul.f32 %v1900_v40, %v1893_v12  ;;  %v4451_v16 = vpop.permute.xlu0 %2143  ;;  %v1996_v15 = vsel %vm1095_vm6, %v4435_v38, 0.0 }
 0x3b9   : > { %v1908_v37 = vadd.f32 %v1904_v5, %v1876_v21  ;;  %v4424_v61 = vadd.f32 %v1905_v2, %v1877_v7  ;;  %v1997_v5 = vsel %vm1095_vm6, %v1989_v13, 0.0 }
 0x3ba   : > { %v1911_v50 = vpop.permute.xlu1 %1910 }
 0x3bb   : > { %v1918_v34 = vsel %vm1021_vm14, %v1911_v50, %v4386_v25  ;;  %v4455_v53 = vpop.permute.xlu0 %2056  ;;  %v1925_v25 = vsel %vm1021_vm14, %v4394_v47, 0.0 }
 0x3bc   : > { %v1926_v59 = vsel %vm303_vm7, %v1918_v34, 0.0 }
 0x3be   : > { %v1915_v55 = vpop.permute.xlu1 %1914 }
 0x3bf   : > { %v1919_v26 = vsel %vm1021_vm14, %v1915_v55, %v4394_v47  ;;  %v4461_v39 = vpop.permute.xlu0 %2060  ;;  %vm5039_vm14 = vmmov %vm5034_vm0 }
 0x3c0   : > { %v1928_v17 = vsel %vm303_vm7, %v1919_v26, 0.0  ;;  %v1999_v47 = vsel %vm5039_vm14, %v1996_v15, 0.0  ;;  %vm5048_vm14 = vmmov %vm5042_vm15 }
 0x3c1   : > { %v1940_v30 = vmul.f32 %v4403_v48, %v1928_v17 }
 0x3c2   : > { %v1932_v3 = vpop.permute.xlu1 %1931 }
 0x3c3   : > { %v1938_v35 = vmul.f32 %v1932_v3, %v1926_v59  ;;  %v1944_v41 = vadd.f32 %v1940_v30, %v1908_v37  ;;  %v4468_v20 = vpop.permute.xlu0 %2088  ;;  %v1939_v12 = vmul.f32 %v1932_v3, %v1927_v43  ;;  %v1929_v37 = vsel %vm304_vm9, %v1925_v25, 0.0 }
 0x3c4   : > { %v1941_v55 = vmul.f32 %v4403_v48, %v1929_v37  ;;  %v5041_v59 = vlaneseq  ;;  %v2069_v25 = vsel %vm5048_vm14, %v4461_v39, 0.0 }
 0x3c5   : > { %v1942_v63 = vadd.f32 %v1938_v35, %v1906_v49  ;;  %v1943_v26 = vadd.f32 %v1939_v12, %v4415_v46 }
 0x3c6   : > { %v1947_v27 = vpop.permute.xlu1 %1946  ;;  %v4510_v35 = vshrl.u32 %v5041_v59, 7 }
 0x3c7   : > { %v4479_v49 = vpop.permute.xlu0 %2092 }
 0x3ca   : > { %v1949_v8 = vpop.permute.xlu1 %1948 }
 0x3cb   : > { %v1954_v56 = vsel %vm1058_vm2, %v1947_v27, %v1949_v8  ;;  %v1960_v60 = vsel %vm1058_vm2, %v1949_v8, 0.0  ;;  %v4503_v34 = vpop.permute.xlu0 %2124  ;;  %v2100_v8 = vsel %vm5045_vm10, %v4468_v20, 0.0 }
 0x3cc   : > { %v1962_v14 = vsel %vm305_vm11, %v1954_v56, 0.0  ;;  %v1963_v22 = vsel %vm306_vm13, %v1960_v60, 0.0  ;;  %v2136_v46 = vsel %vm5044_vm3, %v4503_v34, 0.0  ;;  %v2103_v28 = vsel %vm304_vm9, %v2100_v8, 0.0 }
 0x3cd   : > { %v1974_v4 = vmul.f32 %v4411_v57, %v1962_v14  ;;  %v1975_v2 = vmul.f32 %v4411_v57, %v1963_v22 }
 0x3ce   : > { %v1953_v51 = vpop.permute.xlu1 %1952 }
 0x3cf   : > { %v4445_v33 = vadd.f32 %v1974_v4, %v1942_v63  ;;  %v1955_v42 = vsel %vm1058_vm2, %v1951_v1, %v1953_v51  ;;  %v1961_v40 = vsel %vm1058_vm2, %v1953_v51, 0.0  ;;  %vm5040_vm2 = vmmov %vm5034_vm0  ;;  %v1945_v63 = vadd.f32 %v1941_v55, %v4424_v61 }
 0x3d0   : > { %v1964_v21 = vsel %vm305_vm11, %v1955_v42, 0.0  ;;  %v1965_v50 = vsel %vm306_vm13, %v1961_v40, 0.0  ;;  %v2001_v57 = vsel %vm5040_vm2, %v1997_v5, 0.0  ;;  %v1979_v48 = vadd.f32 %v1975_v2, %v1943_v26  ;;  %vm5056_vm2 = vmmov %vm5045_vm10 }
 0x3d1   : > { %vm5043_vm0 = vcmask 793600   ;;  %v2013_v51 = vmul.f32 %v4420_v58, %v2001_v57  ;;  %v2166_v42 = vsub.s32 1, %v4510_v35 }
 0x3d2   : > { %v1972_v44 = vpop.permute.xlu1 %1971  ;;  %vm5047_vm8 = vmmov %vm5043_vm0 }
 0x3d3   : > { %v1976_v6 = vmul.f32 %v1972_v44, %v1964_v21  ;;  %v1977_v17 = vmul.f32 %v1972_v44, %v1965_v50  ;;  %v2101_v21 = vsel %vm5046_vm12, %v4479_v49, 0.0 }
 0x3d4   : > { %v2105_v15 = vsel %vm304_vm9, %v2101_v21, 0.0  ;;  %vm5051_vm9 = vmmov %vm5043_vm0 }
 0x3d5   : > { %v1980_v1 = vadd.f32 %v1976_v6, %v1944_v41  ;;  %v2068_v41 = vsel %vm5042_vm15, %v4455_v53, 0.0  ;;  %v1981_v56 = vadd.f32 %v1977_v17, %v1945_v63  ;;  %v2139_v6 = vsel %vm306_vm13, %v2136_v46, 0.0 }
 0x3d6   : > { %v2079_v61 = vmul.f32 %v4426_v19, %v2068_v41  ;;  %v2151_v12 = vmul.f32 %v4451_v16, %v2139_v6  ;;  %v2117_v55 = vmul.f32 %v4443_v32, %v2105_v15 }
 0x3d7   : > { %v4449_v9 = vpop.permute.xlu1 %2003 }
 0x3d8   : > { %v2011_v30 = vmul.f32 %v4449_v9, %v1999_v47 }
 0x3da   : > { %v2015_v14 = vadd.f32 %v2011_v30, %v1979_v48  ;;  %v2179_v48 = vld [vmem:[%s4559_s28 + $0x8] sm:$0xff] }
 0x3dc   : > { %v4453_v45 = vpop.permute.xlu1 %2039 }
 0x3e0   : > { %v4457_v62 = vpop.permute.xlu1 %2043 }
 0x3e5   : > { %v4459_v11 = vpop.permute.xlu1 %2075 }
 0x3e6   : > { %v2081_v37 = vmul.f32 %v4459_v11, %v2069_v25 }
 0x3e9   : > { %v4464_v10 = vpop.permute.xlu1 %1982 }
 0x3ed   : > { %v1987_v24 = vpop.permute.xlu1 %1986 }
 0x3ee   : > { %v1991_v23 = vsel %vm1095_vm6, %v1987_v24, %v1989_v13 }
 0x3ef   : > { %v2000_v29 = vsel %vm299_vm1, %v1991_v23, 0.0 }
 0x3f0   : > { %v2012_v0 = vmul.f32 %v4420_v58, %v2000_v29  ;;  %v4534_v29 = vld [vmem:[%s4637_s5] sm:$0x3]  ;;  %v4536_v58 = vpop.permute.xlu0 %2128 }
 0x3f1   : > { %v4477_v31 = vpop.permute.xlu1 %2107  ;;  %v2167_v40 = vrot.slane %v4534_v29, %v2166_v42 }
 0x3f2   : > { %v4481_v36 = vadd.f32 %v2012_v0, %v1980_v1  ;;  %v2017_v1 = vadd.f32 %v2013_v51, %v1981_v56  ;;  %v2115_v0 = vmul.f32 %v4477_v31, %v2103_v28 }
 0x3f5   : > { %v4492_v7 = vpop.permute.xlu1 %2018 }
 0x3f9   : > { %v2021_v3 = vpop.permute.xlu1 %2020 }
 0x3fa   : > { %v2032_v27 = vsel %vm5043_vm0, %v2021_v3, 0.0 }
 0x3fb   : > { %v2035_v13 = vsel %vm302_vm5, %v2032_v27, 0.0  ;;  %v1990_v27 = vsel %vm1095_vm6, %v4464_v10, %v4435_v38  ;;  %v5052_v38 = vld [vmem:[#allocation5_spill] sm:$0xff]  ;;  %vm5053_vm6 = vmmov %vm5043_vm0 }
 0x3fc   : > { %v2047_v4 = vmul.f32 %v4453_v45, %v2035_v13  ;;  %v5050_v13 = vld [vmem:[#allocation3_spill] sm:$0xff]  ;;  %v1998_v51 = vsel %vm299_vm1, %v1990_v27, 0.0  ;;  %vm5055_vm1 = vmmov %vm5048_vm14 }
 0x3fd   : > { %v2025_v44 = vpop.permute.xlu1 %2024  ;;  %vm5057_vm15 = vmmov %vm5055_vm1 }
 0x3fe   : > { %v2051_v24 = vadd.f32 %v2047_v4, %v2015_v14  ;;  %v2033_v23 = vsel %vm5047_vm8, %v2025_v44, 0.0  ;;  %v2026_v14 = vsel %vm5051_vm9, %v4492_v7, %v2021_v3  ;;  %v2010_v3 = vmul.f32 %v4449_v9, %v1998_v51 }
 0x3ff   : > { %v2037_v60 = vsel %vm302_vm5, %v2033_v23, 0.0  ;;  %vm5049_vm5 = vmmov %vm5044_vm3  ;;  %v2034_v21 = vsel %vm301_vm4, %v2026_v14, 0.0  ;;  %v2027_v6 = vsel %vm5053_vm6, %v4447_v54, %v2025_v44 }
 0x400   : > { %v2083_v43 = vadd.f32 %v2079_v61, %v2051_v24  ;;  %v2049_v22 = vmul.f32 %v4457_v62, %v2037_v60  ;;  %v2137_v2 = vsel %vm5049_vm5, %v4536_v58, 0.0  ;;  %v2181_v61 = vld [vmem:[%s4559_s28 + $0x18] sm:$0xff]  ;;  %v2046_v60 = vmul.f32 %v4453_v45, %v2034_v21 }
 0x401   : > { %v4550_v5 = vpop.permute.xlu1 %2147  ;;  %v2141_v30 = vsel %vm306_vm13, %v2137_v2, 0.0  ;;  %vm5054_vm13 = vmmov %vm5045_vm10  ;;  %v2014_v54 = vadd.f32 %v2010_v3, %v4445_v33  ;;  %v2162_v45 = vsub.s32 0, %v4510_v35 }
 0x402   : > { %v2119_v50 = vadd.f32 %v2115_v0, %v2083_v43  ;;  %v2053_v47 = vadd.f32 %v2049_v22, %v2017_v1  ;;  %v2153_v41 = vmul.f32 %v4550_v5, %v2141_v30  ;;  %v2036_v0 = vsel %vm301_vm4, %v2027_v6, 0.0  ;;  %vm5058_vm4 = vmmov %vm5044_vm3  ;;  %v5060_v30 = vld [vmem:[#allocation2_spill] sm:$0xff] }
 0x403   : > { %v2050_v22 = vadd.f32 %v2046_v60, %v2014_v54  ;;  %v2048_v25 = vmul.f32 %v4457_v62, %v2036_v0 }
 0x404   : > { %v2085_v26 = vadd.f32 %v2081_v37, %v2053_v47  ;;  %v2155_v17 = vadd.f32 %v2151_v12, %v2119_v50 }
 0x405   : > { %v2055_v57 = vpop.permute.xlu1 %2054  ;;  %v2052_v62 = vadd.f32 %v2048_v25, %v4481_v36 }
 0x406   : > { %v2121_v59 = vadd.f32 %v2117_v55, %v2085_v26  ;;  %v2171_v63 = vmul.f32 %v2167_v40, %v2155_v17  ;;  %v2062_v28 = vsel %vm5055_vm1, %v2055_v57, %v4455_v53  ;;  %v2178_v17 = vld [vmem:[%s4559_s28] sm:$0xff] }
 0x407   : > { %v2078_v44 = vmul.f32 %v4426_v19, %v2062_v28 }
 0x408   : > { %v2157_v46 = vadd.f32 %v2153_v41, %v2121_v59  ;;  %v2175_v8 = vadd.f32 %v2171_v63, %v5050_v13  ;;  %v2180_v41 = vld [vmem:[%s4559_s28 + $0x10] sm:$0xff] }
 0x409   : > { %v2059_v56 = vpop.permute.xlu1 %2058 }
 0x40a   : > { %v2173_v52 = vmul.f32 %v2167_v40, %v2157_v46  ;;  %v2183_v4 = vadd.f32 %v2179_v48, %v2175_v8  ;;  %v2063_v53 = vsel %vm5057_vm15, %v2059_v56, %v4461_v39  ;;  %v2082_v40 = vadd.f32 %v2078_v44, %v2050_v22  ;;  %v5061_v48 = vld [vmem:[#allocation4_spill] sm:$0xff] }
 0x40b   : > { %v2080_v19 = vmul.f32 %v4459_v11, %v2063_v53  ;;  %v2163_v39 = vrot.slane %v4534_v29, %v2162_v45 }
 0x40c   : > { %v2177_v10 = vadd.f32 %v2173_v52, %v5052_v38  ;;  %v2187_v42 = vmax.f32 %v2183_v4, 0.0 }
 0x40d   : > { %v2087_v7 = vpop.permute.xlu1 %2086  ;;  %v2084_v11 = vadd.f32 %v2080_v19, %v2052_v62 }
 0x40e   : > { %v2185_v24 = vadd.f32 %v2181_v61, %v2177_v10  ;;  %2191 = vst [vmem:[%s4576_s11 + $0x8] sm:$0xff] %v2187_v42  ;;  %v2094_v23 = vsel %vm5054_vm13, %v2087_v7, %v4468_v20 }
 0x40f   : > { %v2102_v9 = vsel %vm303_vm7, %v2094_v23, 0.0 }
 0x410   : > { %v2189_v1 = vmax.f32 %v2185_v24, 0.0  ;;  %v2114_v15 = vmul.f32 %v4477_v31, %v2102_v9 }
 0x411   : > { %v2091_v43 = vpop.permute.xlu1 %2090 }
 0x412   : > { %2193 = vst [vmem:[%s4576_s11 + $0x18] sm:$0xff] %v2189_v1  ;;  %v2095_v20 = vsel %vm5056_vm2, %v2091_v43, %v4479_v49  ;;  %v2118_v2 = vadd.f32 %v2114_v15, %v2082_v40 }
 0x413   : > { %v2104_v12 = vsel %vm303_vm7, %v2095_v20, 0.0  ;;  %vm5059_vm7 = vmmov %vm5044_vm3 }
 0x414   : > { %v2116_v31 = vmul.f32 %v4443_v32, %v2104_v12 }
 0x415   : > { %v2123_v33 = vpop.permute.xlu1 %2122 }
 0x416   : > { %v2130_v49 = vsel %vm5058_vm4, %v2123_v33, %v4503_v34  ;;  %v2120_v55 = vadd.f32 %v2116_v31, %v2084_v11 }
 0x417   : > { %v2138_v35 = vsel %vm305_vm11, %v2130_v49, 0.0 }
 0x418   : > { %v2150_v37 = vmul.f32 %v4451_v16, %v2138_v35 }
 0x419   : > { %v2127_v50 = vpop.permute.xlu1 %2126 }
 0x41a   : > { %v2154_v47 = vadd.f32 %v2150_v37, %v2118_v2  ;;  %v2131_v34 = vsel %vm5059_vm7, %v2127_v50, %v4536_v58 }
 0x41b   : > { %v2140_v29 = vsel %vm305_vm11, %v2131_v34, 0.0 }
 0x41c   : > { %v2170_v26 = vmul.f32 %v2163_v39, %v2154_v47  ;;  %v2152_v36 = vmul.f32 %v4550_v5, %v2140_v29 }
 0x41e   : > { %v2174_v32 = vadd.f32 %v2170_v26, %v5060_v30  ;;  %v2156_v57 = vadd.f32 %v2152_v36, %v2120_v55 }
 0x420   : > { %v2182_v16 = vadd.f32 %v2178_v17, %v2174_v32  ;;  %v2172_v59 = vmul.f32 %v2163_v39, %v2156_v57 }
 0x422   : > { %v2186_v63 = vmax.f32 %v2182_v16, 0.0  ;;  %v2176_v27 = vadd.f32 %v2172_v59, %v5061_v48 }
 0x424   : > { %2190 = vst [vmem:[%s4576_s11] sm:$0xff] %v2186_v63  ;;  %v2184_v58 = vadd.f32 %v2180_v41, %v2176_v27 }
 0x426   : > { %v2188_v46 = vmax.f32 %v2184_v58, 0.0 }
 0x428   : > { %2192 = vst [vmem:[%s4576_s11 + $0x10] sm:$0xff] %v2188_v46 }
 0x429 PF: > { %s16_s21 = sadd.s32 1, %s2444_s21  }
 0x42a   : > { %p13_p4 = scmp.ge.s32.totalorder %s16_s21, 4  }
 0x42c   :  { %15 = sbr.rel (!%p13_p4) target bundleno = 1 (0x1), region = 80 }

</bundles_post_ra>
